<compile_context>
chip_gen: v6e
topology: v6e:2x2x1
jax: 0.10.0
libtpu: 0.0.40
codegen_flags: <defaults>
</compile_context>

<pallas_src>
import functools
import math

import jax
import jax.numpy as jnp
from jax.experimental import pallas as pl
from jax.experimental.pallas import tpu as pltpu

NPAD = 128  # classifier output padded to a full lane tile


# ----------------------------- fused Pallas kernel --------------------------

def _vb_fused_kernel(
    # per-batch inputs
    txt_ref, vis_ref, mask_ref,
    # embedding params
    visw_ref, visb_ref, vismisc_ref, embg_ref, embb_ref,
    # stacked per-layer params
    wqkv_ref, bqkv_ref, wo_ref, bo_ref, alng_ref, alnb_ref,
    wi_ref, bi_ref, wf_ref, bf_ref, olng_ref, olnb_ref,
    # pooler / classifier
    poolw_ref, poolb_ref, clsw_ref, clsb_ref,
    # output
    out_ref,
    # scratch
    x_scr, ctx_scr,
    *, n_layers, n_heads, eps):
  """One grid step = one batch element; everything stays in VMEM."""
  T = txt_ref.shape[1]
  Vn = vis_ref.shape[1]
  H = txt_ref.shape[2]
  S = T + Vn
  dh = H // n_heads
  f32 = jnp.float32
  bf16 = jnp.bfloat16

  def mm(a, w):  # bf16 MXU matmul, f32 accumulation (weights already bf16)
    return jnp.dot(a.astype(bf16), w, preferred_element_type=f32)

  def layer_norm(v, g, b):  # f32 statistics / epilogue
    mu = jnp.mean(v, axis=-1, keepdims=True)
    d = v - mu
    var = jnp.mean(d * d, axis=-1, keepdims=True)
    return (d * jax.lax.rsqrt(var + eps)) * g + b

  # ---- VisualBertEmbeddings: visual projection + concat + LayerNorm -------
  vis = mm(vis_ref[0], visw_ref[...]) + visb_ref[...] + vismisc_ref[...]
  x_scr[0:T, :] = txt_ref[0]
  x_scr[T:S, :] = vis
  x = layer_norm(x_scr[...], embg_ref[...], embb_ref[...])      # (S, H) f32

  ext = mask_ref[0]                                             # (1, S) additive mask

  # ---- encoder: n_layers BertLayers, activations resident in VMEM ---------
  for l in range(n_layers):                                     # static unroll (L small)
    qkv = mm(x, wqkv_ref[l]) + bqkv_ref[l]                      # (S, 3H) lane-dense
    q = qkv[:, 0:H]          # 1/sqrt(dh) already folded into the Q weights
    k = qkv[:, H:2 * H]
    v = qkv[:, 2 * H:3 * H]

    for h in range(n_heads):                                    # static unroll
      sl = slice(h * dh, (h + 1) * dh)
      qh = q[:, sl].astype(bf16)
      kh = k[:, sl].astype(bf16)
      vh = v[:, sl].astype(bf16)
      s = jax.lax.dot_general(qh, kh, (((1,), (1,)), ((), ())),
                              preferred_element_type=f32) + ext
      s = s - jnp.max(s, axis=-1, keepdims=True)
      p = jnp.exp(s)
      p = p * pl.reciprocal(jnp.sum(p, axis=-1, keepdims=True), approx=True)
      ctx_scr[:, sl] = jnp.dot(p.astype(bf16), vh, preferred_element_type=f32)

    attn = mm(ctx_scr[...], wo_ref[l]) + bo_ref[l]
    x = layer_norm(attn + x, alng_ref[l], alnb_ref[l])          # residual + LN

    inter = mm(x, wi_ref[l]) + bi_ref[l]
    inter = 0.5 * inter * (1.0 + jax.lax.erf(inter * (1.0 / math.sqrt(2.0))))  # exact GELU
    ffn = mm(inter, wf_ref[l]) + bf_ref[l]
    x = layer_norm(ffn + x, olng_ref[l], olnb_ref[l])           # residual + LN

  # ---- pooler (token 0, Linear + tanh) then classifier (128-lane padded) ---
  pooled = jnp.tanh(mm(x[0:1, :], poolw_ref[...]) + poolb_ref[...])   # (1, H)
  logits = mm(pooled, clsw_ref[...]) + clsb_ref[...]                  # (1, NPAD)
  out_ref[0] = logits


# ----------------------------- model config ---------------------------------

class CFG:
  vocab_size = 30
  hidden = 128          # VisualBertConfig(hidden_size=1024) -> scaled down
  heads = 4             # n_heads
  layers = 2            # encoder_layer
  intermediate = 512    # 4 * hidden
  visual_dim = 64       # visual_embedding_dim=530 -> scaled down
  max_pos = 64
  type_vocab = 2
  num_class = 10


def init_params(key, cfg):
  ks = iter(jax.random.split(key, 64))

  def w(*shape):
    return (0.02 * jax.random.normal(next(ks), shape)).astype(jnp.float32)

  zeros = lambda *s: jnp.zeros(s, jnp.float32)
  ones = lambda *s: jnp.ones(s, jnp.float32)

  params = dict(
      word_emb=w(cfg.vocab_size, cfg.hidden),
      pos_emb=w(cfg.max_pos, cfg.hidden),
      tok_type_emb=w(cfg.type_vocab, cfg.hidden),
      vis_proj_w=w(cfg.visual_dim, cfg.hidden),
      vis_proj_b=zeros(cfg.hidden),
      vis_tok_type_emb=w(cfg.type_vocab, cfg.hidden),
      vis_pos_emb=w(cfg.max_pos, cfg.hidden),
      emb_ln_g=ones(cfg.hidden), emb_ln_b=zeros(cfg.hidden),
      pool_w=w(cfg.hidden, cfg.hidden), pool_b=zeros(cfg.hidden),
      cls_w=w(cfg.hidden, cfg.num_class), cls_b=zeros(cfg.num_class),
      layers=[],
  )
  for _ in range(cfg.layers):
    params["layers"].append(dict(
        wq=w(cfg.hidden, cfg.hidden), bq=zeros(cfg.hidden),
        wk=w(cfg.hidden, cfg.hidden), bk=zeros(cfg.hidden),
        wv=w(cfg.hidden, cfg.hidden), bv=zeros(cfg.hidden),
        wo=w(cfg.hidden, cfg.hidden), bo=zeros(cfg.hidden),
        attn_ln_g=ones(cfg.hidden), attn_ln_b=zeros(cfg.hidden),
        wi=w(cfg.hidden, cfg.intermediate), bi=zeros(cfg.intermediate),
        wf=w(cfg.intermediate, cfg.hidden), bf=zeros(cfg.hidden),
        out_ln_g=ones(cfg.hidden), out_ln_b=zeros(cfg.hidden),
    ))
  return params


def pack_params(params, cfg):
  """Stack per-layer weights, fuse QKV (with 1/sqrt(dh) folded into Q),
  cast matmul weights to bf16, pad the classifier to 128 lanes."""
  H = cfg.hidden
  dh = H // cfg.heads
  qscale = 1.0 / math.sqrt(dh)
  bf16 = jnp.bfloat16
  lp = params["layers"]
  stack = lambda key: jnp.stack([l[key] for l in lp])
  return dict(
      word_emb=params["word_emb"],
      pos_emb=params["pos_emb"],
      tok_type_emb=params["tok_type_emb"],
      vis_proj_w=params["vis_proj_w"].astype(bf16),
      vis_proj_b=params["vis_proj_b"].reshape(1, H),
      # visual_token_type_ids == ones, visual position ids == zeros
      vis_misc=(params["vis_tok_type_emb"][1] + params["vis_pos_emb"][0]).reshape(1, H),
      emb_ln_g=params["emb_ln_g"].reshape(1, H),
      emb_ln_b=params["emb_ln_b"].reshape(1, H),
      wqkv=jnp.stack([jnp.concatenate([l["wq"] * qscale, l["wk"], l["wv"]], axis=1)
                      for l in lp]).astype(bf16),                     # (L, H, 3H)
      bqkv=jnp.stack([jnp.concatenate([l["bq"] * qscale, l["bk"], l["bv"]])[None]
                      for l in lp]),                                  # (L, 1, 3H)
      wo=stack("wo").astype(bf16), bo=stack("bo")[:, None, :],
      attn_ln_g=stack("attn_ln_g")[:, None, :],
      attn_ln_b=stack("attn_ln_b")[:, None, :],
      wi=stack("wi").astype(bf16), bi=stack("bi")[:, None, :],
      wf=stack("wf").astype(bf16), bf_=stack("bf")[:, None, :],
      out_ln_g=stack("out_ln_g")[:, None, :],
      out_ln_b=stack("out_ln_b")[:, None, :],
      pool_w=params["pool_w"].astype(bf16),
      pool_b=params["pool_b"].reshape(1, H),
      cls_w_pad=jnp.pad(params["cls_w"],
                        ((0, 0), (0, NPAD - cfg.num_class))).astype(bf16),
      cls_b_pad=jnp.pad(params["cls_b"], (0, NPAD - cfg.num_class)).reshape(1, NPAD),
  )


# ----------------------------- forward pass ----------------------------------

def visualbert_classification_forward(packed, cfg, input_ids, token_type_ids,
                                      attention_mask, visual_embeds):
  B, T = input_ids.shape
  Vn = visual_embeds.shape[1]
  S = T + Vn
  H, L, I, Vd = cfg.hidden, cfg.layers, cfg.intermediate, cfg.visual_dim

  # Embedding gathers stay in JAX (no tile-friendly Pallas form for lookups).
  txt = (jnp.take(packed["word_emb"], input_ids, axis=0)
         + jnp.take(packed["tok_type_emb"], token_type_ids, axis=0)
         + packed["pos_emb"][:T][None])                               # (B, T, H)

  visual_attention_mask = jnp.ones((B, Vn), jnp.float32)
  mask = jnp.concatenate([attention_mask.astype(jnp.float32),
                          visual_attention_mask], axis=1)             # (B, S)
  ext = ((1.0 - mask) * (-1e9)).reshape(B, 1, S)                      # additive mask

  full = lambda shape: pl.BlockSpec(shape, lambda b, _s=len(shape): (0,) * _s)

  kernel = functools.partial(_vb_fused_kernel, n_layers=L,
                             n_heads=cfg.heads, eps=1e-12)
  out = pl.pallas_call(
      kernel,
      out_shape=jax.ShapeDtypeStruct((B, 1, NPAD), jnp.float32),
      grid=(B,),
      in_specs=[
          pl.BlockSpec((1, T, H), lambda b: (b, 0, 0)),     # text embeddings
          pl.BlockSpec((1, Vn, Vd), lambda b: (b, 0, 0)),   # visual embeds
          pl.BlockSpec((1, 1, S), lambda b: (b, 0, 0)),     # additive attn mask
          full((Vd, H)), full((1, H)), full((1, H)),        # vis proj w/b, vis misc
          full((1, H)), full((1, H)),                       # embedding LayerNorm
          full((L, H, 3 * H)), full((L, 1, 3 * H)),         # fused QKV (Q pre-scaled)
          full((L, H, H)), full((L, 1, H)),                 # attn output proj
          full((L, 1, H)), full((L, 1, H)),                 # attn LayerNorm
          full((L, H, I)), full((L, 1, I)),                 # FFN in
          full((L, I, H)), full((L, 1, H)),                 # FFN out
          full((L, 1, H)), full((L, 1, H)),                 # output LayerNorm
          full((H, H)), full((1, H)),                       # pooler
          full((H, NPAD)), full((1, NPAD)),                 # classifier (padded)
      ],
      out_specs=pl.BlockSpec((1, 1, NPAD), lambda b: (b, 0, 0)),
      scratch_shapes=[pltpu.VMEM((S, H), jnp.float32),      # residual stream x
                      pltpu.VMEM((S, H), jnp.float32)],     # lane-dense attn context
      compiler_params=pltpu.CompilerParams(
          dimension_semantics=("parallel",)),               # batch across TCs on v7x
  )(txt, visual_embeds, ext,
    packed["vis_proj_w"], packed["vis_proj_b"], packed["vis_misc"],
    packed["emb_ln_g"], packed["emb_ln_b"],
    packed["wqkv"], packed["bqkv"], packed["wo"], packed["bo"],
    packed["attn_ln_g"], packed["attn_ln_b"],
    packed["wi"], packed["bi"], packed["wf"], packed["bf_"],
    packed["out_ln_g"], packed["out_ln_b"],
    packed["pool_w"], packed["pool_b"], packed["cls_w_pad"], packed["cls_b_pad"])

  # TODO(synk): output_attentions=True attention maps are computed per layer in
  # HF but unused by the classifier head, so they are not returned here.
  return out[:, 0, :cfg.num_class]


# --------------------------------- main ---------------------------------------

if __name__ == "__main__":
  cfg = CFG()
  B, T, Vn = 2, 8, 8

  root = jax.random.PRNGKey(0)
  k_par, k_ids, k_vis = jax.random.split(root, 3)

  params = init_params(k_par, cfg)
  packed = pack_params(params, cfg)

  input_ids = jax.random.randint(k_ids, (B, T), 0, cfg.vocab_size, dtype=jnp.int32)
  token_type_ids = jnp.zeros((B, T), jnp.int32)
  attention_mask = jnp.ones((B, T), jnp.float32)
  visual_embeds = jax.random.normal(k_vis, (B, Vn, cfg.visual_dim), jnp.float32)

  fwd = jax.jit(lambda p, ii, tt, am, ve:
                visualbert_classification_forward(p, cfg, ii, tt, am, ve))
  logits = fwd(packed, input_ids, token_type_ids, attention_mask, visual_embeds)
  jax.block_until_ready(logits)

  assert logits.shape == (B, cfg.num_class)
  assert bool(jnp.all(jnp.isfinite(logits)))
  print("KERNEL_OK")
</pallas_src>

<mosaic_0001>
module attributes {stable_mosaic.version = 11 : i64} {
  func.func @_vb_fused_kernel(%arg0: i32, %arg1: memref<1x8x128xf32, #tpu.memory_space<vmem>>, %arg2: memref<1x8x64xf32, #tpu.memory_space<vmem>>, %arg3: memref<1x1x16xf32, #tpu.memory_space<vmem>>, %arg4: memref<64x128xbf16, #tpu.memory_space<vmem>>, %arg5: memref<1x128xf32, #tpu.memory_space<vmem>>, %arg6: memref<1x128xf32, #tpu.memory_space<vmem>>, %arg7: memref<1x128xf32, #tpu.memory_space<vmem>>, %arg8: memref<1x128xf32, #tpu.memory_space<vmem>>, %arg9: memref<2x128x384xbf16, #tpu.memory_space<vmem>>, %arg10: memref<2x1x384xf32, #tpu.memory_space<vmem>>, %arg11: memref<2x128x128xbf16, #tpu.memory_space<vmem>>, %arg12: memref<2x1x128xf32, #tpu.memory_space<vmem>>, %arg13: memref<2x1x128xf32, #tpu.memory_space<vmem>>, %arg14: memref<2x1x128xf32, #tpu.memory_space<vmem>>, %arg15: memref<2x128x512xbf16, #tpu.memory_space<vmem>>, %arg16: memref<2x1x512xf32, #tpu.memory_space<vmem>>, %arg17: memref<2x512x128xbf16, #tpu.memory_space<vmem>>, %arg18: memref<2x1x128xf32, #tpu.memory_space<vmem>>, %arg19: memref<2x1x128xf32, #tpu.memory_space<vmem>>, %arg20: memref<2x1x128xf32, #tpu.memory_space<vmem>>, %arg21: memref<128x128xbf16, #tpu.memory_space<vmem>>, %arg22: memref<1x128xf32, #tpu.memory_space<vmem>>, %arg23: memref<128x128xbf16, #tpu.memory_space<vmem>>, %arg24: memref<1x128xf32, #tpu.memory_space<vmem>>, %arg25: memref<1x1x128xf32, #tpu.memory_space<vmem>>, %arg26: memref<16x128xf32, #tpu.memory_space<vmem>>, %arg27: memref<16x128xf32, #tpu.memory_space<vmem>>) attributes {dimension_semantics = [#tpu.dimension_semantics<parallel>], iteration_bounds = array<i64: 2>, scalar_prefetch = 0 : i64, scratch_operands = 2 : i64, tpu.core_type = #tpu.core_type<tc>, window_params = [{transform_indices = @transform_0, window_bounds = array<i64: 1, 8, 128>}, {transform_indices = @transform_1, window_bounds = array<i64: 1, 8, 64>}, {transform_indices = @transform_2, window_bounds = array<i64: 1, 1, 16>}, {pipeline_mode = #tpu.pipeline_mode<synchronous>, transform_indices = @transform_3, window_bounds = array<i64: 64, 128>}, {pipeline_mode = #tpu.pipeline_mode<synchronous>, transform_indices = @transform_4, window_bounds = array<i64: 1, 128>}, {pipeline_mode = #tpu.pipeline_mode<synchronous>, transform_indices = @transform_5, window_bounds = array<i64: 1, 128>}, {pipeline_mode = #tpu.pipeline_mode<synchronous>, transform_indices = @transform_6, window_bounds = array<i64: 1, 128>}, {pipeline_mode = #tpu.pipeline_mode<synchronous>, transform_indices = @transform_7, window_bounds = array<i64: 1, 128>}, {pipeline_mode = #tpu.pipeline_mode<synchronous>, transform_indices = @transform_8, window_bounds = array<i64: 2, 128, 384>}, {pipeline_mode = #tpu.pipeline_mode<synchronous>, transform_indices = @transform_9, window_bounds = array<i64: 2, 1, 384>}, {pipeline_mode = #tpu.pipeline_mode<synchronous>, transform_indices = @transform_10, window_bounds = array<i64: 2, 128, 128>}, {pipeline_mode = #tpu.pipeline_mode<synchronous>, transform_indices = @transform_11, window_bounds = array<i64: 2, 1, 128>}, {pipeline_mode = #tpu.pipeline_mode<synchronous>, transform_indices = @transform_12, window_bounds = array<i64: 2, 1, 128>}, {pipeline_mode = #tpu.pipeline_mode<synchronous>, transform_indices = @transform_13, window_bounds = array<i64: 2, 1, 128>}, {pipeline_mode = #tpu.pipeline_mode<synchronous>, transform_indices = @transform_14, window_bounds = array<i64: 2, 128, 512>}, {pipeline_mode = #tpu.pipeline_mode<synchronous>, transform_indices = @transform_15, window_bounds = array<i64: 2, 1, 512>}, {pipeline_mode = #tpu.pipeline_mode<synchronous>, transform_indices = @transform_16, window_bounds = array<i64: 2, 512, 128>}, {pipeline_mode = #tpu.pipeline_mode<synchronous>, transform_indices = @transform_17, window_bounds = array<i64: 2, 1, 128>}, {pipeline_mode = #tpu.pipeline_mode<synchronous>, transform_indices = @transform_18, window_bounds = array<i64: 2, 1, 128>}, {pipeline_mode = #tpu.pipeline_mode<synchronous>, transform_indices = @transform_19, window_bounds = array<i64: 2, 1, 128>}, {pipeline_mode = #tpu.pipeline_mode<synchronous>, transform_indices = @transform_20, window_bounds = array<i64: 128, 128>}, {pipeline_mode = #tpu.pipeline_mode<synchronous>, transform_indices = @transform_21, window_bounds = array<i64: 1, 128>}, {pipeline_mode = #tpu.pipeline_mode<synchronous>, transform_indices = @transform_22, window_bounds = array<i64: 128, 128>}, {pipeline_mode = #tpu.pipeline_mode<synchronous>, transform_indices = @transform_23, window_bounds = array<i64: 1, 128>}, {transform_indices = @transform_24, window_bounds = array<i64: 1, 1, 128>}]} {
    %c0 = arith.constant 0 : index
    %c0_0 = arith.constant 0 : index
    %c0_1 = arith.constant 0 : index
    %0 = vector.load %arg2[%c0, %c0_0, %c0_1] : memref<1x8x64xf32, #tpu.memory_space<vmem>>, vector<1x8x64xf32>
    %1 = vector.shape_cast %0 : vector<1x8x64xf32> to vector<8x64xf32>
    %c0_2 = arith.constant 0 : index
    %c0_3 = arith.constant 0 : index
    %2 = vector.load %arg4[%c0_2, %c0_3] : memref<64x128xbf16, #tpu.memory_space<vmem>>, vector<64x128xbf16>
    %3 = arith.truncf %1 : vector<8x64xf32> to vector<8x64xbf16>
    %cst = arith.constant dense<0.000000e+00> : vector<8x128xf32>
    %4 = tpu.matmul %3, %2, %cst {dimension_numbers = #tpu.dot_dimension_numbers<[1], [0], [0], [1], [0, 0, 1, 1], [], []>} : vector<8x64xbf16>, vector<64x128xbf16>, vector<8x128xf32> -> vector<8x128xf32>
    %c0_4 = arith.constant 0 : index
    %c0_5 = arith.constant 0 : index
    %5 = vector.load %arg5[%c0_4, %c0_5] : memref<1x128xf32, #tpu.memory_space<vmem>>, vector<1x128xf32>
    %6 = vector.broadcast %5 : vector<1x128xf32> to vector<8x128xf32>
    %7 = arith.addf %4, %6 : vector<8x128xf32>
    %c0_6 = arith.constant 0 : index
    %c0_7 = arith.constant 0 : index
    %8 = vector.load %arg6[%c0_6, %c0_7] : memref<1x128xf32, #tpu.memory_space<vmem>>, vector<1x128xf32>
    %9 = vector.broadcast %8 : vector<1x128xf32> to vector<8x128xf32>
    %10 = arith.addf %7, %9 : vector<8x128xf32>
    %c0_8 = arith.constant 0 : index
    %c0_9 = arith.constant 0 : index
    %c0_10 = arith.constant 0 : index
    %11 = vector.load %arg1[%c0_8, %c0_9, %c0_10] : memref<1x8x128xf32, #tpu.memory_space<vmem>>, vector<1x8x128xf32>
    %12 = vector.shape_cast %11 : vector<1x8x128xf32> to vector<8x128xf32>
    %c0_11 = arith.constant 0 : index
    %c0_12 = arith.constant 0 : index
    %13 = vector.load %arg26[%c0_11, %c0_12] : memref<16x128xf32, #tpu.memory_space<vmem>>, vector<8x128xf32>
    tpu.vector_store %arg26[%c0_11, %c0_12], %12 {strides = array<i32>} : memref<16x128xf32, #tpu.memory_space<vmem>>, vector<8x128xf32>,
    %c8 = arith.constant 8 : index
    %c0_13 = arith.constant 0 : index
    %14 = vector.load %arg26[%c8, %c0_13] : memref<16x128xf32, #tpu.memory_space<vmem>>, vector<8x128xf32>
    tpu.vector_store %arg26[%c8, %c0_13], %10 {strides = array<i32>} : memref<16x128xf32, #tpu.memory_space<vmem>>, vector<8x128xf32>,
    %c0_14 = arith.constant 0 : index
    %c0_15 = arith.constant 0 : index
    %15 = vector.load %arg26[%c0_14, %c0_15] : memref<16x128xf32, #tpu.memory_space<vmem>>, vector<16x128xf32>
    %c0_16 = arith.constant 0 : index
    %c0_17 = arith.constant 0 : index
    %16 = vector.load %arg7[%c0_16, %c0_17] : memref<1x128xf32, #tpu.memory_space<vmem>>, vector<1x128xf32>
    %c0_18 = arith.constant 0 : index
    %c0_19 = arith.constant 0 : index
    %17 = vector.load %arg8[%c0_18, %c0_19] : memref<1x128xf32, #tpu.memory_space<vmem>>, vector<1x128xf32>
    %cst_20 = arith.constant dense<0.000000e+00> : vector<16xf32>
    %18 = vector.multi_reduction <add>, %15, %cst_20 [1] : vector<16x128xf32> to vector<16xf32>
    %19 = vector.shape_cast %18 : vector<16xf32> to vector<16x1xf32>
    %cst_21 = arith.constant 1.280000e+02 : f32
    %20 = vector.broadcast %cst_21 : f32 to vector<16x1xf32>
    %21 = arith.divf %19, %20 : vector<16x1xf32>
    %22 = vector.broadcast %21 : vector<16x1xf32> to vector<16x128xf32>
    %23 = arith.subf %15, %22 : vector<16x128xf32>
    %24 = arith.mulf %23, %23 : vector<16x128xf32>
    %cst_22 = arith.constant dense<0.000000e+00> : vector<16xf32>
    %25 = vector.multi_reduction <add>, %24, %cst_22 [1] : vector<16x128xf32> to vector<16xf32>
    %26 = vector.shape_cast %25 : vector<16xf32> to vector<16x1xf32>
    %cst_23 = arith.constant 1.280000e+02 : f32
    %27 = vector.broadcast %cst_23 : f32 to vector<16x1xf32>
    %28 = arith.divf %26, %27 : vector<16x1xf32>
    %cst_24 = arith.constant 9.99999996E-13 : f32
    %29 = vector.broadcast %cst_24 : f32 to vector<16x1xf32>
    %30 = arith.addf %28, %29 : vector<16x1xf32>
    %31 = math.rsqrt %30 : vector<16x1xf32>
    %32 = vector.broadcast %31 : vector<16x1xf32> to vector<16x128xf32>
    %33 = arith.mulf %23, %32 : vector<16x128xf32>
    %34 = vector.broadcast %16 : vector<1x128xf32> to vector<16x128xf32>
    %35 = arith.mulf %33, %34 : vector<16x128xf32>
    %36 = vector.broadcast %17 : vector<1x128xf32> to vector<16x128xf32>
    %37 = arith.addf %35, %36 : vector<16x128xf32>
    %c0_25 = arith.constant 0 : index
    %c0_26 = arith.constant 0 : index
    %c0_27 = arith.constant 0 : index
    %38 = vector.load %arg3[%c0_25, %c0_26, %c0_27] : memref<1x1x16xf32, #tpu.memory_space<vmem>>, vector<1x1x16xf32>
    %39 = vector.shape_cast %38 : vector<1x1x16xf32> to vector<1x16xf32>
    %c0_28 = arith.constant 0 : index
    %c0_29 = arith.constant 0 : index
    %c0_30 = arith.constant 0 : index
    %40 = vector.load %arg9[%c0_28, %c0_29, %c0_30] : memref<2x128x384xbf16, #tpu.memory_space<vmem>>, vector<1x128x384xbf16>
    %41 = vector.shape_cast %40 : vector<1x128x384xbf16> to vector<128x384xbf16>
    %42 = arith.truncf %37 : vector<16x128xf32> to vector<16x128xbf16>
    %cst_31 = arith.constant dense<0.000000e+00> : vector<16x384xf32>
    %43 = tpu.matmul %42, %41, %cst_31 {dimension_numbers = #tpu.dot_dimension_numbers<[1], [0], [0], [1], [0, 0, 1, 1], [], []>} : vector<16x128xbf16>, vector<128x384xbf16>, vector<16x384xf32> -> vector<16x384xf32>
    %c0_32 = arith.constant 0 : index
    %c0_33 = arith.constant 0 : index
    %c0_34 = arith.constant 0 : index
    %44 = vector.load %arg10[%c0_32, %c0_33, %c0_34] : memref<2x1x384xf32, #tpu.memory_space<vmem>>, vector<1x1x384xf32>
    %45 = vector.shape_cast %44 : vector<1x1x384xf32> to vector<1x384xf32>
    %46 = vector.broadcast %45 : vector<1x384xf32> to vector<16x384xf32>
    %47 = arith.addf %43, %46 : vector<16x384xf32>
    %48 = vector.extract_strided_slice %47 {offsets = [0, 0], sizes = [16, 128], strides = [1, 1]} : vector<16x384xf32> to vector<16x128xf32>
    %49 = vector.extract_strided_slice %47 {offsets = [0, 128], sizes = [16, 128], strides = [1, 1]} : vector<16x384xf32> to vector<16x128xf32>
    %50 = vector.extract_strided_slice %47 {offsets = [0, 256], sizes = [16, 128], strides = [1, 1]} : vector<16x384xf32> to vector<16x128xf32>
    %51 = vector.extract_strided_slice %48 {offsets = [0, 0], sizes = [16, 32], strides = [1, 1]} : vector<16x128xf32> to vector<16x32xf32>
    %52 = arith.truncf %51 : vector<16x32xf32> to vector<16x32xbf16>
    %53 = vector.extract_strided_slice %49 {offsets = [0, 0], sizes = [16, 32], strides = [1, 1]} : vector<16x128xf32> to vector<16x32xf32>
    %54 = arith.truncf %53 : vector<16x32xf32> to vector<16x32xbf16>
    %55 = vector.extract_strided_slice %50 {offsets = [0, 0], sizes = [16, 32], strides = [1, 1]} : vector<16x128xf32> to vector<16x32xf32>
    %56 = arith.truncf %55 : vector<16x32xf32> to vector<16x32xbf16>
    %cst_35 = arith.constant dense<0.000000e+00> : vector<16x16xf32>
    %57 = tpu.matmul %52, %54, %cst_35 {dimension_numbers = #tpu.dot_dimension_numbers<[1], [1], [0], [0], [0, 0, 1, 0], [], []>} : vector<16x32xbf16>, vector<16x32xbf16>, vector<16x16xf32> -> vector<16x16xf32>
    %58 = vector.broadcast %39 : vector<1x16xf32> to vector<16x16xf32>
    %59 = arith.addf %57, %58 : vector<16x16xf32>
    %cst_36 = arith.constant dense<0xFF800000> : vector<16xf32>
    %60 = vector.multi_reduction <maximumf>, %59, %cst_36 [1] : vector<16x16xf32> to vector<16xf32>
    %61 = vector.shape_cast %60 : vector<16xf32> to vector<16x1xf32>
    %62 = vector.broadcast %61 : vector<16x1xf32> to vector<16x16xf32>
    %63 = arith.subf %59, %62 : vector<16x16xf32>
    %64 = math.exp %63 : vector<16x16xf32>
    %cst_37 = arith.constant dense<0.000000e+00> : vector<16xf32>
    %65 = vector.multi_reduction <add>, %64, %cst_37 [1] : vector<16x16xf32> to vector<16xf32>
    %66 = vector.shape_cast %65 : vector<16xf32> to vector<16x1xf32>
    %67 = tpu.reciprocal %66 {approx = true} : vector<16x1xf32> -> vector<16x1xf32>
    %68 = vector.broadcast %67 : vector<16x1xf32> to vector<16x16xf32>
    %69 = arith.mulf %64, %68 : vector<16x16xf32>
    %70 = arith.truncf %69 : vector<16x16xf32> to vector<16x16xbf16>
    %cst_38 = arith.constant dense<0.000000e+00> : vector<16x32xf32>
    %71 = tpu.matmul %70, %56, %cst_38 {dimension_numbers = #tpu.dot_dimension_numbers<[1], [0], [0], [1], [0, 0, 1, 1], [], []>} : vector<16x16xbf16>, vector<16x32xbf16>, vector<16x32xf32> -> vector<16x32xf32>
    %c0_39 = arith.constant 0 : index
    %c0_40 = arith.constant 0 : index
    %72 = vector.load %arg27[%c0_39, %c0_40] : memref<16x128xf32, #tpu.memory_space<vmem>>, vector<16x32xf32>
    tpu.vector_store %arg27[%c0_39, %c0_40], %71 {strides = array<i32>} : memref<16x128xf32, #tpu.memory_space<vmem>>, vector<16x32xf32>,
    %73 = vector.extract_strided_slice %48 {offsets = [0, 32], sizes = [16, 32], strides = [1, 1]} : vector<16x128xf32> to vector<16x32xf32>
    %74 = arith.truncf %73 : vector<16x32xf32> to vector<16x32xbf16>
    %75 = vector.extract_strided_slice %49 {offsets = [0, 32], sizes = [16, 32], strides = [1, 1]} : vector<16x128xf32> to vector<16x32xf32>
    %76 = arith.truncf %75 : vector<16x32xf32> to vector<16x32xbf16>
    %77 = vector.extract_strided_slice %50 {offsets = [0, 32], sizes = [16, 32], strides = [1, 1]} : vector<16x128xf32> to vector<16x32xf32>
    %78 = arith.truncf %77 : vector<16x32xf32> to vector<16x32xbf16>
    %cst_41 = arith.constant dense<0.000000e+00> : vector<16x16xf32>
    %79 = tpu.matmul %74, %76, %cst_41 {dimension_numbers = #tpu.dot_dimension_numbers<[1], [1], [0], [0], [0, 0, 1, 0], [], []>} : vector<16x32xbf16>, vector<16x32xbf16>, vector<16x16xf32> -> vector<16x16xf32>
    %80 = vector.broadcast %39 : vector<1x16xf32> to vector<16x16xf32>
    %81 = arith.addf %79, %80 : vector<16x16xf32>
    %cst_42 = arith.constant dense<0xFF800000> : vector<16xf32>
    %82 = vector.multi_reduction <maximumf>, %81, %cst_42 [1] : vector<16x16xf32> to vector<16xf32>
    %83 = vector.shape_cast %82 : vector<16xf32> to vector<16x1xf32>
    %84 = vector.broadcast %83 : vector<16x1xf32> to vector<16x16xf32>
    %85 = arith.subf %81, %84 : vector<16x16xf32>
    %86 = math.exp %85 : vector<16x16xf32>
    %cst_43 = arith.constant dense<0.000000e+00> : vector<16xf32>
    %87 = vector.multi_reduction <add>, %86, %cst_43 [1] : vector<16x16xf32> to vector<16xf32>
    %88 = vector.shape_cast %87 : vector<16xf32> to vector<16x1xf32>
    %89 = tpu.reciprocal %88 {approx = true} : vector<16x1xf32> -> vector<16x1xf32>
    %90 = vector.broadcast %89 : vector<16x1xf32> to vector<16x16xf32>
    %91 = arith.mulf %86, %90 : vector<16x16xf32>
    %92 = arith.truncf %91 : vector<16x16xf32> to vector<16x16xbf16>
    %cst_44 = arith.constant dense<0.000000e+00> : vector<16x32xf32>
    %93 = tpu.matmul %92, %78, %cst_44 {dimension_numbers = #tpu.dot_dimension_numbers<[1], [0], [0], [1], [0, 0, 1, 1], [], []>} : vector<16x16xbf16>, vector<16x32xbf16>, vector<16x32xf32> -> vector<16x32xf32>
    %c0_45 = arith.constant 0 : index
    %c32 = arith.constant 32 : index
    %94 = vector.load %arg27[%c0_45, %c32] : memref<16x128xf32, #tpu.memory_space<vmem>>, vector<16x32xf32>
    tpu.vector_store %arg27[%c0_45, %c32], %93 {strides = array<i32>} : memref<16x128xf32, #tpu.memory_space<vmem>>, vector<16x32xf32>,
    %95 = vector.extract_strided_slice %48 {offsets = [0, 64], sizes = [16, 32], strides = [1, 1]} : vector<16x128xf32> to vector<16x32xf32>
    %96 = arith.truncf %95 : vector<16x32xf32> to vector<16x32xbf16>
    %97 = vector.extract_strided_slice %49 {offsets = [0, 64], sizes = [16, 32], strides = [1, 1]} : vector<16x128xf32> to vector<16x32xf32>
    %98 = arith.truncf %97 : vector<16x32xf32> to vector<16x32xbf16>
    %99 = vector.extract_strided_slice %50 {offsets = [0, 64], sizes = [16, 32], strides = [1, 1]} : vector<16x128xf32> to vector<16x32xf32>
    %100 = arith.truncf %99 : vector<16x32xf32> to vector<16x32xbf16>
    %cst_46 = arith.constant dense<0.000000e+00> : vector<16x16xf32>
    %101 = tpu.matmul %96, %98, %cst_46 {dimension_numbers = #tpu.dot_dimension_numbers<[1], [1], [0], [0], [0, 0, 1, 0], [], []>} : vector<16x32xbf16>, vector<16x32xbf16>, vector<16x16xf32> -> vector<16x16xf32>
    %102 = vector.broadcast %39 : vector<1x16xf32> to vector<16x16xf32>
    %103 = arith.addf %101, %102 : vector<16x16xf32>
    %cst_47 = arith.constant dense<0xFF800000> : vector<16xf32>
    %104 = vector.multi_reduction <maximumf>, %103, %cst_47 [1] : vector<16x16xf32> to vector<16xf32>
    %105 = vector.shape_cast %104 : vector<16xf32> to vector<16x1xf32>
    %106 = vector.broadcast %105 : vector<16x1xf32> to vector<16x16xf32>
    %107 = arith.subf %103, %106 : vector<16x16xf32>
    %108 = math.exp %107 : vector<16x16xf32>
    %cst_48 = arith.constant dense<0.000000e+00> : vector<16xf32>
    %109 = vector.multi_reduction <add>, %108, %cst_48 [1] : vector<16x16xf32> to vector<16xf32>
    %110 = vector.shape_cast %109 : vector<16xf32> to vector<16x1xf32>
    %111 = tpu.reciprocal %110 {approx = true} : vector<16x1xf32> -> vector<16x1xf32>
    %112 = vector.broadcast %111 : vector<16x1xf32> to vector<16x16xf32>
    %113 = arith.mulf %108, %112 : vector<16x16xf32>
    %114 = arith.truncf %113 : vector<16x16xf32> to vector<16x16xbf16>
    %cst_49 = arith.constant dense<0.000000e+00> : vector<16x32xf32>
    %115 = tpu.matmul %114, %100, %cst_49 {dimension_numbers = #tpu.dot_dimension_numbers<[1], [0], [0], [1], [0, 0, 1, 1], [], []>} : vector<16x16xbf16>, vector<16x32xbf16>, vector<16x32xf32> -> vector<16x32xf32>
    %c0_50 = arith.constant 0 : index
    %c64 = arith.constant 64 : index
    %116 = vector.load %arg27[%c0_50, %c64] : memref<16x128xf32, #tpu.memory_space<vmem>>, vector<16x32xf32>
    tpu.vector_store %arg27[%c0_50, %c64], %115 {strides = array<i32>} : memref<16x128xf32, #tpu.memory_space<vmem>>, vector<16x32xf32>,
    %117 = vector.extract_strided_slice %48 {offsets = [0, 96], sizes = [16, 32], strides = [1, 1]} : vector<16x128xf32> to vector<16x32xf32>
    %118 = arith.truncf %117 : vector<16x32xf32> to vector<16x32xbf16>
    %119 = vector.extract_strided_slice %49 {offsets = [0, 96], sizes = [16, 32], strides = [1, 1]} : vector<16x128xf32> to vector<16x32xf32>
    %120 = arith.truncf %119 : vector<16x32xf32> to vector<16x32xbf16>
    %121 = vector.extract_strided_slice %50 {offsets = [0, 96], sizes = [16, 32], strides = [1, 1]} : vector<16x128xf32> to vector<16x32xf32>
    %122 = arith.truncf %121 : vector<16x32xf32> to vector<16x32xbf16>
    %cst_51 = arith.constant dense<0.000000e+00> : vector<16x16xf32>
    %123 = tpu.matmul %118, %120, %cst_51 {dimension_numbers = #tpu.dot_dimension_numbers<[1], [1], [0], [0], [0, 0, 1, 0], [], []>} : vector<16x32xbf16>, vector<16x32xbf16>, vector<16x16xf32> -> vector<16x16xf32>
    %124 = vector.broadcast %39 : vector<1x16xf32> to vector<16x16xf32>
    %125 = arith.addf %123, %124 : vector<16x16xf32>
    %cst_52 = arith.constant dense<0xFF800000> : vector<16xf32>
    %126 = vector.multi_reduction <maximumf>, %125, %cst_52 [1] : vector<16x16xf32> to vector<16xf32>
    %127 = vector.shape_cast %126 : vector<16xf32> to vector<16x1xf32>
    %128 = vector.broadcast %127 : vector<16x1xf32> to vector<16x16xf32>
    %129 = arith.subf %125, %128 : vector<16x16xf32>
    %130 = math.exp %129 : vector<16x16xf32>
    %cst_53 = arith.constant dense<0.000000e+00> : vector<16xf32>
    %131 = vector.multi_reduction <add>, %130, %cst_53 [1] : vector<16x16xf32> to vector<16xf32>
    %132 = vector.shape_cast %131 : vector<16xf32> to vector<16x1xf32>
    %133 = tpu.reciprocal %132 {approx = true} : vector<16x1xf32> -> vector<16x1xf32>
    %134 = vector.broadcast %133 : vector<16x1xf32> to vector<16x16xf32>
    %135 = arith.mulf %130, %134 : vector<16x16xf32>
    %136 = arith.truncf %135 : vector<16x16xf32> to vector<16x16xbf16>
    %cst_54 = arith.constant dense<0.000000e+00> : vector<16x32xf32>
    %137 = tpu.matmul %136, %122, %cst_54 {dimension_numbers = #tpu.dot_dimension_numbers<[1], [0], [0], [1], [0, 0, 1, 1], [], []>} : vector<16x16xbf16>, vector<16x32xbf16>, vector<16x32xf32> -> vector<16x32xf32>
    %c0_55 = arith.constant 0 : index
    %c96 = arith.constant 96 : index
    %138 = vector.load %arg27[%c0_55, %c96] : memref<16x128xf32, #tpu.memory_space<vmem>>, vector<16x32xf32>
    tpu.vector_store %arg27[%c0_55, %c96], %137 {strides = array<i32>} : memref<16x128xf32, #tpu.memory_space<vmem>>, vector<16x32xf32>,
    %c0_56 = arith.constant 0 : index
    %c0_57 = arith.constant 0 : index
    %139 = vector.load %arg27[%c0_56, %c0_57] : memref<16x128xf32, #tpu.memory_space<vmem>>, vector<16x128xf32>
    %c0_58 = arith.constant 0 : index
    %c0_59 = arith.constant 0 : index
    %c0_60 = arith.constant 0 : index
    %140 = vector.load %arg11[%c0_58, %c0_59, %c0_60] : memref<2x128x128xbf16, #tpu.memory_space<vmem>>, vector<1x128x128xbf16>
    %141 = vector.shape_cast %140 : vector<1x128x128xbf16> to vector<128x128xbf16>
    %142 = arith.truncf %139 : vector<16x128xf32> to vector<16x128xbf16>
    %cst_61 = arith.constant dense<0.000000e+00> : vector<16x128xf32>
    %143 = tpu.matmul %142, %141, %cst_61 {dimension_numbers = #tpu.dot_dimension_numbers<[1], [0], [0], [1], [0, 0, 1, 1], [], []>} : vector<16x128xbf16>, vector<128x128xbf16>, vector<16x128xf32> -> vector<16x128xf32>
    %c0_62 = arith.constant 0 : index
    %c0_63 = arith.constant 0 : index
    %c0_64 = arith.constant 0 : index
    %144 = vector.load %arg12[%c0_62, %c0_63, %c0_64] : memref<2x1x128xf32, #tpu.memory_space<vmem>>, vector<1x1x128xf32>
    %145 = vector.shape_cast %144 : vector<1x1x128xf32> to vector<1x128xf32>
    %146 = vector.broadcast %145 : vector<1x128xf32> to vector<16x128xf32>
    %147 = arith.addf %143, %146 : vector<16x128xf32>
    %148 = arith.addf %147, %37 : vector<16x128xf32>
    %c0_65 = arith.constant 0 : index
    %c0_66 = arith.constant 0 : index
    %c0_67 = arith.constant 0 : index
    %149 = vector.load %arg13[%c0_65, %c0_66, %c0_67] : memref<2x1x128xf32, #tpu.memory_space<vmem>>, vector<1x1x128xf32>
    %150 = vector.shape_cast %149 : vector<1x1x128xf32> to vector<1x128xf32>
    %c0_68 = arith.constant 0 : index
    %c0_69 = arith.constant 0 : index
    %c0_70 = arith.constant 0 : index
    %151 = vector.load %arg14[%c0_68, %c0_69, %c0_70] : memref<2x1x128xf32, #tpu.memory_space<vmem>>, vector<1x1x128xf32>
    %152 = vector.shape_cast %151 : vector<1x1x128xf32> to vector<1x128xf32>
    %cst_71 = arith.constant dense<0.000000e+00> : vector<16xf32>
    %153 = vector.multi_reduction <add>, %148, %cst_71 [1] : vector<16x128xf32> to vector<16xf32>
    %154 = vector.shape_cast %153 : vector<16xf32> to vector<16x1xf32>
    %cst_72 = arith.constant 1.280000e+02 : f32
    %155 = vector.broadcast %cst_72 : f32 to vector<16x1xf32>
    %156 = arith.divf %154, %155 : vector<16x1xf32>
    %157 = vector.broadcast %156 : vector<16x1xf32> to vector<16x128xf32>
    %158 = arith.subf %148, %157 : vector<16x128xf32>
    %159 = arith.mulf %158, %158 : vector<16x128xf32>
    %cst_73 = arith.constant dense<0.000000e+00> : vector<16xf32>
    %160 = vector.multi_reduction <add>, %159, %cst_73 [1] : vector<16x128xf32> to vector<16xf32>
    %161 = vector.shape_cast %160 : vector<16xf32> to vector<16x1xf32>
    %cst_74 = arith.constant 1.280000e+02 : f32
    %162 = vector.broadcast %cst_74 : f32 to vector<16x1xf32>
    %163 = arith.divf %161, %162 : vector<16x1xf32>
    %cst_75 = arith.constant 9.99999996E-13 : f32
    %164 = vector.broadcast %cst_75 : f32 to vector<16x1xf32>
    %165 = arith.addf %163, %164 : vector<16x1xf32>
    %166 = math.rsqrt %165 : vector<16x1xf32>
    %167 = vector.broadcast %166 : vector<16x1xf32> to vector<16x128xf32>
    %168 = arith.mulf %158, %167 : vector<16x128xf32>
    %169 = vector.broadcast %150 : vector<1x128xf32> to vector<16x128xf32>
    %170 = arith.mulf %168, %169 : vector<16x128xf32>
    %171 = vector.broadcast %152 : vector<1x128xf32> to vector<16x128xf32>
    %172 = arith.addf %170, %171 : vector<16x128xf32>
    %c0_76 = arith.constant 0 : index
    %c0_77 = arith.constant 0 : index
    %c0_78 = arith.constant 0 : index
    %173 = vector.load %arg15[%c0_76, %c0_77, %c0_78] : memref<2x128x512xbf16, #tpu.memory_space<vmem>>, vector<1x128x512xbf16>
    %174 = vector.shape_cast %173 : vector<1x128x512xbf16> to vector<128x512xbf16>
    %175 = arith.truncf %172 : vector<16x128xf32> to vector<16x128xbf16>
    %cst_79 = arith.constant dense<0.000000e+00> : vector<16x512xf32>
    %176 = tpu.matmul %175, %174, %cst_79 {dimension_numbers = #tpu.dot_dimension_numbers<[1], [0], [0], [1], [0, 0, 1, 1], [], []>} : vector<16x128xbf16>, vector<128x512xbf16>, vector<16x512xf32> -> vector<16x512xf32>
    %c0_80 = arith.constant 0 : index
    %c0_81 = arith.constant 0 : index
    %c0_82 = arith.constant 0 : index
    %177 = vector.load %arg16[%c0_80, %c0_81, %c0_82] : memref<2x1x512xf32, #tpu.memory_space<vmem>>, vector<1x1x512xf32>
    %178 = vector.shape_cast %177 : vector<1x1x512xf32> to vector<1x512xf32>
    %179 = vector.broadcast %178 : vector<1x512xf32> to vector<16x512xf32>
    %180 = arith.addf %176, %179 : vector<16x512xf32>
    %cst_83 = arith.constant 5.000000e-01 : f32
    %181 = vector.broadcast %cst_83 : f32 to vector<16x512xf32>
    %182 = arith.mulf %181, %180 : vector<16x512xf32>
    %cst_84 = arith.constant 0.707106769 : f32
    %183 = vector.broadcast %cst_84 : f32 to vector<16x512xf32>
    %184 = arith.mulf %180, %183 : vector<16x512xf32>
    %185 = math.erf %184 : vector<16x512xf32>
    %cst_85 = arith.constant 1.000000e+00 : f32
    %186 = vector.broadcast %cst_85 : f32 to vector<16x512xf32>
    %187 = arith.addf %186, %185 : vector<16x512xf32>
    %188 = arith.mulf %182, %187 : vector<16x512xf32>
    %c0_86 = arith.constant 0 : index
    %c0_87 = arith.constant 0 : index
    %c0_88 = arith.constant 0 : index
    %189 = vector.load %arg17[%c0_86, %c0_87, %c0_88] : memref<2x512x128xbf16, #tpu.memory_space<vmem>>, vector<1x512x128xbf16>
    %190 = vector.shape_cast %189 : vector<1x512x128xbf16> to vector<512x128xbf16>
    %191 = arith.truncf %188 : vector<16x512xf32> to vector<16x512xbf16>
    %cst_89 = arith.constant dense<0.000000e+00> : vector<16x128xf32>
    %192 = tpu.matmul %191, %190, %cst_89 {dimension_numbers = #tpu.dot_dimension_numbers<[1], [0], [0], [1], [0, 0, 1, 1], [], []>} : vector<16x512xbf16>, vector<512x128xbf16>, vector<16x128xf32> -> vector<16x128xf32>
    %c0_90 = arith.constant 0 : index
    %c0_91 = arith.constant 0 : index
    %c0_92 = arith.constant 0 : index
    %193 = vector.load %arg18[%c0_90, %c0_91, %c0_92] : memref<2x1x128xf32, #tpu.memory_space<vmem>>, vector<1x1x128xf32>
    %194 = vector.shape_cast %193 : vector<1x1x128xf32> to vector<1x128xf32>
    %195 = vector.broadcast %194 : vector<1x128xf32> to vector<16x128xf32>
    %196 = arith.addf %192, %195 : vector<16x128xf32>
    %197 = arith.addf %196, %172 : vector<16x128xf32>
    %c0_93 = arith.constant 0 : index
    %c0_94 = arith.constant 0 : index
    %c0_95 = arith.constant 0 : index
    %198 = vector.load %arg19[%c0_93, %c0_94, %c0_95] : memref<2x1x128xf32, #tpu.memory_space<vmem>>, vector<1x1x128xf32>
    %199 = vector.shape_cast %198 : vector<1x1x128xf32> to vector<1x128xf32>
    %c0_96 = arith.constant 0 : index
    %c0_97 = arith.constant 0 : index
    %c0_98 = arith.constant 0 : index
    %200 = vector.load %arg20[%c0_96, %c0_97, %c0_98] : memref<2x1x128xf32, #tpu.memory_space<vmem>>, vector<1x1x128xf32>
    %201 = vector.shape_cast %200 : vector<1x1x128xf32> to vector<1x128xf32>
    %cst_99 = arith.constant dense<0.000000e+00> : vector<16xf32>
    %202 = vector.multi_reduction <add>, %197, %cst_99 [1] : vector<16x128xf32> to vector<16xf32>
    %203 = vector.shape_cast %202 : vector<16xf32> to vector<16x1xf32>
    %cst_100 = arith.constant 1.280000e+02 : f32
    %204 = vector.broadcast %cst_100 : f32 to vector<16x1xf32>
    %205 = arith.divf %203, %204 : vector<16x1xf32>
    %206 = vector.broadcast %205 : vector<16x1xf32> to vector<16x128xf32>
    %207 = arith.subf %197, %206 : vector<16x128xf32>
    %208 = arith.mulf %207, %207 : vector<16x128xf32>
    %cst_101 = arith.constant dense<0.000000e+00> : vector<16xf32>
    %209 = vector.multi_reduction <add>, %208, %cst_101 [1] : vector<16x128xf32> to vector<16xf32>
    %210 = vector.shape_cast %209 : vector<16xf32> to vector<16x1xf32>
    %cst_102 = arith.constant 1.280000e+02 : f32
    %211 = vector.broadcast %cst_102 : f32 to vector<16x1xf32>
    %212 = arith.divf %210, %211 : vector<16x1xf32>
    %cst_103 = arith.constant 9.99999996E-13 : f32
    %213 = vector.broadcast %cst_103 : f32 to vector<16x1xf32>
    %214 = arith.addf %212, %213 : vector<16x1xf32>
    %215 = math.rsqrt %214 : vector<16x1xf32>
    %216 = vector.broadcast %215 : vector<16x1xf32> to vector<16x128xf32>
    %217 = arith.mulf %207, %216 : vector<16x128xf32>
    %218 = vector.broadcast %199 : vector<1x128xf32> to vector<16x128xf32>
    %219 = arith.mulf %217, %218 : vector<16x128xf32>
    %220 = vector.broadcast %201 : vector<1x128xf32> to vector<16x128xf32>
    %221 = arith.addf %219, %220 : vector<16x128xf32>
    %c1 = arith.constant 1 : index
    %c0_104 = arith.constant 0 : index
    %c0_105 = arith.constant 0 : index
    %222 = vector.load %arg9[%c1, %c0_104, %c0_105] : memref<2x128x384xbf16, #tpu.memory_space<vmem>>, vector<1x128x384xbf16>
    %223 = vector.shape_cast %222 : vector<1x128x384xbf16> to vector<128x384xbf16>
    %224 = arith.truncf %221 : vector<16x128xf32> to vector<16x128xbf16>
    %cst_106 = arith.constant dense<0.000000e+00> : vector<16x384xf32>
    %225 = tpu.matmul %224, %223, %cst_106 {dimension_numbers = #tpu.dot_dimension_numbers<[1], [0], [0], [1], [0, 0, 1, 1], [], []>} : vector<16x128xbf16>, vector<128x384xbf16>, vector<16x384xf32> -> vector<16x384xf32>
    %c1_107 = arith.constant 1 : index
    %c0_108 = arith.constant 0 : index
    %c0_109 = arith.constant 0 : index
    %226 = vector.load %arg10[%c1_107, %c0_108, %c0_109] : memref<2x1x384xf32, #tpu.memory_space<vmem>>, vector<1x1x384xf32>
    %227 = vector.shape_cast %226 : vector<1x1x384xf32> to vector<1x384xf32>
    %228 = vector.broadcast %227 : vector<1x384xf32> to vector<16x384xf32>
    %229 = arith.addf %225, %228 : vector<16x384xf32>
    %230 = vector.extract_strided_slice %229 {offsets = [0, 0], sizes = [16, 128], strides = [1, 1]} : vector<16x384xf32> to vector<16x128xf32>
    %231 = vector.extract_strided_slice %229 {offsets = [0, 128], sizes = [16, 128], strides = [1, 1]} : vector<16x384xf32> to vector<16x128xf32>
    %232 = vector.extract_strided_slice %229 {offsets = [0, 256], sizes = [16, 128], strides = [1, 1]} : vector<16x384xf32> to vector<16x128xf32>
    %233 = vector.extract_strided_slice %230 {offsets = [0, 0], sizes = [16, 32], strides = [1, 1]} : vector<16x128xf32> to vector<16x32xf32>
    %234 = arith.truncf %233 : vector<16x32xf32> to vector<16x32xbf16>
    %235 = vector.extract_strided_slice %231 {offsets = [0, 0], sizes = [16, 32], strides = [1, 1]} : vector<16x128xf32> to vector<16x32xf32>
    %236 = arith.truncf %235 : vector<16x32xf32> to vector<16x32xbf16>
    %237 = vector.extract_strided_slice %232 {offsets = [0, 0], sizes = [16, 32], strides = [1, 1]} : vector<16x128xf32> to vector<16x32xf32>
    %238 = arith.truncf %237 : vector<16x32xf32> to vector<16x32xbf16>
    %cst_110 = arith.constant dense<0.000000e+00> : vector<16x16xf32>
    %239 = tpu.matmul %234, %236, %cst_110 {dimension_numbers = #tpu.dot_dimension_numbers<[1], [1], [0], [0], [0, 0, 1, 0], [], []>} : vector<16x32xbf16>, vector<16x32xbf16>, vector<16x16xf32> -> vector<16x16xf32>
    %240 = vector.broadcast %39 : vector<1x16xf32> to vector<16x16xf32>
    %241 = arith.addf %239, %240 : vector<16x16xf32>
    %cst_111 = arith.constant dense<0xFF800000> : vector<16xf32>
    %242 = vector.multi_reduction <maximumf>, %241, %cst_111 [1] : vector<16x16xf32> to vector<16xf32>
    %243 = vector.shape_cast %242 : vector<16xf32> to vector<16x1xf32>
    %244 = vector.broadcast %243 : vector<16x1xf32> to vector<16x16xf32>
    %245 = arith.subf %241, %244 : vector<16x16xf32>
    %246 = math.exp %245 : vector<16x16xf32>
    %cst_112 = arith.constant dense<0.000000e+00> : vector<16xf32>
    %247 = vector.multi_reduction <add>, %246, %cst_112 [1] : vector<16x16xf32> to vector<16xf32>
    %248 = vector.shape_cast %247 : vector<16xf32> to vector<16x1xf32>
    %249 = tpu.reciprocal %248 {approx = true} : vector<16x1xf32> -> vector<16x1xf32>
    %250 = vector.broadcast %249 : vector<16x1xf32> to vector<16x16xf32>
    %251 = arith.mulf %246, %250 : vector<16x16xf32>
    %252 = arith.truncf %251 : vector<16x16xf32> to vector<16x16xbf16>
    %cst_113 = arith.constant dense<0.000000e+00> : vector<16x32xf32>
    %253 = tpu.matmul %252, %238, %cst_113 {dimension_numbers = #tpu.dot_dimension_numbers<[1], [0], [0], [1], [0, 0, 1, 1], [], []>} : vector<16x16xbf16>, vector<16x32xbf16>, vector<16x32xf32> -> vector<16x32xf32>
    %c0_114 = arith.constant 0 : index
    %c0_115 = arith.constant 0 : index
    %254 = vector.load %arg27[%c0_114, %c0_115] : memref<16x128xf32, #tpu.memory_space<vmem>>, vector<16x32xf32>
    tpu.vector_store %arg27[%c0_114, %c0_115], %253 {strides = array<i32>} : memref<16x128xf32, #tpu.memory_space<vmem>>, vector<16x32xf32>,
    %255 = vector.extract_strided_slice %230 {offsets = [0, 32], sizes = [16, 32], strides = [1, 1]} : vector<16x128xf32> to vector<16x32xf32>
    %256 = arith.truncf %255 : vector<16x32xf32> to vector<16x32xbf16>
    %257 = vector.extract_strided_slice %231 {offsets = [0, 32], sizes = [16, 32], strides = [1, 1]} : vector<16x128xf32> to vector<16x32xf32>
    %258 = arith.truncf %257 : vector<16x32xf32> to vector<16x32xbf16>
    %259 = vector.extract_strided_slice %232 {offsets = [0, 32], sizes = [16, 32], strides = [1, 1]} : vector<16x128xf32> to vector<16x32xf32>
    %260 = arith.truncf %259 : vector<16x32xf32> to vector<16x32xbf16>
    %cst_116 = arith.constant dense<0.000000e+00> : vector<16x16xf32>
    %261 = tpu.matmul %256, %258, %cst_116 {dimension_numbers = #tpu.dot_dimension_numbers<[1], [1], [0], [0], [0, 0, 1, 0], [], []>} : vector<16x32xbf16>, vector<16x32xbf16>, vector<16x16xf32> -> vector<16x16xf32>
    %262 = vector.broadcast %39 : vector<1x16xf32> to vector<16x16xf32>
    %263 = arith.addf %261, %262 : vector<16x16xf32>
    %cst_117 = arith.constant dense<0xFF800000> : vector<16xf32>
    %264 = vector.multi_reduction <maximumf>, %263, %cst_117 [1] : vector<16x16xf32> to vector<16xf32>
    %265 = vector.shape_cast %264 : vector<16xf32> to vector<16x1xf32>
    %266 = vector.broadcast %265 : vector<16x1xf32> to vector<16x16xf32>
    %267 = arith.subf %263, %266 : vector<16x16xf32>
    %268 = math.exp %267 : vector<16x16xf32>
    %cst_118 = arith.constant dense<0.000000e+00> : vector<16xf32>
    %269 = vector.multi_reduction <add>, %268, %cst_118 [1] : vector<16x16xf32> to vector<16xf32>
    %270 = vector.shape_cast %269 : vector<16xf32> to vector<16x1xf32>
    %271 = tpu.reciprocal %270 {approx = true} : vector<16x1xf32> -> vector<16x1xf32>
    %272 = vector.broadcast %271 : vector<16x1xf32> to vector<16x16xf32>
    %273 = arith.mulf %268, %272 : vector<16x16xf32>
    %274 = arith.truncf %273 : vector<16x16xf32> to vector<16x16xbf16>
    %cst_119 = arith.constant dense<0.000000e+00> : vector<16x32xf32>
    %275 = tpu.matmul %274, %260, %cst_119 {dimension_numbers = #tpu.dot_dimension_numbers<[1], [0], [0], [1], [0, 0, 1, 1], [], []>} : vector<16x16xbf16>, vector<16x32xbf16>, vector<16x32xf32> -> vector<16x32xf32>
    %c0_120 = arith.constant 0 : index
    %c32_121 = arith.constant 32 : index
    %276 = vector.load %arg27[%c0_120, %c32_121] : memref<16x128xf32, #tpu.memory_space<vmem>>, vector<16x32xf32>
    tpu.vector_store %arg27[%c0_120, %c32_121], %275 {strides = array<i32>} : memref<16x128xf32, #tpu.memory_space<vmem>>, vector<16x32xf32>,
    %277 = vector.extract_strided_slice %230 {offsets = [0, 64], sizes = [16, 32], strides = [1, 1]} : vector<16x128xf32> to vector<16x32xf32>
    %278 = arith.truncf %277 : vector<16x32xf32> to vector<16x32xbf16>
    %279 = vector.extract_strided_slice %231 {offsets = [0, 64], sizes = [16, 32], strides = [1, 1]} : vector<16x128xf32> to vector<16x32xf32>
    %280 = arith.truncf %279 : vector<16x32xf32> to vector<16x32xbf16>
    %281 = vector.extract_strided_slice %232 {offsets = [0, 64], sizes = [16, 32], strides = [1, 1]} : vector<16x128xf32> to vector<16x32xf32>
    %282 = arith.truncf %281 : vector<16x32xf32> to vector<16x32xbf16>
    %cst_122 = arith.constant dense<0.000000e+00> : vector<16x16xf32>
    %283 = tpu.matmul %278, %280, %cst_122 {dimension_numbers = #tpu.dot_dimension_numbers<[1], [1], [0], [0], [0, 0, 1, 0], [], []>} : vector<16x32xbf16>, vector<16x32xbf16>, vector<16x16xf32> -> vector<16x16xf32>
    %284 = vector.broadcast %39 : vector<1x16xf32> to vector<16x16xf32>
    %285 = arith.addf %283, %284 : vector<16x16xf32>
    %cst_123 = arith.constant dense<0xFF800000> : vector<16xf32>
    %286 = vector.multi_reduction <maximumf>, %285, %cst_123 [1] : vector<16x16xf32> to vector<16xf32>
    %287 = vector.shape_cast %286 : vector<16xf32> to vector<16x1xf32>
    %288 = vector.broadcast %287 : vector<16x1xf32> to vector<16x16xf32>
    %289 = arith.subf %285, %288 : vector<16x16xf32>
    %290 = math.exp %289 : vector<16x16xf32>
    %cst_124 = arith.constant dense<0.000000e+00> : vector<16xf32>
    %291 = vector.multi_reduction <add>, %290, %cst_124 [1] : vector<16x16xf32> to vector<16xf32>
    %292 = vector.shape_cast %291 : vector<16xf32> to vector<16x1xf32>
    %293 = tpu.reciprocal %292 {approx = true} : vector<16x1xf32> -> vector<16x1xf32>
    %294 = vector.broadcast %293 : vector<16x1xf32> to vector<16x16xf32>
    %295 = arith.mulf %290, %294 : vector<16x16xf32>
    %296 = arith.truncf %295 : vector<16x16xf32> to vector<16x16xbf16>
    %cst_125 = arith.constant dense<0.000000e+00> : vector<16x32xf32>
    %297 = tpu.matmul %296, %282, %cst_125 {dimension_numbers = #tpu.dot_dimension_numbers<[1], [0], [0], [1], [0, 0, 1, 1], [], []>} : vector<16x16xbf16>, vector<16x32xbf16>, vector<16x32xf32> -> vector<16x32xf32>
    %c0_126 = arith.constant 0 : index
    %c64_127 = arith.constant 64 : index
    %298 = vector.load %arg27[%c0_126, %c64_127] : memref<16x128xf32, #tpu.memory_space<vmem>>, vector<16x32xf32>
    tpu.vector_store %arg27[%c0_126, %c64_127], %297 {strides = array<i32>} : memref<16x128xf32, #tpu.memory_space<vmem>>, vector<16x32xf32>,
    %299 = vector.extract_strided_slice %230 {offsets = [0, 96], sizes = [16, 32], strides = [1, 1]} : vector<16x128xf32> to vector<16x32xf32>
    %300 = arith.truncf %299 : vector<16x32xf32> to vector<16x32xbf16>
    %301 = vector.extract_strided_slice %231 {offsets = [0, 96], sizes = [16, 32], strides = [1, 1]} : vector<16x128xf32> to vector<16x32xf32>
    %302 = arith.truncf %301 : vector<16x32xf32> to vector<16x32xbf16>
    %303 = vector.extract_strided_slice %232 {offsets = [0, 96], sizes = [16, 32], strides = [1, 1]} : vector<16x128xf32> to vector<16x32xf32>
    %304 = arith.truncf %303 : vector<16x32xf32> to vector<16x32xbf16>
    %cst_128 = arith.constant dense<0.000000e+00> : vector<16x16xf32>
    %305 = tpu.matmul %300, %302, %cst_128 {dimension_numbers = #tpu.dot_dimension_numbers<[1], [1], [0], [0], [0, 0, 1, 0], [], []>} : vector<16x32xbf16>, vector<16x32xbf16>, vector<16x16xf32> -> vector<16x16xf32>
    %306 = vector.broadcast %39 : vector<1x16xf32> to vector<16x16xf32>
    %307 = arith.addf %305, %306 : vector<16x16xf32>
    %cst_129 = arith.constant dense<0xFF800000> : vector<16xf32>
    %308 = vector.multi_reduction <maximumf>, %307, %cst_129 [1] : vector<16x16xf32> to vector<16xf32>
    %309 = vector.shape_cast %308 : vector<16xf32> to vector<16x1xf32>
    %310 = vector.broadcast %309 : vector<16x1xf32> to vector<16x16xf32>
    %311 = arith.subf %307, %310 : vector<16x16xf32>
    %312 = math.exp %311 : vector<16x16xf32>
    %cst_130 = arith.constant dense<0.000000e+00> : vector<16xf32>
    %313 = vector.multi_reduction <add>, %312, %cst_130 [1] : vector<16x16xf32> to vector<16xf32>
    %314 = vector.shape_cast %313 : vector<16xf32> to vector<16x1xf32>
    %315 = tpu.reciprocal %314 {approx = true} : vector<16x1xf32> -> vector<16x1xf32>
    %316 = vector.broadcast %315 : vector<16x1xf32> to vector<16x16xf32>
    %317 = arith.mulf %312, %316 : vector<16x16xf32>
    %318 = arith.truncf %317 : vector<16x16xf32> to vector<16x16xbf16>
    %cst_131 = arith.constant dense<0.000000e+00> : vector<16x32xf32>
    %319 = tpu.matmul %318, %304, %cst_131 {dimension_numbers = #tpu.dot_dimension_numbers<[1], [0], [0], [1], [0, 0, 1, 1], [], []>} : vector<16x16xbf16>, vector<16x32xbf16>, vector<16x32xf32> -> vector<16x32xf32>
    %c0_132 = arith.constant 0 : index
    %c96_133 = arith.constant 96 : index
    %320 = vector.load %arg27[%c0_132, %c96_133] : memref<16x128xf32, #tpu.memory_space<vmem>>, vector<16x32xf32>
    tpu.vector_store %arg27[%c0_132, %c96_133], %319 {strides = array<i32>} : memref<16x128xf32, #tpu.memory_space<vmem>>, vector<16x32xf32>,
    %c0_134 = arith.constant 0 : index
    %c0_135 = arith.constant 0 : index
    %321 = vector.load %arg27[%c0_134, %c0_135] : memref<16x128xf32, #tpu.memory_space<vmem>>, vector<16x128xf32>
    %c1_136 = arith.constant 1 : index
    %c0_137 = arith.constant 0 : index
    %c0_138 = arith.constant 0 : index
    %322 = vector.load %arg11[%c1_136, %c0_137, %c0_138] : memref<2x128x128xbf16, #tpu.memory_space<vmem>>, vector<1x128x128xbf16>
    %323 = vector.shape_cast %322 : vector<1x128x128xbf16> to vector<128x128xbf16>
    %324 = arith.truncf %321 : vector<16x128xf32> to vector<16x128xbf16>
    %cst_139 = arith.constant dense<0.000000e+00> : vector<16x128xf32>
    %325 = tpu.matmul %324, %323, %cst_139 {dimension_numbers = #tpu.dot_dimension_numbers<[1], [0], [0], [1], [0, 0, 1, 1], [], []>} : vector<16x128xbf16>, vector<128x128xbf16>, vector<16x128xf32> -> vector<16x128xf32>
    %c1_140 = arith.constant 1 : index
    %c0_141 = arith.constant 0 : index
    %c0_142 = arith.constant 0 : index
    %326 = vector.load %arg12[%c1_140, %c0_141, %c0_142] : memref<2x1x128xf32, #tpu.memory_space<vmem>>, vector<1x1x128xf32>
    %327 = vector.shape_cast %326 : vector<1x1x128xf32> to vector<1x128xf32>
    %328 = vector.broadcast %327 : vector<1x128xf32> to vector<16x128xf32>
    %329 = arith.addf %325, %328 : vector<16x128xf32>
    %330 = arith.addf %329, %221 : vector<16x128xf32>
    %c1_143 = arith.constant 1 : index
    %c0_144 = arith.constant 0 : index
    %c0_145 = arith.constant 0 : index
    %331 = vector.load %arg13[%c1_143, %c0_144, %c0_145] : memref<2x1x128xf32, #tpu.memory_space<vmem>>, vector<1x1x128xf32>
    %332 = vector.shape_cast %331 : vector<1x1x128xf32> to vector<1x128xf32>
    %c1_146 = arith.constant 1 : index
    %c0_147 = arith.constant 0 : index
    %c0_148 = arith.constant 0 : index
    %333 = vector.load %arg14[%c1_146, %c0_147, %c0_148] : memref<2x1x128xf32, #tpu.memory_space<vmem>>, vector<1x1x128xf32>
    %334 = vector.shape_cast %333 : vector<1x1x128xf32> to vector<1x128xf32>
    %cst_149 = arith.constant dense<0.000000e+00> : vector<16xf32>
    %335 = vector.multi_reduction <add>, %330, %cst_149 [1] : vector<16x128xf32> to vector<16xf32>
    %336 = vector.shape_cast %335 : vector<16xf32> to vector<16x1xf32>
    %cst_150 = arith.constant 1.280000e+02 : f32
    %337 = vector.broadcast %cst_150 : f32 to vector<16x1xf32>
    %338 = arith.divf %336, %337 : vector<16x1xf32>
    %339 = vector.broadcast %338 : vector<16x1xf32> to vector<16x128xf32>
    %340 = arith.subf %330, %339 : vector<16x128xf32>
    %341 = arith.mulf %340, %340 : vector<16x128xf32>
    %cst_151 = arith.constant dense<0.000000e+00> : vector<16xf32>
    %342 = vector.multi_reduction <add>, %341, %cst_151 [1] : vector<16x128xf32> to vector<16xf32>
    %343 = vector.shape_cast %342 : vector<16xf32> to vector<16x1xf32>
    %cst_152 = arith.constant 1.280000e+02 : f32
    %344 = vector.broadcast %cst_152 : f32 to vector<16x1xf32>
    %345 = arith.divf %343, %344 : vector<16x1xf32>
    %cst_153 = arith.constant 9.99999996E-13 : f32
    %346 = vector.broadcast %cst_153 : f32 to vector<16x1xf32>
    %347 = arith.addf %345, %346 : vector<16x1xf32>
    %348 = math.rsqrt %347 : vector<16x1xf32>
    %349 = vector.broadcast %348 : vector<16x1xf32> to vector<16x128xf32>
    %350 = arith.mulf %340, %349 : vector<16x128xf32>
    %351 = vector.broadcast %332 : vector<1x128xf32> to vector<16x128xf32>
    %352 = arith.mulf %350, %351 : vector<16x128xf32>
    %353 = vector.broadcast %334 : vector<1x128xf32> to vector<16x128xf32>
    %354 = arith.addf %352, %353 : vector<16x128xf32>
    %c1_154 = arith.constant 1 : index
    %c0_155 = arith.constant 0 : index
    %c0_156 = arith.constant 0 : index
    %355 = vector.load %arg15[%c1_154, %c0_155, %c0_156] : memref<2x128x512xbf16, #tpu.memory_space<vmem>>, vector<1x128x512xbf16>
    %356 = vector.shape_cast %355 : vector<1x128x512xbf16> to vector<128x512xbf16>
    %357 = arith.truncf %354 : vector<16x128xf32> to vector<16x128xbf16>
    %cst_157 = arith.constant dense<0.000000e+00> : vector<16x512xf32>
    %358 = tpu.matmul %357, %356, %cst_157 {dimension_numbers = #tpu.dot_dimension_numbers<[1], [0], [0], [1], [0, 0, 1, 1], [], []>} : vector<16x128xbf16>, vector<128x512xbf16>, vector<16x512xf32> -> vector<16x512xf32>
    %c1_158 = arith.constant 1 : index
    %c0_159 = arith.constant 0 : index
    %c0_160 = arith.constant 0 : index
    %359 = vector.load %arg16[%c1_158, %c0_159, %c0_160] : memref<2x1x512xf32, #tpu.memory_space<vmem>>, vector<1x1x512xf32>
    %360 = vector.shape_cast %359 : vector<1x1x512xf32> to vector<1x512xf32>
    %361 = vector.broadcast %360 : vector<1x512xf32> to vector<16x512xf32>
    %362 = arith.addf %358, %361 : vector<16x512xf32>
    %cst_161 = arith.constant 5.000000e-01 : f32
    %363 = vector.broadcast %cst_161 : f32 to vector<16x512xf32>
    %364 = arith.mulf %363, %362 : vector<16x512xf32>
    %cst_162 = arith.constant 0.707106769 : f32
    %365 = vector.broadcast %cst_162 : f32 to vector<16x512xf32>
    %366 = arith.mulf %362, %365 : vector<16x512xf32>
    %367 = math.erf %366 : vector<16x512xf32>
    %cst_163 = arith.constant 1.000000e+00 : f32
    %368 = vector.broadcast %cst_163 : f32 to vector<16x512xf32>
    %369 = arith.addf %368, %367 : vector<16x512xf32>
    %370 = arith.mulf %364, %369 : vector<16x512xf32>
    %c1_164 = arith.constant 1 : index
    %c0_165 = arith.constant 0 : index
    %c0_166 = arith.constant 0 : index
    %371 = vector.load %arg17[%c1_164, %c0_165, %c0_166] : memref<2x512x128xbf16, #tpu.memory_space<vmem>>, vector<1x512x128xbf16>
    %372 = vector.shape_cast %371 : vector<1x512x128xbf16> to vector<512x128xbf16>
    %373 = arith.truncf %370 : vector<16x512xf32> to vector<16x512xbf16>
    %cst_167 = arith.constant dense<0.000000e+00> : vector<16x128xf32>
    %374 = tpu.matmul %373, %372, %cst_167 {dimension_numbers = #tpu.dot_dimension_numbers<[1], [0], [0], [1], [0, 0, 1, 1], [], []>} : vector<16x512xbf16>, vector<512x128xbf16>, vector<16x128xf32> -> vector<16x128xf32>
    %c1_168 = arith.constant 1 : index
    %c0_169 = arith.constant 0 : index
    %c0_170 = arith.constant 0 : index
    %375 = vector.load %arg18[%c1_168, %c0_169, %c0_170] : memref<2x1x128xf32, #tpu.memory_space<vmem>>, vector<1x1x128xf32>
    %376 = vector.shape_cast %375 : vector<1x1x128xf32> to vector<1x128xf32>
    %377 = vector.broadcast %376 : vector<1x128xf32> to vector<16x128xf32>
    %378 = arith.addf %374, %377 : vector<16x128xf32>
    %379 = arith.addf %378, %354 : vector<16x128xf32>
    %c1_171 = arith.constant 1 : index
    %c0_172 = arith.constant 0 : index
    %c0_173 = arith.constant 0 : index
    %380 = vector.load %arg19[%c1_171, %c0_172, %c0_173] : memref<2x1x128xf32, #tpu.memory_space<vmem>>, vector<1x1x128xf32>
    %381 = vector.shape_cast %380 : vector<1x1x128xf32> to vector<1x128xf32>
    %c1_174 = arith.constant 1 : index
    %c0_175 = arith.constant 0 : index
    %c0_176 = arith.constant 0 : index
    %382 = vector.load %arg20[%c1_174, %c0_175, %c0_176] : memref<2x1x128xf32, #tpu.memory_space<vmem>>, vector<1x1x128xf32>
    %383 = vector.shape_cast %382 : vector<1x1x128xf32> to vector<1x128xf32>
    %cst_177 = arith.constant dense<0.000000e+00> : vector<16xf32>
    %384 = vector.multi_reduction <add>, %379, %cst_177 [1] : vector<16x128xf32> to vector<16xf32>
    %385 = vector.shape_cast %384 : vector<16xf32> to vector<16x1xf32>
    %cst_178 = arith.constant 1.280000e+02 : f32
    %386 = vector.broadcast %cst_178 : f32 to vector<16x1xf32>
    %387 = arith.divf %385, %386 : vector<16x1xf32>
    %388 = vector.broadcast %387 : vector<16x1xf32> to vector<16x128xf32>
    %389 = arith.subf %379, %388 : vector<16x128xf32>
    %390 = arith.mulf %389, %389 : vector<16x128xf32>
    %cst_179 = arith.constant dense<0.000000e+00> : vector<16xf32>
    %391 = vector.multi_reduction <add>, %390, %cst_179 [1] : vector<16x128xf32> to vector<16xf32>
    %392 = vector.shape_cast %391 : vector<16xf32> to vector<16x1xf32>
    %cst_180 = arith.constant 1.280000e+02 : f32
    %393 = vector.broadcast %cst_180 : f32 to vector<16x1xf32>
    %394 = arith.divf %392, %393 : vector<16x1xf32>
    %cst_181 = arith.constant 9.99999996E-13 : f32
    %395 = vector.broadcast %cst_181 : f32 to vector<16x1xf32>
    %396 = arith.addf %394, %395 : vector<16x1xf32>
    %397 = math.rsqrt %396 : vector<16x1xf32>
    %398 = vector.broadcast %397 : vector<16x1xf32> to vector<16x128xf32>
    %399 = arith.mulf %389, %398 : vector<16x128xf32>
    %400 = vector.broadcast %381 : vector<1x128xf32> to vector<16x128xf32>
    %401 = arith.mulf %399, %400 : vector<16x128xf32>
    %402 = vector.broadcast %383 : vector<1x128xf32> to vector<16x128xf32>
    %403 = arith.addf %401, %402 : vector<16x128xf32>
    %404 = vector.extract_strided_slice %403 {offsets = [0, 0], sizes = [1, 128], strides = [1, 1]} : vector<16x128xf32> to vector<1x128xf32>
    %c0_182 = arith.constant 0 : index
    %c0_183 = arith.constant 0 : index
    %405 = vector.load %arg21[%c0_182, %c0_183] : memref<128x128xbf16, #tpu.memory_space<vmem>>, vector<128x128xbf16>
    %406 = arith.truncf %404 : vector<1x128xf32> to vector<1x128xbf16>
    %cst_184 = arith.constant dense<0.000000e+00> : vector<1x128xf32>
    %407 = tpu.matmul %406, %405, %cst_184 {dimension_numbers = #tpu.dot_dimension_numbers<[1], [0], [0], [1], [0, 0, 1, 1], [], []>} : vector<1x128xbf16>, vector<128x128xbf16>, vector<1x128xf32> -> vector<1x128xf32>
    %c0_185 = arith.constant 0 : index
    %c0_186 = arith.constant 0 : index
    %408 = vector.load %arg22[%c0_185, %c0_186] : memref<1x128xf32, #tpu.memory_space<vmem>>, vector<1x128xf32>
    %409 = arith.addf %407, %408 : vector<1x128xf32>
    %410 = math.tanh %409 : vector<1x128xf32>
    %c0_187 = arith.constant 0 : index
    %c0_188 = arith.constant 0 : index
    %411 = vector.load %arg23[%c0_187, %c0_188] : memref<128x128xbf16, #tpu.memory_space<vmem>>, vector<128x128xbf16>
    %412 = arith.truncf %410 : vector<1x128xf32> to vector<1x128xbf16>
    %cst_189 = arith.constant dense<0.000000e+00> : vector<1x128xf32>
    %413 = tpu.matmul %412, %411, %cst_189 {dimension_numbers = #tpu.dot_dimension_numbers<[1], [0], [0], [1], [0, 0, 1, 1], [], []>} : vector<1x128xbf16>, vector<128x128xbf16>, vector<1x128xf32> -> vector<1x128xf32>
    %c0_190 = arith.constant 0 : index
    %c0_191 = arith.constant 0 : index
    %414 = vector.load %arg24[%c0_190, %c0_191] : memref<1x128xf32, #tpu.memory_space<vmem>>, vector<1x128xf32>
    %415 = arith.addf %413, %414 : vector<1x128xf32>
    %c0_192 = arith.constant 0 : index
    %c0_193 = arith.constant 0 : index
    %c0_194 = arith.constant 0 : index
    %416 = vector.load %arg25[%c0_192, %c0_193, %c0_194] : memref<1x1x128xf32, #tpu.memory_space<vmem>>, vector<1x1x128xf32>
    %417 = vector.shape_cast %416 : vector<1x1x128xf32> to vector<1x128xf32>
    %418 = vector.shape_cast %415 : vector<1x128xf32> to vector<1x1x128xf32>
    tpu.vector_store %arg25[%c0_192, %c0_193, %c0_194], %418 {strides = array<i32>} : memref<1x1x128xf32, #tpu.memory_space<vmem>>, vector<1x1x128xf32>,
    return
  }
  func.func @transform_0(%arg0: i32) -> (i32, i32, i32) {
    %c0_i32 = arith.constant 0 : i32
    %c0_i32_0 = arith.constant 0 : i32
    %c0_i32_1 = arith.constant 0 : i32
    return %arg0, %c0_i32, %c0_i32_0 : i32, i32, i32
  }
  func.func @transform_1(%arg0: i32) -> (i32, i32, i32) {
    %c0_i32 = arith.constant 0 : i32
    %c0_i32_0 = arith.constant 0 : i32
    %c0_i32_1 = arith.constant 0 : i32
    return %arg0, %c0_i32, %c0_i32_0 : i32, i32, i32
  }
  func.func @transform_2(%arg0: i32) -> (i32, i32, i32) {
    %c0_i32 = arith.constant 0 : i32
    %c0_i32_0 = arith.constant 0 : i32
    %c0_i32_1 = arith.constant 0 : i32
    return %arg0, %c0_i32, %c0_i32_0 : i32, i32, i32
  }
  func.func @transform_3(%arg0: i32) -> (i32, i32) {
    %c0_i32 = arith.constant 0 : i32
    %c0_i32_0 = arith.constant 0 : i32
    %c0_i32_1 = arith.constant 0 : i32
    return %c0_i32, %c0_i32_0 : i32, i32
  }
  func.func @transform_4(%arg0: i32) -> (i32, i32) {
    %c0_i32 = arith.constant 0 : i32
    %c0_i32_0 = arith.constant 0 : i32
    %c0_i32_1 = arith.constant 0 : i32
    return %c0_i32, %c0_i32_0 : i32, i32
  }
  func.func @transform_5(%arg0: i32) -> (i32, i32) {
    %c0_i32 = arith.constant 0 : i32
    %c0_i32_0 = arith.constant 0 : i32
    %c0_i32_1 = arith.constant 0 : i32
    return %c0_i32, %c0_i32_0 : i32, i32
  }
  func.func @transform_6(%arg0: i32) -> (i32, i32) {
    %c0_i32 = arith.constant 0 : i32
    %c0_i32_0 = arith.constant 0 : i32
    %c0_i32_1 = arith.constant 0 : i32
    return %c0_i32, %c0_i32_0 : i32, i32
  }
  func.func @transform_7(%arg0: i32) -> (i32, i32) {
    %c0_i32 = arith.constant 0 : i32
    %c0_i32_0 = arith.constant 0 : i32
    %c0_i32_1 = arith.constant 0 : i32
    return %c0_i32, %c0_i32_0 : i32, i32
  }
  func.func @transform_8(%arg0: i32) -> (i32, i32, i32) {
    %c0_i32 = arith.constant 0 : i32
    %c0_i32_0 = arith.constant 0 : i32
    %c0_i32_1 = arith.constant 0 : i32
    %c0_i32_2 = arith.constant 0 : i32
    return %c0_i32, %c0_i32_0, %c0_i32_1 : i32, i32, i32
  }
  func.func @transform_9(%arg0: i32) -> (i32, i32, i32) {
    %c0_i32 = arith.constant 0 : i32
    %c0_i32_0 = arith.constant 0 : i32
    %c0_i32_1 = arith.constant 0 : i32
    %c0_i32_2 = arith.constant 0 : i32
    return %c0_i32, %c0_i32_0, %c0_i32_1 : i32, i32, i32
  }
  func.func @transform_10(%arg0: i32) -> (i32, i32, i32) {
    %c0_i32 = arith.constant 0 : i32
    %c0_i32_0 = arith.constant 0 : i32
    %c0_i32_1 = arith.constant 0 : i32
    %c0_i32_2 = arith.constant 0 : i32
    return %c0_i32, %c0_i32_0, %c0_i32_1 : i32, i32, i32
  }
  func.func @transform_11(%arg0: i32) -> (i32, i32, i32) {
    %c0_i32 = arith.constant 0 : i32
    %c0_i32_0 = arith.constant 0 : i32
    %c0_i32_1 = arith.constant 0 : i32
    %c0_i32_2 = arith.constant 0 : i32
    return %c0_i32, %c0_i32_0, %c0_i32_1 : i32, i32, i32
  }
  func.func @transform_12(%arg0: i32) -> (i32, i32, i32) {
    %c0_i32 = arith.constant 0 : i32
    %c0_i32_0 = arith.constant 0 : i32
    %c0_i32_1 = arith.constant 0 : i32
    %c0_i32_2 = arith.constant 0 : i32
    return %c0_i32, %c0_i32_0, %c0_i32_1 : i32, i32, i32
  }
  func.func @transform_13(%arg0: i32) -> (i32, i32, i32) {
    %c0_i32 = arith.constant 0 : i32
    %c0_i32_0 = arith.constant 0 : i32
    %c0_i32_1 = arith.constant 0 : i32
    %c0_i32_2 = arith.constant 0 : i32
    return %c0_i32, %c0_i32_0, %c0_i32_1 : i32, i32, i32
  }
  func.func @transform_14(%arg0: i32) -> (i32, i32, i32) {
    %c0_i32 = arith.constant 0 : i32
    %c0_i32_0 = arith.constant 0 : i32
    %c0_i32_1 = arith.constant 0 : i32
    %c0_i32_2 = arith.constant 0 : i32
    return %c0_i32, %c0_i32_0, %c0_i32_1 : i32, i32, i32
  }
  func.func @transform_15(%arg0: i32) -> (i32, i32, i32) {
    %c0_i32 = arith.constant 0 : i32
    %c0_i32_0 = arith.constant 0 : i32
    %c0_i32_1 = arith.constant 0 : i32
    %c0_i32_2 = arith.constant 0 : i32
    return %c0_i32, %c0_i32_0, %c0_i32_1 : i32, i32, i32
  }
  func.func @transform_16(%arg0: i32) -> (i32, i32, i32) {
    %c0_i32 = arith.constant 0 : i32
    %c0_i32_0 = arith.constant 0 : i32
    %c0_i32_1 = arith.constant 0 : i32
    %c0_i32_2 = arith.constant 0 : i32
    return %c0_i32, %c0_i32_0, %c0_i32_1 : i32, i32, i32
  }
  func.func @transform_17(%arg0: i32) -> (i32, i32, i32) {
    %c0_i32 = arith.constant 0 : i32
    %c0_i32_0 = arith.constant 0 : i32
    %c0_i32_1 = arith.constant 0 : i32
    %c0_i32_2 = arith.constant 0 : i32
    return %c0_i32, %c0_i32_0, %c0_i32_1 : i32, i32, i32
  }
  func.func @transform_18(%arg0: i32) -> (i32, i32, i32) {
    %c0_i32 = arith.constant 0 : i32
    %c0_i32_0 = arith.constant 0 : i32
    %c0_i32_1 = arith.constant 0 : i32
    %c0_i32_2 = arith.constant 0 : i32
    return %c0_i32, %c0_i32_0, %c0_i32_1 : i32, i32, i32
  }
  func.func @transform_19(%arg0: i32) -> (i32, i32, i32) {
    %c0_i32 = arith.constant 0 : i32
    %c0_i32_0 = arith.constant 0 : i32
    %c0_i32_1 = arith.constant 0 : i32
    %c0_i32_2 = arith.constant 0 : i32
    return %c0_i32, %c0_i32_0, %c0_i32_1 : i32, i32, i32
  }
  func.func @transform_20(%arg0: i32) -> (i32, i32) {
    %c0_i32 = arith.constant 0 : i32
    %c0_i32_0 = arith.constant 0 : i32
    %c0_i32_1 = arith.constant 0 : i32
    return %c0_i32, %c0_i32_0 : i32, i32
  }
  func.func @transform_21(%arg0: i32) -> (i32, i32) {
    %c0_i32 = arith.constant 0 : i32
    %c0_i32_0 = arith.constant 0 : i32
    %c0_i32_1 = arith.constant 0 : i32
    return %c0_i32, %c0_i32_0 : i32, i32
  }
  func.func @transform_22(%arg0: i32) -> (i32, i32) {
    %c0_i32 = arith.constant 0 : i32
    %c0_i32_0 = arith.constant 0 : i32
    %c0_i32_1 = arith.constant 0 : i32
    return %c0_i32, %c0_i32_0 : i32, i32
  }
  func.func @transform_23(%arg0: i32) -> (i32, i32) {
    %c0_i32 = arith.constant 0 : i32
    %c0_i32_0 = arith.constant 0 : i32
    %c0_i32_1 = arith.constant 0 : i32
    return %c0_i32, %c0_i32_0 : i32, i32
  }
  func.func @transform_24(%arg0: i32) -> (i32, i32, i32) {
    %c0_i32 = arith.constant 0 : i32
    %c0_i32_0 = arith.constant 0 : i32
    %c0_i32_1 = arith.constant 0 : i32
    return %arg0, %c0_i32, %c0_i32_0 : i32, i32, i32
  }
}

</mosaic_0001>

<bundles_post_ra>
// kernel: _lambda_.1
= control target key start
LH: loop header
LB: loop body
LE: loop exit
PB: predicated region body
PF: predicated region fallthrough
CT: control target
= control target key end

     0   :  { %s6736_s0 = inlined_call_operand.vmem [shape: f32[2,8,128], index: 0, kind: input, shape index: {}]   ;;  %s6737_s1 = inlined_call_operand.vmem [shape: f32[2,8,64], index: 1, kind: input, shape index: {}]   ;;  %s6738_s2 = inlined_call_operand.vmem [shape: f32[2,1,16], index: 2, kind: input, shape index: {}]   ;;  %s6739_s3 = inlined_call_operand.vmem [shape: bf16[64,128], index: 3, kind: input, shape index: {}]   ;;  %s6740_s4 = inlined_call_operand.vmem [shape: f32[1,128], index: 4, kind: input, shape index: {}]   ;;  %s6741_s5 = inlined_call_operand.vmem [shape: f32[1,128], index: 5, kind: input, shape index: {}]   ;;  %s6742_s6 = inlined_call_operand.vmem [shape: f32[1,128], index: 6, kind: input, shape index: {}]   ;;  %s6743_s7 = inlined_call_operand.vmem [shape: f32[1,128], index: 7, kind: input, shape index: {}]   ;;  %s6744_s8 = inlined_call_operand.hbm [shape: bf16[2,128,384], index: 8, kind: input, shape index: {}]   ;;  %s6745_s9 = inlined_call_operand.vmem [shape: f32[2,1,384], index: 9, kind: input, shape index: {}]   ;;  %s6746_s10 = inlined_call_operand.vmem [shape: bf16[2,128,128], index: 10, kind: input, shape index: {}]   ;;  %s6747_s11 = inlined_call_operand.vmem [shape: f32[2,1,128], index: 11, kind: input, shape index: {}]   ;;  %s6748_s12 = inlined_call_operand.vmem [shape: f32[2,1,128], index: 12, kind: input, shape index: {}]   ;;  %s6749_s13 = inlined_call_operand.vmem [shape: f32[2,1,128], index: 13, kind: input, shape index: {}]   ;;  %s6750_s14 = inlined_call_operand.hbm [shape: bf16[2,128,512], index: 14, kind: input, shape index: {}]   ;;  %s6751_s15 = inlined_call_operand.vmem [shape: f32[2,1,512], index: 15, kind: input, shape index: {}]   ;;  %s6752_s16 = inlined_call_operand.hbm [shape: bf16[2,512,128], index: 16, kind: input, shape index: {}]   ;;  %s6753_s17 = inlined_call_operand.vmem [shape: f32[2,1,128], index: 17, kind: input, shape index: {}]   ;;  %s6754_s18 = inlined_call_operand.vmem [shape: f32[2,1,128], index: 18, kind: input, shape index: {}]   ;;  %s6755_s19 = inlined_call_operand.vmem [shape: f32[2,1,128], index: 19, kind: input, shape index: {}]   ;;  %s6756_s20 = inlined_call_operand.vmem [shape: bf16[128,128], index: 20, kind: input, shape index: {}]   ;;  %s6757_s21 = inlined_call_operand.vmem [shape: f32[1,128], index: 21, kind: input, shape index: {}]   ;;  %s6758_s22 = inlined_call_operand.vmem [shape: bf16[128,128], index: 22, kind: input, shape index: {}]   ;;  %s6759_s23 = inlined_call_operand.vmem [shape: f32[1,128], index: 23, kind: input, shape index: {}]   ;;  %s6760_s24 = inlined_call_operand.hbm [shape: f32[2,1,128], index: 24, kind: output, shape index: {}]  }
   0x1   :  { %6770 = sst [smem:[#allocation20_spill]] %s6736_s0 }
   0x2   :  { %6771 = sst [smem:[#allocation21_spill]] %s6737_s1 }
   0x3   :  { %6772 = sst [smem:[#allocation22_spill]] %s6738_s2 }
   0x4   :  { %6773 = sst [smem:[#allocation23_spill]] %s6739_s3 }
   0x5   :  { %6774 = sst [smem:[#allocation24_spill]] %s6740_s4 }
   0x6   :  { %6775 = sst [smem:[#allocation25_spill]] %s6741_s5 }
   0x7   :  { %6776 = sst [smem:[#allocation26_spill]] %s6742_s6 }
   0x8   :  { %6777 = sst [smem:[#allocation27_spill]] %s6743_s7 }
   0x9   :  { %6778 = sst [smem:[#allocation28_spill]] %s6744_s8 }
   0xa   :  { %6779 = sst [smem:[#allocation29_spill]] %s6750_s14 }
   0xb   :  { %6780 = sst [smem:[#allocation30_spill]] %s6752_s16 }
   0xc   :  { %6781 = sst [smem:[#allocation31_spill]] %s6760_s24 }
   0xd   :  { %29 = vsyncpa [#allocation5], 0 }
   0xe   :  { %30 = vsyncpa [#allocation8], 0 }
   0xf   :  { %31 = vsyncpa [#allocation6], 0 }
  0x10   :  { %33 = vsyncpa [#allocation6 + $0x1], 0  ;;  %s6061_s5 = smov 0   ;;  %s6063_s26 = smov 0  }
  0x11   :  { %s6065_s27 = smov 0   ;;  %s6067_s28 = smov 0  }
  0x12 LB: > { %6782 = sst [smem:[#allocation14_spill]] %s5906_s5  ;;  %s6082_s6 = sadd.s32 4294967295, %s5918_s28   ;;  %s5918_s28 = sphi %s6067_s28, %s6812_s28   ;;  %s5914_s27 = sphi %s6065_s27, %s6814_s27   ;;  %s5910_s26 = sphi %s6063_s26, %s6816_s26   ;;  %s5906_s5 = sphi %s6061_s5, %s6815_s5  }
  0x13   : > { %6783 = sst [smem:[#allocation15_spill]] %s5914_s27  ;;  %s4621_s2 = sadd.s32 4294967294, %s5918_s28  }
  0x14   : > { %6784 = sst [smem:[#allocation16_spill]] %s5918_s28  ;;  %s6086_s29 = sadd.s32 1, %s5918_s28  }
  0x15   : > { %6785 = sst [smem:[#allocation17_spill]] %s6086_s29  ;;  %s565_s0 = sadd.s32 1, %s5914_s27 }
  0x16   : > { %s562_s7 = ssub.s32 %s5918_s28, %s6086_s29  ;;  %p575_p0 = scmp.ne.s32.totalorder %s5914_s27, %s5910_s26 }
  0x17   : > { %p563_p1 = scmp.eq.s32.totalorder %s562_s7, 0  ;;  %p576_p2 = scmp.eq.s32.totalorder %s6082_s6, 1 }
  0x18   : > { %p581_p3 = scmp.ne.s32.totalorder %s5910_s26, %s5906_s5  ;;  %p582_p4 = scmp.eq.s32.totalorder %s4621_s2, 1 }
  0x19   : > { %s6097_s30 = scalar_select %p563_p1, %s5914_s27, %s565_s0  }
  0x1a   : > { %p6099_p5 = por %p576_p2, %p575_p0  ;;  %p6103_p6 = por %p582_p4, %p581_p3 }
  0x1b   : > { %6786 = sst [smem:[#allocation18_spill]] %s6097_s30  ;;  %p4622_p7 = scmp.ge.s32.totalorder %s5918_s28, 1 }
  0x1c   : > { %s6788_s25 = scalar_select %p6103_p6, 1, 0 }
  0x1d   : > { %p589_p8 = scmp.lt.s32.totalorder %s5918_s28, 3  ;;  %p6766_p9 = scmp.eq.s32.totalorder %s6082_s6, 0 }
  0x1e   : > { %6789 = sst [smem:[#allocation19_spill]] %s6788_s25  ;;  %s5920_s4 = smov [#allocation7]  }
  0x1f   : > { %p6110_p10 = pnand %p4622_p7, %p589_p8  ;;  %s644_s1 = sshll.u32 %s5920_s4, 4  ;;  %s645_s1 = int_to_ptr.vmem [resolvable:$true] %s644_s1 }
  0x20   : > { %s5921_s0 = smov [#allocation4]   ;;  %s5783_s30 = scalar_lea.vmem %s645_s1, 8192 }
  0x21   : > { %p5327_p11 = pneg %p6110_p10  ;;  %s616_s7 = sshll.u32 %s5921_s0, 4  ;;  %s617_s7 = int_to_ptr.vmem [resolvable:$true] %s616_s7 }
  0x22   : > { %p5784_p0 = scmp.ne.s32.totalorder %s645_s1, %s5783_s30  ;;  %p5791_p3 = scmp.lt.s32.totalorder %s645_s1, %s645_s1 }
  0x23   : > { %p6118_p12 = pnand %p6766_p9, %p5327_p11  ;;  %p5792_p4 = scmp.lt.s32.totalorder %s5783_s30, %s5783_s30 }
  0x25   : > { %p5774_p13 = pneg %p6118_p12  ;;  %p5793_p7 = por %p5792_p4, %p5791_p3 }
  0x27   : > { %p5786_p1 = pnand %p5784_p0, %p5774_p13 }
  0x29   : > { %p5787_p2 = pneg %p5786_p1 }
  0x2b   : > { %p5794_p8 = pnand %p5793_p7, %p5787_p2 }
  0x2d   : > { %5797 = shalt.err (!%p5794_p8)
}
  0x2e   : > { %s5922_s4 = smov 256   ;;  %s5923_s27 = smov 16  }
  0x2f   : > { %s6792_s14 = sld [smem:[#allocation29_spill]]  ;;  %s5809_s25 = scalar_lea.vmem %s617_s7, 6144 }
  0x30   : > { %p5810_p11 = scmp.ne.s32.totalorder %s617_s7, %s5809_s25  ;;  %p5817_p9 = scmp.lt.s32.totalorder %s617_s7, %s617_s7 }
  0x31   : > { %p5818_p6 = scmp.lt.s32.totalorder %s5809_s25, %s5809_s25 }
  0x32   : > { %p5812_p0 = pnand %p5810_p11, %p5774_p13 }
  0x33   : > { %p5819_p3 = por %p5818_p6, %p5817_p9 }
  0x34   : > { %p5813_p1 = pneg %p5812_p0 }
  0x35   : > { %5333 = dma.hbm_to_vmem [thread:$0]  (!%p6118_p12), %s6792_s14, 8192, %s645_s1, [#allocation8], %s5922_s4, %s5922_s4, %s5923_s27  }
  0x36   : > { %p5820_p2 = pnand %p5819_p3, %p5813_p1 }
  0x38   : > { %5823 = shalt.err (!%p5820_p2)
}
  0x39   : > { %s5924_s30 = smov 192   ;;  %s5925_s5 = smov 12  }
  0x3a   : > { %s6793_s29 = sld [smem:[#allocation28_spill]]  ;;  %s5926_s27 = smov [#allocation9]  }
  0x3b   : > { %s660_s1 = sshll.u32 %s5926_s27, 4  ;;  %s661_s1 = int_to_ptr.vmem [resolvable:$true] %s660_s1 }
  0x3c   : > { %s5835_s4 = scalar_lea.vmem %s661_s1, 8192  ;;  %p5843_p9 = scmp.lt.s32.totalorder %s661_s1, %s661_s1 }
  0x3d   : > { %p5836_p4 = scmp.ne.s32.totalorder %s661_s1, %s5835_s4  ;;  %p5844_p8 = scmp.lt.s32.totalorder %s5835_s4, %s5835_s4 }
  0x3f   : > { %p5838_p7 = pnand %p5836_p4, %p5774_p13  ;;  %p5845_p11 = por %p5844_p8, %p5843_p9 }
  0x40   : > { %5330 = dma.hbm_to_vmem [thread:$0]  (!%p6118_p12), %s6793_s29, 6144, %s617_s7, [#allocation5], %s5924_s30, %s5924_s30, %s5925_s5  }
  0x41   : > { %p5839_p6 = pneg %p5838_p7 }
  0x43   : > { %p5846_p0 = pnand %p5845_p11, %p5839_p6 }
  0x45   : > { %5849 = shalt.err (!%p5846_p0)
}
  0x46   : > { %s5927_s25 = smov 64   ;;  %s5928_s0 = smov 4  }
  0x47   : > { %s6794_s16 = sld [smem:[#allocation30_spill]]  ;;  %p6795_p1 = scmp.eq.s32.totalorder (!%p6110_p10), %s6082_s6, 0 }
  0x49   : > { %717 = sbr.rel (%p6110_p10) target bundleno = 6339 (0x18c3), region = 116 }
  0x4d   : > { %5336 = dma.hbm_to_vmem [thread:$0]  (!%p6118_p12), %s6794_s16, 8192, %s661_s1, [#allocation8], %s5927_s25, %s5927_s25, %s5928_s0  }
  0x4e   : > { %5893 = dma.done.wait (%p6795_p1), [#allocation5], 6144   ;;  %p6796_p13 = pmov %p6795_p1 }
  0x4f   : > { %p6797_p3 = pmov %p6795_p1 }
  0x50   : > { %5895 = vsyncadd (%p6796_p13), [#allocation5], 4294961152 }
  0x51   : > { %5897 = dma.done.wait (%p6797_p3), [#allocation8], 16384   ;;  %p6798_p2 = pmov %p6795_p1 }
  0x52   : > { %p796_p4 = scmp.lt.s32.totalorder %s6082_s6, 1  ;;  %v5929_v0 = vmov 0.0   ;;  %vm5930_vm0 = vmmov 0   ;;  %s6799_s7 = sld [smem:[#allocation23_spill]]  ;;  %vm849_vm1 = vcmask 523264   ;;  %v5931_v40 = vmov 0  }
  0x53   : > { %5899 = vsyncadd (%p6798_p2), [#allocation8], 4294950912  ;;  %5085 = vmatprep.subr.bf16.mxu1 %v5929_v0  ;;  %5093 = vmatprep.mubr.msk.bf16.mxu1 %vm5930_vm0, %v5929_v0  ;;  %s6800_s1 = sld [smem:[#allocation20_spill]]  ;;  %v5399_v20 = vld [vmem:[#allocation4 + $0xa8] ss:$12 sps:$4 sm:$0xff]   ;;  %vm1219_vm2 = vcmask 261120  }
  0x54   : > { %5097 = vmatprep.subr.bf16.mxu0 %v5929_v0  ;;  %5113 = vmatprep.mubr.msk.bf16.mxu0 %vm5930_vm0, %v5929_v0  ;;  %s6166_s28 = scalar_select %p796_p4, %s6082_s6, 1  ;;  %v5401_v21 = vld [vmem:[#allocation4 + $0xac] ss:$12 sps:$4 sm:$0xff]   ;;  %v5402_v22 = vld [vmem:[#allocation4 + $0xb0] ss:$12 sps:$4 sm:$0xff]   ;;  %vm1267_vm3 = vcmask 130048  }
  0x55   : > { %s6801_s14 = sld [smem:[#allocation21_spill]]  ;;  %v5405_v23 = vld [vmem:[#allocation4 + $0x94] ss:$12 sps:$4 sm:$0xff]   ;;  %5098 = vmatpush3.bf16.msra.mxu0 %v5402_v22  ;;  %v5406_v24 = vld [vmem:[#allocation4 + $0x98] ss:$12 sps:$4 sm:$0xff]   ;;  %vm1469_vm4 = vcmask 523520  }
  0x56   : > { %s4631_s30 = sshll.u32 %s6166_s28, 3  ;;  %s6803_s25 = sld [smem:[#allocation25_spill]]  ;;  %v5403_v25 = vld [vmem:[#allocation4 + $0x90] ss:$12 sps:$4 sm:$0xff]   ;;  %5099 = vmatprep.subr.bf16.mxu0 %v5929_v0  ;;  %v5407_v31 = vld [vmem:[#allocation4 + $0x78] ss:$12 sps:$4 sm:$0xff]  }
  0x57   : > { %v5409_v30 = vld [vmem:[#allocation4 + $0x7c] ss:$12 sps:$4 sm:$0xff]   ;;  %v5410_v32 = vld [vmem:[#allocation4 + $0x80] ss:$12 sps:$4 sm:$0xff]   ;;  %v5413_v34 = vld [vmem:[#allocation4 + $0x64] ss:$12 sps:$4 sm:$0xff]  }
  0x58   : > { %v5395_v1 = vld [vmem:[%s6799_s7 + $0x18] sm:$0xff]   ;;  %v5396_v2 = vld [vmem:[%s6799_s7 + $0x10] sm:$0xff]   ;;  %v5397_v3 = vld [vmem:[%s6799_s7 + $0x8] sm:$0xff]   ;;  %s6804_s5 = sld [smem:[#allocation26_spill]]  ;;  %vm1601_vm5 = vcmask 785920   ;;  %vm1733_vm6 = vcmask 1048320  }
  0x59   : > { %s799_s4 = scalar_lea.vmem %s6800_s1, %s4631_s30  ;;  %5086 = vmatpush3.bf16.msra.mxu1 %v5395_v1  ;;  %v5398_v5 = vld [vmem:[%s6799_s7] sm:$0xff]   ;;  %s6802_s1 = sld [smem:[#allocation24_spill]]  ;;  %5100 = vmatpush3.bf16.msra.mxu0 %v5406_v24  ;;  %v5411_v33 = vld [vmem:[#allocation4 + $0x60] ss:$12 sps:$4 sm:$0xff]   ;;  %v5422_v42 = vld [vmem:[#allocation4 + $0x38] ss:$12 sps:$4 sm:$0xff]  }
  0x5a   : > { %5087 = vmatprep.subr.bf16.mxu1 %v5929_v0  ;;  %v901_v4 = vld [vmem:[%s799_s4] sm:$0xff]  ;;  %5101 = vmatprep.subr.bf16.mxu0 %v5929_v0  ;;  %v5417_v36 = vld [vmem:[#allocation4 + $0x4c] ss:$12 sps:$4 sm:$0xff]   ;;  %v5425_v43 = vld [vmem:[#allocation4 + $0x1c] ss:$12 sps:$4 sm:$0xff]   ;;  %s6805_s29 = sld [smem:[#allocation27_spill]] }
  0x5b   : > { %s803_s16 = scalar_lea.vmem %s6801_s14, %s4631_s30  ;;  %908 = vadd.xlane.f32.xlu0 %v901_v4  ;;  %v5414_v35 = vld [vmem:[#allocation4 + $0x68] ss:$12 sps:$4 sm:$0xff]   ;;  %v5418_v38 = vld [vmem:[#allocation4 + $0x50] ss:$12 sps:$4 sm:$0xff]   ;;  %v5423_v44 = vld [vmem:[#allocation4 + $0x18] ss:$12 sps:$4 sm:$0xff]  }
  0x5c   : > { %v808_v6 = vld [vmem:[%s803_s16] sm:$0xff]  ;;  %v5426_v45 = vld [vmem:[#allocation4 + $0x20] ss:$12 sps:$4 sm:$0xff]   ;;  %s5932_s30 = smov 96   ;;  %s5934_s16 = smov 32  }
  0x5d   : > { %5088 = vmatpush3.bf16.msra.mxu1 %v5396_v2  ;;  %v817_v7 = vpack.c.bf16 %v808_v6, %v808_v6  ;;  %v4639_v14 = vld [vmem:[%s6803_s25] ss:$0 sm:$0xff]  ;;  %5102 = vmatpush3.bf16.msra.mxu0 %v5410_v32  ;;  %v5415_v37 = vld [vmem:[#allocation4 + $0x48] ss:$12 sps:$4 sm:$0xff]   ;;  %v5427_v47 = vld [vmem:[#allocation4] ss:$12 sps:$4 sm:$0xff]  }
  0x5e   : > { %5089 = vmatprep.subr.bf16.mxu1 %v5929_v0  ;;  %5103 = vmatprep.subr.bf16.mxu0 %v5929_v0  ;;  %v5421_v39 = vld [vmem:[#allocation4 + $0x34] ss:$12 sps:$4 sm:$0xff]   ;;  %v5419_v41 = vld [vmem:[#allocation4 + $0x30] ss:$12 sps:$4 sm:$0xff]   ;;  %s6806_s0 = sld [smem:[#allocation22_spill]] }
  0x5f   : > { %v4633_v12 = vld [vmem:[%s6802_s1] ss:$0 sm:$0xff]  ;;  %v5430_v48 = vld [vmem:[#allocation4 + $0x8] ss:$12 sps:$4 sm:$0xff]   ;;  %s5933_s1 = smov 64  }
  0x60   : > { %v5429_v46 = vld [vmem:[#allocation4 + $0x4] ss:$12 sps:$4 sm:$0xff]  }
  0x61   : > { %5090 = vmatpush3.bf16.msra.mxu1 %v5397_v3  ;;  %5104 = vmatpush3.bf16.msra.mxu0 %v5414_v35  ;;  %v4640_v57 = vld [vmem:[%s6804_s5] ss:$0 sm:$0xff]  ;;  %v983_v3 = vlaneseq }
  0x62   : > { %5091 = vmatprep.subr.bf16.mxu1 %v5929_v0  ;;  %5105 = vmatprep.subr.bf16.mxu0 %v5929_v0  ;;  %v4641_v61 = vld [vmem:[%s6805_s29] ss:$0 sm:$0xff] }
  0x63   : > { %v981_v6 = vld [vmem:[%s6745_s9] sm:$0x7] }
  0x64   : > { %s6278_s24 = scalar_lea.vmem %s6806_s0, %s6166_s28  ;;  %s794_s0 = sand.u32 1, %s5910_s26  }
  0x65   : > { %5092 = vmatpush3.bf16.msra.mxu1 %v5398_v5  ;;  %5106 = vmatpush3.bf16.msra.mxu0 %v5418_v38  ;;  %s795_s8 = scalar_lea.vmem [#allocation10], %s794_s0 }
  0x66   : > { %1126 = vmatprep.subr.bf16.mxu1 %v5401_v21  ;;  %5107 = vmatprep.subr.bf16.mxu0 %v5929_v0  ;;  %s4514_s2 = sshll.u32 %s795_s8, 4  ;;  %s6697_s2 = int_to_ptr.vmem [resolvable:$true] %s4514_s2 }
  0x67   : > { %s5850_s14 = scalar_lea.vmem %s6697_s2, 16 }
  0x68   : > { %5094 = vmatmul.mubr.msk.bf16.vlgmr.msra.gmra.mxu1 %vm849_vm1, %v817_v7  ;;  %p5851_p10 = scmp.ne.s32.totalorder %s6697_s2, %s5850_s14 }
  0x69   : > { %1127 = vmatpush1.bf16.msra.mxu1 %v5399_v20  ;;  %1158 = vmatprep.mubr.bf16.mxu1 %v5931_v40 }
  0x6a   : > { %1128 = vmatprep.subr.bf16.mxu1 %v5405_v23  ;;  %5108 = vmatpush3.bf16.msra.mxu0 %v5422_v42  ;;  %p5852_p12 = pnand %p5851_p10, %p6099_p5 }
  0x6b   : > { %5109 = vmatprep.subr.bf16.mxu0 %v5929_v0 }
  0x6c   : > { %p5853_p7 = pneg %p5852_p12 }
  0x6d   : > { %1129 = vmatpush1.bf16.msra.mxu1 %v5403_v25 }
  0x6e   : > { %1130 = vmatprep.subr.bf16.mxu1 %v5409_v30  ;;  %5110 = vmatpush3.bf16.msra.mxu0 %v5426_v45 }
  0x6f   : > { %5111 = vmatprep.subr.bf16.mxu0 %v5929_v0 }
  0x71   : > { %1131 = vmatpush1.bf16.msra.mxu1 %v5407_v31 }
  0x72   : > { %1132 = vmatprep.subr.bf16.mxu1 %v5413_v34  ;;  %5112 = vmatpush3.bf16.msra.mxu0 %v5430_v48 }
  0x73   : > { %5129 = vmatprep.subr.bf16.mxu0 %v5929_v0 }
  0x75   : > { %1133 = vmatpush1.bf16.msra.mxu1 %v5411_v33 }
  0x76   : > { %1134 = vmatprep.subr.bf16.mxu1 %v5417_v36 }
  0x79   : > { %1135 = vmatpush1.bf16.msra.mxu1 %v5415_v37 }
  0x7a   : > { %1136 = vmatprep.subr.bf16.mxu1 %v5421_v39  ;;  %v4666_v39 = vld [vmem:[%s6278_s24] ss:$0 sm:$0xff] }
  0x7d   : > { %1137 = vmatpush1.bf16.msra.mxu1 %v5419_v41 }
  0x7e   : > { %1138 = vmatprep.subr.bf16.mxu1 %v5425_v43 }
  0x81   : > { %1139 = vmatpush1.bf16.msra.mxu1 %v5423_v44 }
  0x82   : > { %1140 = vmatprep.subr.bf16.mxu1 %v5429_v46 }
  0x85   : > { %1141 = vmatpush1.bf16.msra.mxu1 %v5427_v47 }
  0x86   : > { %5117 = vmatprep.subr.bf16.mxu1 %v5929_v0 }
  0xe4   : > { %v909_v8 = vpop.xlane.xlu0 %908 }
  0xe5   : > { %v913_v9 = vmul.f32 0.0078125, %v909_v8 }
  0xe7   : > { %v6190_v10 = vsub.f32 %v901_v4, %v913_v9  ;;  %v6227_v4 = vshrl.u32 %v983_v3, 7 }
  0xe9   : > { %v917_v11 = vmul.f32 %v6190_v10, %v6190_v10  ;;  %v6230_v5 = vsub.s32 0, %v6227_v4  ;;  %v6236_v7 = vsub.s32 1, %v6227_v4  ;;  %v6241_v23 = vsub.s32 2, %v6227_v4 }
  0xeb   : > { %919 = vadd.xlane.f32.xlu1 %v917_v11 }
 0x128   : > { %v887_v13 = vpop.f32.mrf.mxu1 }
 0x129   : > { %v888_v15 = vadd.f32 %v4633_v12, %v887_v13  ;;  %v990_v13 = vrot.slane %v981_v6, %v6236_v7 }
 0x12a   : > { %v5095_v16 = vpop.f32.mrf.mxu1 }
 0x12b   : > { %v900_v17 = vadd.f32 %v4639_v14, %v888_v15 }
 0x12c   : > { %v890_v18 = vpop.f32.mrf.mxu1 }
 0x12d   : > { %910 = vadd.xlane.f32.xlu0 %v900_v17 }
 0x12e   : > { %v5096_v19 = vpop.f32.mrf.mxu1 }
 0x174   : > { %v920_v49 = vpop.xlane.xlu1 %919 }
 0x175   : > { %v923_v50 = vmul.f32 0.0078125, %v920_v49 }
 0x177   : > { %v925_v51 = vadd.f32 1e-12, %v923_v50 }
 0x179   : > { %5655 = vrsqrt.f32 %v925_v51 }
 0x186   : > { %v5656_v55 = vpop.eup %5655 }
 0x187   : > { %v929_v56 = vmul.f32 %v5656_v55, %v6190_v10  ;;  %v986_v10 = vrot.slane %v981_v6, %v6230_v5 }
 0x189   : > { %v937_v60 = vmul.f32 %v4640_v57, %v929_v56 }
 0x18b   : > { %v6217_v63 = vadd.f32 %v4641_v61, %v937_v60 }
 0x1b6   : > { %v911_v26 = vpop.xlane.xlu0 %910 }
 0x1b7   : > { %v914_v27 = vmul.f32 0.0078125, %v911_v26  ;;  %v994_v26 = vrot.slane %v981_v6, %v6241_v23 }
 0x1b9   : > { %v916_v28 = vsub.f32 %v900_v17, %v914_v27 }
 0x1bb   : > { %v918_v29 = vmul.f32 %v916_v28, %v916_v28 }
 0x1bd   : > { %921 = vadd.xlane.f32.xlu1 %v918_v29 }
 0x246   : > { %v922_v52 = vpop.xlane.xlu1 %921 }
 0x247   : > { %v924_v53 = vmul.f32 0.0078125, %v922_v52 }
 0x249   : > { %v926_v54 = vadd.f32 1e-12, %v924_v53 }
 0x24b   : > { %5657 = vrsqrt.f32 %v926_v54 }
 0x258   : > { %v5658_v58 = vpop.eup %5657 }
 0x259   : > { %v930_v59 = vmul.f32 %v5658_v58, %v916_v28 }
 0x25b   : > { %v938_v62 = vmul.f32 %v4640_v57, %v930_v59 }
 0x25d   : > { %v6219_v1 = vadd.f32 %v4641_v61, %v938_v62 }
 0x25f   : > { %v980_v2 = vpack.c.bf16 %v6219_v1, %v6217_v63 }
 0x261   : > { %1159 = vmatmul.mubr.bf16.vlgmr.msra.gmra.mxu1 %v980_v2  ;;  %5114 = vmatmul.mubr.bf16.vlgmr.msra.gmra.mxu0 %v980_v2 }
 0x262   : > { %5119 = vmatprep.mubr.msk.bf16.mxu1 %vm5930_vm0, %v5929_v0  ;;  %5131 = vmatprep.mubr.msk.bf16.mxu0 %vm5930_vm0, %v5929_v0 }
 0x321   : > { %v1160_v8 = vpop.f32.mrf.mxu1  ;;  %v1203_v9 = vpop.f32.mrf.mxu0 }
 0x322   : > { %v1161_v16 = vadd.f32 %v1160_v8, %v986_v10  ;;  %v1204_v28 = vadd.f32 %v1203_v9, %v994_v26 }
 0x323   : > { %v1162_v11 = vpop.f32.mrf.mxu1  ;;  %v5115_v12 = vpop.f32.mrf.mxu0 }
 0x324   : > { %v1163_v20 = vadd.f32 %v1162_v11, %v990_v13 }
 0x325   : > { %v1164_v14 = vpop.f32.mrf.mxu1  ;;  %v1206_v15 = vpop.f32.mrf.mxu0 }
 0x326   : > { %v1165_v17 = vadd.f32 %v1164_v14, %v986_v10  ;;  %v1207_v27 = vadd.f32 %v1206_v15, %v994_v26 }
 0x327   : > { %v1166_v18 = vpop.f32.mrf.mxu1  ;;  %v5116_v19 = vpop.f32.mrf.mxu0 }
 0x328   : > { %v1210_v21 = vpack.c.bf16 %v1165_v17, %v1161_v16  ;;  %v1167_v22 = vadd.f32 %v1166_v18, %v990_v13  ;;  %v6251_v29 = vpack.c.bf16 %v1207_v27, %v1204_v28 }
 0x32a   : > { %v1211_v24 = vpack.c.bf16 %v1167_v22, %v1163_v20  ;;  %1338 = vrot.lane.b32.xlu1 %v1210_v21, %s5932_s30 }
 0x32c   : > { %1341 = vrot.lane.b32.xlu0 %v1211_v24, %s5932_s30  ;;  %v1224_v25 = vsel %vm1219_vm2, %v1211_v24, 0 }
 0x32d   : > { %5118 = vmatpush3.bf16.xpose.msra.mxu1 %v1224_v25 }
 0x32e   : > { %1474 = vrot.lane.b32.xlu1 %v1211_v24, %s5933_s1  ;;  %5123 = vmatprep.subr.bf16.mxu1 %v5929_v0 }
 0x330   : > { %1606 = vrot.lane.b32.xlu0 %v1211_v24, %s5934_s16 }
 0x332   : > { %1472 = vrot.lane.b32.xlu1 %v1210_v21, %s5933_s1 }
 0x334   : > { %5120 = vmatmul.mubr.msk.bf16.vlgmr.msra.gmra.mxu1 %vm1219_vm2, %v1210_v21 }
 0x335   : > { %5124 = vmatpush3.bf16.msra.mxu1 %v6251_v29  ;;  %5125 = vmatprep.mubr.msk.bf16.mxu1 %vm5930_vm0, %v5929_v0 }
 0x336   : > { %1604 = vrot.lane.b32.xlu1 %v1210_v21, %s5934_s16  ;;  %5135 = vmatprep.subr.bf16.mxu1 %v5929_v0 }
 0x39c   : > { %v1339_v30 = vpop.permute.xlu1 %1338 }
 0x39e   : > { %v1342_v31 = vpop.permute.xlu0 %1341 }
 0x39f   : > { %v1347_v32 = vsel %vm1219_vm2, %v1342_v31, 0 }
 0x3a0   : > { %5130 = vmatpush3.bf16.xpose.msra.mxu0 %v1347_v32  ;;  %v1475_v33 = vpop.permute.xlu1 %1474 }
 0x3a1   : > { %5141 = vmatprep.subr.bf16.mxu0 %v5929_v0  ;;  %v1480_v34 = vsel %vm1219_vm2, %v1475_v33, 0 }
 0x3a2   : > { %v1607_v35 = vpop.permute.xlu0 %1606 }
 0x3a3   : > { %v1612_v37 = vsel %vm1219_vm2, %v1607_v35, 0 }
 0x3a4   : > { %v1473_v36 = vpop.permute.xlu1 %1472 }
 0x3a7   : > { %5132 = vmatmul.mubr.msk.bf16.vlgmr.msra.gmra.mxu0 %vm1219_vm2, %v1339_v30 }
 0x3a8   : > { %5142 = vmatpush3.bf16.xpose.msra.mxu0 %v1480_v34  ;;  %5143 = vmatprep.mubr.msk.bf16.mxu0 %vm5930_vm0, %v5929_v0  ;;  %v1605_v38 = vpop.permute.xlu1 %1604 }
 0x3a9   : > { %5153 = vmatprep.subr.bf16.mxu0 %v5929_v0 }
 0x3af   : > { %5144 = vmatmul.mubr.msk.bf16.vlgmr.msra.gmra.mxu0 %vm1219_vm2, %v1473_v36 }
 0x3b0   : > { %5154 = vmatpush3.bf16.xpose.msra.mxu0 %v1612_v37  ;;  %5155 = vmatprep.mubr.msk.bf16.mxu0 %vm5930_vm0, %v5929_v0 }
 0x3b1   : > { %5165 = vmatprep.subr.bf16.mxu0 %v5929_v0 }
 0x3b7   : > { %5156 = vmatmul.mubr.msk.bf16.vlgmr.msra.gmra.mxu0 %vm1219_vm2, %v1605_v38 }
 0x3b8   : > { %5181 = vmatprep.mubr.msk.bf16.mxu0 %vm5930_vm0, %v5929_v0 }
 0x3f4   : > { %v1260_v41 = vpop.f32.mrf.mxu1 }
 0x3f5   : > { %v1261_v42 = vadd.f32 %v4666_v39, %v1260_v41 }
 0x3f6   : > { %v5121_v43 = vpop.f32.mrf.mxu1 }
 0x3f7   : > { %v1268_v44 = vsel %vm1267_vm3, %v1261_v42, -inf }
 0x3f8   : > { %1269 = vmax.xlane.f32.xlu0 %v1268_v44  ;;  %v1263_v45 = vpop.f32.mrf.mxu1 }
 0x3f9   : > { %v1264_v46 = vadd.f32 %v4666_v39, %v1263_v45 }
 0x3fa   : > { %v5122_v47 = vpop.f32.mrf.mxu1 }
 0x3fb   : > { %v1271_v48 = vsel %vm1267_vm3, %v1264_v46, -inf }
 0x3fc   : > { %1272 = vmax.xlane.f32.xlu1 %v1271_v48 }
 0x467   : > { %v1383_v49 = vpop.f32.mrf.mxu0 }
 0x468   : > { %v1384_v50 = vadd.f32 %v4666_v39, %v1383_v49 }
 0x469   : > { %v5133_v51 = vpop.f32.mrf.mxu0 }
 0x46a   : > { %v1390_v52 = vsel %vm1267_vm3, %v1384_v50, -inf }
 0x46b   : > { %v1386_v53 = vpop.f32.mrf.mxu0  ;;  %1391 = vmax.xlane.f32.xlu0 %v1390_v52 }
 0x46c   : > { %v1387_v54 = vadd.f32 %v4666_v39, %v1386_v53 }
 0x46d   : > { %v5134_v55 = vpop.f32.mrf.mxu0 }
 0x46e   : > { %v1393_v56 = vsel %vm1267_vm3, %v1387_v54, -inf }
 0x46f   : > { %v1516_v57 = vpop.f32.mrf.mxu0  ;;  %1394 = vmax.xlane.f32.xlu0 %v1393_v56 }
 0x470   : > { %v1517_v58 = vadd.f32 %v4666_v39, %v1516_v57 }
 0x471   : > { %v5145_v59 = vpop.f32.mrf.mxu0 }
 0x472   : > { %v1523_v60 = vsel %vm1267_vm3, %v1517_v58, -inf }
 0x473   : > { %v1519_v61 = vpop.f32.mrf.mxu0  ;;  %1524 = vmax.xlane.f32.xlu0 %v1523_v60 }
 0x474   : > { %v1520_v62 = vadd.f32 %v4666_v39, %v1519_v61 }
 0x475   : > { %v5146_v2 = vpop.f32.mrf.mxu0 }
 0x476   : > { %v1526_v3 = vsel %vm1267_vm3, %v1520_v62, -inf }
 0x477   : > { %v1648_v6 = vpop.f32.mrf.mxu0  ;;  %1527 = vmax.xlane.f32.xlu1 %v1526_v3 }
 0x478   : > { %v1649_v8 = vadd.f32 %v4666_v39, %v1648_v6 }
 0x479   : > { %v5157_v9 = vpop.f32.mrf.mxu0 }
 0x47a   : > { %v1655_v10 = vsel %vm1267_vm3, %v1649_v8, -inf }
 0x47b   : > { %v1651_v11 = vpop.f32.mrf.mxu0  ;;  %1656 = vmax.xlane.f32.xlu0 %v1655_v10 }
 0x47c   : > { %v6288_v12 = vadd.f32 %v4666_v39, %v1651_v11 }
 0x47d   : > { %v5158_v13 = vpop.f32.mrf.mxu0 }
 0x47e   : > { %v1658_v14 = vsel %vm1267_vm3, %v6288_v12, -inf }
 0x47f   : > { %1659 = vmax.xlane.f32.xlu1 %v1658_v14 }
 0x481   : > { %v1270_v15 = vpop.xlane.xlu0 %1269 }
 0x482   : > { %v1274_v16 = vsub.f32 %v1261_v42, %v1270_v15 }
 0x484   : > { %v1276_v17 = vmul.f32 1.442695, %v1274_v16 }
 0x485   : > { %v1273_v18 = vpop.xlane.xlu1 %1272 }
 0x486   : > { %5659 = vpow2.f32 %v1276_v17  ;;  %v1275_v19 = vsub.f32 %v1264_v46, %v1273_v18 }
 0x488   : > { %v1278_v20 = vmul.f32 1.442695, %v1275_v19 }
 0x48a   : > { %5661 = vpow2.f32 %v1278_v20 }
 0x493   : > { %v5660_v21 = vpop.eup %5659 }
 0x494   : > { %v1280_v22 = vsel %vm1267_vm3, %v5660_v21, 0.0 }
 0x495   : > { %1281 = vadd.xlane.f32.xlu0 %v1280_v22 }
 0x497   : > { %v5662_v24 = vpop.eup %5661 }
 0x498   : > { %v1283_v25 = vsel %vm1267_vm3, %v5662_v24, 0.0 }
 0x499   : > { %1284 = vadd.xlane.f32.xlu1 %v1283_v25 }
 0x4f4   : > { %v1392_v26 = vpop.xlane.xlu0 %1391 }
 0x4f5   : > { %v1396_v27 = vsub.f32 %v1384_v50, %v1392_v26 }
 0x4f7   : > { %v1398_v28 = vmul.f32 1.442695, %v1396_v27 }
 0x4f8   : > { %v1395_v30 = vpop.xlane.xlu0 %1394 }
 0x4f9   : > { %5663 = vpow2.f32 %v1398_v28  ;;  %v1397_v31 = vsub.f32 %v1387_v54, %v1395_v30 }
 0x4fb   : > { %v1400_v32 = vmul.f32 1.442695, %v1397_v31 }
 0x4fc   : > { %v1525_v33 = vpop.xlane.xlu0 %1524 }
 0x4fd   : > { %5665 = vpow2.f32 %v1400_v32  ;;  %v1529_v34 = vsub.f32 %v1517_v58, %v1525_v33 }
 0x4ff   : > { %v1531_v35 = vmul.f32 1.442695, %v1529_v34 }
 0x500   : > { %v1528_v36 = vpop.xlane.xlu1 %1527 }
 0x501   : > { %5667 = vpow2.f32 %v1531_v35  ;;  %v1530_v37 = vsub.f32 %v1520_v62, %v1528_v36 }
 0x503   : > { %v1533_v38 = vmul.f32 1.442695, %v1530_v37  ;;  %v5431_v37 = vld [vmem:[%s6746_s10 + $0x38] sm:$0xff]  }
 0x504   : > { %v1657_v39 = vpop.xlane.xlu0 %1656  ;;  %5166 = vmatpush3.bf16.msra.mxu0 %v5431_v37  ;;  %v5459_v37 = vld [vmem:[#allocation7 + $0x84] ss:$16 sps:$4 sm:$0xff]  }
 0x505   : > { %5669 = vpow2.f32 %v1533_v38  ;;  %v1661_v41 = vsub.f32 %v1649_v8, %v1657_v39  ;;  %v5432_v39 = vld [vmem:[%s6746_s10 + $0x30] sm:$0xff]   ;;  %5167 = vmatprep.subr.bf16.mxu0 %v5929_v0 }
 0x506   : > { %v5664_v42 = vpop.eup %5663 }
 0x507   : > { %v1663_v43 = vmul.f32 1.442695, %v1661_v41  ;;  %v1402_v44 = vsel %vm1267_vm3, %v5664_v42, 0.0 }
 0x508   : > { %1403 = vadd.xlane.f32.xlu0 %v1402_v44  ;;  %v1660_v53 = vpop.xlane.xlu1 %1659  ;;  %5168 = vmatpush3.bf16.msra.mxu0 %v5432_v39  ;;  %v5462_v39 = vld [vmem:[#allocation7 + $0x8c] ss:$16 sps:$4 sm:$0xff]  }
 0x509   : > { %5671 = vpow2.f32 %v1663_v43  ;;  %v1662_v58 = vsub.f32 %v6288_v12, %v1660_v53  ;;  %v5433_v43 = vld [vmem:[%s6746_s10 + $0x28] sm:$0xff]   ;;  %5169 = vmatprep.subr.bf16.mxu0 %v5929_v0 }
 0x50a   : > { %v5666_v45 = vpop.eup %5665 }
 0x50b   : > { %v1405_v46 = vsel %vm1267_vm3, %v5666_v45, 0.0  ;;  %v1665_v62 = vmul.f32 1.442695, %v1662_v58 }
 0x50c   : > { %1406 = vadd.xlane.f32.xlu1 %v1405_v46  ;;  %5170 = vmatpush3.bf16.msra.mxu0 %v5433_v43  ;;  %v5434_v46 = vld [vmem:[%s6746_s10 + $0x20] sm:$0xff]  }
 0x50d   : > { %5171 = vmatprep.subr.bf16.mxu0 %v5929_v0  ;;  %v5463_v43 = vld [vmem:[#allocation7 + $0x60] ss:$16 sps:$4 sm:$0xff]  }
 0x50e   : > { %v5668_v47 = vpop.eup %5667 }
 0x50f   : > { %v1535_v48 = vsel %vm1267_vm3, %v5668_v47, 0.0 }
 0x510   : > { %1536 = vadd.xlane.f32.xlu0 %v1535_v48  ;;  %5172 = vmatpush3.bf16.msra.mxu0 %v5434_v46  ;;  %v5474_v46 = vld [vmem:[#allocation7 + $0x4c] ss:$16 sps:$4 sm:$0xff]  }
 0x511   : > { %5173 = vmatprep.subr.bf16.mxu0 %v5929_v0 }
 0x512   : > { %v5670_v49 = vpop.eup %5669 }
 0x513   : > { %v1538_v50 = vsel %vm1267_vm3, %v5670_v49, 0.0 }
 0x514   : > { %1539 = vadd.xlane.f32.xlu1 %v1538_v50  ;;  %v5436_v50 = vld [vmem:[%s6746_s10 + $0x10] sm:$0xff]  }
 0x516   : > { %v5672_v51 = vpop.eup %5671 }
 0x517   : > { %v1667_v52 = vsel %vm1267_vm3, %v5672_v51, 0.0 }
 0x518   : > { %1668 = vadd.xlane.f32.xlu0 %v1667_v52  ;;  %v5438_v52 = vld [vmem:[%s6746_s10] sm:$0xff]  }
 0x51e   : > { %v1282_v54 = vpop.xlane.xlu0 %1281 }
 0x51f   : > { %5673 = vrcp.f32 %v1282_v54 }
 0x522   : > { %v1285_v55 = vpop.xlane.xlu1 %1284 }
 0x523   : > { %5675 = vrcp.f32 %v1285_v55 }
 0x524   : > { %5677 = vpow2.f32 %v1665_v62 }
 0x525   : > { %1546 = vrot.lane.b32.xlu1 %v6251_v29, %s5933_s1 }
 0x52c   : > { %v5674_v56 = vpop.eup %5673 }
 0x52d   : > { %v1288_v59 = vmul.f32 %v5674_v56, %v5660_v21 }
 0x52e   : > { %1414 = vrot.lane.b32.xlu0 %v6251_v29, %s5932_s30 }
 0x530   : > { %v5676_v57 = vpop.eup %5675 }
 0x531   : > { %v1289_v60 = vmul.f32 %v5676_v57, %v5662_v24  ;;  %v5678_v2 = vpop.eup %5677 }
 0x532   : > { %v1670_v3 = vsel %vm1267_vm3, %v5678_v2, 0.0 }
 0x533   : > { %v1290_v61 = vpack.c.bf16 %v1289_v60, %v1288_v59 }
 0x535   : > { %5126 = vmatmul.mubr.msk.bf16.vlgmr.msra.gmra.mxu1 %vm1267_vm3, %v1290_v61 }
 0x536   : > { %5137 = vmatprep.mubr.msk.bf16.mxu1 %vm5930_vm0, %v5929_v0 }
 0x549   : > { %1671 = vadd.xlane.f32.xlu1 %v1670_v3 }
 0x55a   : > { %1678 = vrot.lane.b32.xlu1 %v6251_v29, %s5934_s16 }
 0x591   : > { %v1404_v6 = vpop.xlane.xlu0 %1403 }
 0x592   : > { %5679 = vrcp.f32 %v1404_v6 }
 0x595   : > { %v1407_v8 = vpop.xlane.xlu1 %1406 }
 0x596   : > { %5681 = vrcp.f32 %v1407_v8  ;;  %v4675_v8 = vld [vmem:[%s6747_s11] ss:$0 sm:$0xff] }
 0x599   : > { %v1537_v9 = vpop.xlane.xlu0 %1536 }
 0x59a   : > { %5683 = vrcp.f32 %v1537_v9 }
 0x59d   : > { %v1540_v10 = vpop.xlane.xlu1 %1539 }
 0x59e   : > { %5685 = vrcp.f32 %v1540_v10 }
 0x59f   : > { %v5680_v11 = vpop.eup %5679 }
 0x5a0   : > { %v1410_v14 = vmul.f32 %v5680_v11, %v5664_v42 }
 0x5a1   : > { %v1669_v12 = vpop.xlane.xlu0 %1668  ;;  %v1547_v29 = vpop.permute.xlu1 %1546 }
 0x5a2   : > { %5687 = vrcp.f32 %v1669_v12 }
 0x5a3   : > { %v5682_v13 = vpop.eup %5681 }
 0x5a4   : > { %v1411_v15 = vmul.f32 %v5682_v13, %v5666_v45 }
 0x5a5   : > { %v1415_v16 = vpop.permute.xlu0 %1414 }
 0x5a6   : > { %5136 = vmatpush3.bf16.msra.mxu1 %v1415_v16  ;;  %v1412_v17 = vpack.c.bf16 %v1411_v15, %v1410_v14 }
 0x5a7   : > { %5147 = vmatprep.subr.bf16.mxu1 %v5929_v0  ;;  %v5684_v18 = vpop.eup %5683 }
 0x5a8   : > { %v1543_v20 = vmul.f32 %v5684_v18, %v5668_v47  ;;  %v5441_v18 = vld [vmem:[#allocation7 + $0xe4] ss:$16 sps:$4 sm:$0xff]  }
 0x5a9   : > { %5138 = vmatmul.mubr.msk.bf16.vlgmr.msra.gmra.mxu1 %vm1267_vm3, %v1412_v17  ;;  %v5439_v17 = vld [vmem:[#allocation7 + $0xe0] ss:$16 sps:$4 sm:$0xff]  }
 0x5aa   : > { %5148 = vmatpush3.bf16.msra.mxu1 %v1547_v29  ;;  %5149 = vmatprep.mubr.msk.bf16.mxu1 %vm5930_vm0, %v5929_v0  ;;  %v5442_v29 = vld [vmem:[#allocation7 + $0xe8] ss:$16 sps:$4 sm:$0xff]  }
 0x5ab   : > { %v5686_v19 = vpop.eup %5685  ;;  %5159 = vmatprep.subr.bf16.mxu1 %v5929_v0 }
 0x5ac   : > { %v1544_v21 = vmul.f32 %v5686_v19, %v5670_v49  ;;  %v5435_v49 = vld [vmem:[%s6746_s10 + $0x18] sm:$0xff]  }
 0x5ad   : > { %5174 = vmatpush3.bf16.msra.mxu0 %v5435_v49  ;;  %v5444_v19 = vld [vmem:[#allocation7 + $0xec] ss:$16 sps:$4 sm:$0xff]   ;;  %v5477_v49 = vld [vmem:[#allocation7 + $0x24] ss:$16 sps:$4 sm:$0xff]  }
 0x5ae   : > { %v1545_v22 = vpack.c.bf16 %v1544_v21, %v1543_v20  ;;  %5175 = vmatprep.subr.bf16.mxu0 %v5929_v0 }
 0x5af   : > { %v5688_v26 = vpop.eup %5687 }
 0x5b0   : > { %v1675_v28 = vmul.f32 %v5688_v26, %v5672_v51  ;;  %v5437_v51 = vld [vmem:[%s6746_s10 + $0x8] sm:$0xff]  }
 0x5b1   : > { %5150 = vmatmul.mubr.msk.bf16.vlgmr.msra.gmra.mxu1 %vm1267_vm3, %v1545_v22  ;;  %5176 = vmatpush3.bf16.msra.mxu0 %v5436_v50  ;;  %v5480_v50 = vld [vmem:[#allocation7 + $0x2c] ss:$16 sps:$4 sm:$0xff]  }
 0x5b2   : > { %5161 = vmatprep.mubr.msk.bf16.mxu1 %vm5930_vm0, %v5929_v0  ;;  %5177 = vmatprep.subr.bf16.mxu0 %v5929_v0 }
 0x5b5   : > { %5178 = vmatpush3.bf16.msra.mxu0 %v5437_v51  ;;  %v5475_v51 = vld [vmem:[#allocation7 + $0x20] ss:$16 sps:$4 sm:$0xff]  }
 0x5b6   : > { %5179 = vmatprep.subr.bf16.mxu0 %v5929_v0 }
 0x5b9   : > { %5180 = vmatpush3.bf16.msra.mxu0 %v5438_v52  ;;  %v5478_v52 = vld [vmem:[#allocation7 + $0x28] ss:$16 sps:$4 sm:$0xff]  }
 0x5ba   : > { %2151 = vmatprep.subr.bf16.mxu0 %v5444_v19  ;;  %v5491_v19 = vld [vmem:[#allocation9 + $0x70] sm:$0xff]  }
 0x5d2   : > { %v1672_v24 = vpop.xlane.xlu1 %1671 }
 0x5d3   : > { %5689 = vrcp.f32 %v1672_v24 }
 0x5d6   : > { %v1679_v25 = vpop.permute.xlu1 %1678 }
 0x5d7   : > { %5160 = vmatpush3.bf16.msra.mxu1 %v1679_v25 }
 0x5d8   : > { %2108 = vmatprep.subr.bf16.mxu1 %v5441_v18  ;;  %v5489_v18 = vld [vmem:[#allocation9 + $0x38] sm:$0xff]  }
 0x5e0   : > { %v5690_v27 = vpop.eup %5689 }
 0x5e1   : > { %v1676_v30 = vmul.f32 %v5690_v27, %v5678_v2  ;;  %v5447_v27 = vld [vmem:[#allocation7 + $0xc4] ss:$16 sps:$4 sm:$0xff]  }
 0x5e3   : > { %v1677_v31 = vpack.c.bf16 %v1676_v30, %v1675_v28  ;;  %v5450_v28 = vld [vmem:[#allocation7 + $0xcc] ss:$16 sps:$4 sm:$0xff]   ;;  %v5445_v30 = vld [vmem:[#allocation7 + $0xc0] ss:$16 sps:$4 sm:$0xff]  }
 0x5e5   : > { %5162 = vmatmul.mubr.msk.bf16.vlgmr.msra.gmra.mxu1 %vm1267_vm3, %v1677_v31  ;;  %v5448_v31 = vld [vmem:[#allocation7 + $0xc8] ss:$16 sps:$4 sm:$0xff]  }
 0x5e6   : > { %2140 = vmatprep.mubr.bf16.mxu1 %v5931_v40  ;;  %2109 = vmatpush1.bf16.msra.mxu1 %v5439_v17  ;;  %v5488_v17 = vld [vmem:[#allocation9 + $0xf8] sm:$0xff]  }
 0x5e7   : > { %2110 = vmatprep.subr.bf16.mxu1 %v5447_v27  ;;  %v5500_v27 = vld [vmem:[#allocation9 + $0xe0] sm:$0xff]  }
 0x5ea   : > { %2111 = vmatpush1.bf16.msra.mxu1 %v5445_v30  ;;  %v5502_v30 = vld [vmem:[#allocation9 + $0xa0] sm:$0xff]  }
 0x5f5   : > { %v1328_v32 = vpop.f32.mrf.mxu1 }
 0x5f6   : > { %1335 = vst.msk [vmem:[#allocation3] sm:$0xff] %vm1219_vm2, %v1328_v32  ;;  %v5453_v32 = vld [vmem:[#allocation7 + $0xa4] ss:$16 sps:$4 sm:$0xff]  }
 0x5f7   : > { %v5127_v33 = vpop.f32.mrf.mxu1  ;;  %2112 = vmatprep.subr.bf16.mxu1 %v5453_v32  ;;  %v5504_v32 = vld [vmem:[#allocation9 + $0xd8] sm:$0xff]  }
 0x5f8   : > { %v5456_v33 = vld [vmem:[#allocation7 + $0xac] ss:$16 sps:$4 sm:$0xff]  }
 0x5f9   : > { %v1331_v34 = vpop.f32.mrf.mxu1 }
 0x5fa   : > { %1336 = vst.msk [vmem:[#allocation3 + $0x8] sm:$0xff] %vm1219_vm2, %v1331_v34  ;;  %v5451_v34 = vld [vmem:[#allocation7 + $0xa0] ss:$16 sps:$4 sm:$0xff]  }
 0x5fb   : > { %v5128_v35 = vpop.f32.mrf.mxu1  ;;  %2113 = vmatpush1.bf16.msra.mxu1 %v5451_v34  ;;  %v5506_v34 = vld [vmem:[#allocation9 + $0x98] sm:$0xff]  }
 0x5fc   : > { %v5454_v35 = vld [vmem:[#allocation7 + $0xa8] ss:$16 sps:$4 sm:$0xff]   ;;  %2114 = vmatprep.subr.bf16.mxu1 %v5459_v37  ;;  %v5509_v37 = vld [vmem:[#allocation9 + $0x10] sm:$0xff]  }
 0x669   : > { %v1454_v36 = vpop.f32.mrf.mxu1 }
 0x66a   : > { %1463 = vrot.lane.b32.xlu1 %v1454_v36, %s5934_s16  ;;  %v5457_v36 = vld [vmem:[#allocation7 + $0x80] ss:$16 sps:$4 sm:$0xff]  }
 0x66b   : > { %v5139_v38 = vpop.f32.mrf.mxu1  ;;  %2115 = vmatpush1.bf16.msra.mxu1 %v5457_v36  ;;  %v5508_v36 = vld [vmem:[#allocation9 + $0xd0] sm:$0xff]  }
 0x66c   : > { %v5460_v38 = vld [vmem:[#allocation7 + $0x88] ss:$16 sps:$4 sm:$0xff]  }
 0x66d   : > { %v1457_v41 = vpop.f32.mrf.mxu1 }
 0x66e   : > { %1465 = vrot.lane.b32.xlu0 %v1457_v41, %s5934_s16  ;;  %v5465_v41 = vld [vmem:[#allocation7 + $0x64] ss:$16 sps:$4 sm:$0xff]  }
 0x66f   : > { %v5140_v42 = vpop.f32.mrf.mxu1  ;;  %2116 = vmatprep.subr.bf16.mxu1 %v5465_v41  ;;  %v5512_v41 = vld [vmem:[#allocation9 + $0xc8] sm:$0xff]  }
 0x670   : > { %v5468_v42 = vld [vmem:[#allocation7 + $0x6c] ss:$16 sps:$4 sm:$0xff]   ;;  %2117 = vmatpush1.bf16.msra.mxu1 %v5463_v43 }
 0x671   : > { %v1586_v44 = vpop.f32.mrf.mxu1  ;;  %v5514_v43 = vld [vmem:[#allocation9 + $0x88] sm:$0xff]  }
 0x672   : > { %1595 = vrot.lane.b32.xlu1 %v1586_v44, %s5933_s1  ;;  %v5466_v44 = vld [vmem:[#allocation7 + $0x68] ss:$16 sps:$4 sm:$0xff]  }
 0x673   : > { %v5151_v45 = vpop.f32.mrf.mxu1 }
 0x674   : > { %v5471_v45 = vld [vmem:[#allocation7 + $0x44] ss:$16 sps:$4 sm:$0xff]  }
 0x675   : > { %v1589_v47 = vpop.f32.mrf.mxu1  ;;  %2118 = vmatprep.subr.bf16.mxu1 %v5471_v45  ;;  %v5516_v45 = vld [vmem:[#allocation9 + $0xc0] sm:$0xff]  }
 0x676   : > { %1597 = vrot.lane.b32.xlu0 %v1589_v47, %s5933_s1  ;;  %v5469_v47 = vld [vmem:[#allocation7 + $0x40] ss:$16 sps:$4 sm:$0xff]  }
 0x677   : > { %v5152_v48 = vpop.f32.mrf.mxu1  ;;  %2119 = vmatpush1.bf16.msra.mxu1 %v5469_v47  ;;  %v5518_v47 = vld [vmem:[#allocation9 + $0x80] sm:$0xff]  }
 0x678   : > { %v5472_v48 = vld [vmem:[#allocation7 + $0x48] ss:$16 sps:$4 sm:$0xff]   ;;  %2120 = vmatprep.subr.bf16.mxu1 %v5477_v49  ;;  %v1942_v49 = vsub.s32 3, %v6227_v4 }
 0x67b   : > { %2121 = vmatpush1.bf16.msra.mxu1 %v5475_v51 }
 0x6a5   : > { %v1718_v53 = vpop.f32.mrf.mxu1 }
 0x6a6   : > { %1727 = vrot.lane.b32.xlu1 %v1718_v53, %s5932_s30  ;;  %v5483_v53 = vld [vmem:[#allocation7 + $0x4] ss:$16 sps:$4 sm:$0xff]  }
 0x6a7   : > { %v5163_v54 = vpop.f32.mrf.mxu1  ;;  %2122 = vmatprep.subr.bf16.mxu1 %v5483_v53 }
 0x6a8   : > { %v5486_v54 = vld [vmem:[#allocation7 + $0xc] ss:$16 sps:$4 sm:$0xff]  }
 0x6a9   : > { %v1721_v55 = vpop.f32.mrf.mxu1 }
 0x6aa   : > { %1729 = vrot.lane.b32.xlu0 %v1721_v55, %s5932_s30  ;;  %v5481_v55 = vld [vmem:[#allocation7] ss:$16 sps:$4 sm:$0xff]  }
 0x6ab   : > { %v5164_v56 = vpop.f32.mrf.mxu1  ;;  %2123 = vmatpush1.bf16.msra.mxu1 %v5481_v55 }
 0x6ac   : > { %v5484_v56 = vld [vmem:[#allocation7 + $0x8] ss:$16 sps:$4 sm:$0xff]  }
 0x6dc   : > { %v1464_v57 = vpop.permute.xlu1 %1463 }
 0x6dd   : > { %1470 = vst.msk [vmem:[#allocation3] sm:$0xff] %vm1469_vm4, %v1464_v57 }
 0x6e0   : > { %v1466_v58 = vpop.permute.xlu0 %1465 }
 0x6e1   : > { %1471 = vst.msk [vmem:[#allocation3 + $0x8] sm:$0xff] %vm1469_vm4, %v1466_v58 }
 0x6e4   : > { %v1596_v59 = vpop.permute.xlu1 %1595 }
 0x6e5   : > { %1602 = vst.msk [vmem:[#allocation3] sm:$0xff] %vm1601_vm5, %v1596_v59 }
 0x6e8   : > { %v1598_v60 = vpop.permute.xlu0 %1597 }
 0x6e9   : > { %1603 = vst.msk [vmem:[#allocation3 + $0x8] sm:$0xff] %vm1601_vm5, %v1598_v60 }
 0x718   : > { %v1728_v61 = vpop.permute.xlu1 %1727 }
 0x719   : > { %1734 = vst.msk [vmem:[#allocation3] sm:$0xff] %vm1733_vm6, %v1728_v61 }
 0x71c   : > { %v1730_v62 = vpop.permute.xlu0 %1729 }
 0x71d   : > { %1735 = vst.msk [vmem:[#allocation3 + $0x8] sm:$0xff] %vm1733_vm6, %v1730_v62 }
 0x720   : > { %v1736_v2 = vld [vmem:[#allocation3] sm:$0xff] }
 0x724   : > { %v1737_v3 = vld [vmem:[#allocation3 + $0x8] sm:$0xff] }
 0x725   : > { %v1754_v6 = vpack.c.bf16 %v1737_v3, %v1736_v2 }
 0x727   : > { %5182 = vmatmul.mubr.bf16.vlgmr.msra.gmra.mxu0 %v1754_v6  ;;  %v4684_v6 = vld [vmem:[%s6748_s12] ss:$0 sm:$0xff] }
 0x728   : > { %2183 = vmatprep.mubr.bf16.mxu0 %v5931_v40  ;;  %2152 = vmatpush1.bf16.msra.mxu0 %v5442_v29  ;;  %v5490_v29 = vld [vmem:[#allocation9 + $0xb8] sm:$0xff]  }
 0x729   : > { %2153 = vmatprep.subr.bf16.mxu0 %v5450_v28  ;;  %v5501_v28 = vld [vmem:[#allocation9 + $0x20] sm:$0xff]  }
 0x72c   : > { %2154 = vmatpush1.bf16.msra.mxu0 %v5448_v31  ;;  %v5503_v31 = vld [vmem:[#allocation9 + $0x58] sm:$0xff]  }
 0x72d   : > { %2155 = vmatprep.subr.bf16.mxu0 %v5456_v33  ;;  %v5505_v33 = vld [vmem:[#allocation9 + $0x18] sm:$0xff]  }
 0x730   : > { %2156 = vmatpush1.bf16.msra.mxu0 %v5454_v35  ;;  %v5507_v35 = vld [vmem:[#allocation9 + $0x50] sm:$0xff]  }
 0x731   : > { %2157 = vmatprep.subr.bf16.mxu0 %v5462_v39  ;;  %v5511_v39 = vld [vmem:[#allocation9 + $0x48] sm:$0xff]  }
 0x734   : > { %2158 = vmatpush1.bf16.msra.mxu0 %v5460_v38  ;;  %v5510_v38 = vld [vmem:[#allocation9 + $0x90] sm:$0xff]  }
 0x735   : > { %2159 = vmatprep.subr.bf16.mxu0 %v5468_v42  ;;  %v5513_v42 = vld [vmem:[#allocation9 + $0x8] sm:$0xff]  }
 0x738   : > { %2160 = vmatpush1.bf16.msra.mxu0 %v5466_v44  ;;  %v5515_v44 = vld [vmem:[#allocation9 + $0x40] sm:$0xff]  }
 0x739   : > { %2161 = vmatprep.subr.bf16.mxu0 %v5474_v46  ;;  %v5517_v46 = vld [vmem:[#allocation9] sm:$0xff]  }
 0x73c   : > { %2162 = vmatpush1.bf16.msra.mxu0 %v5472_v48  ;;  %v1926_v48 = vld [vmem:[%s6751_s15] sm:$0xf] }
 0x73d   : > { %2163 = vmatprep.subr.bf16.mxu0 %v5480_v50  ;;  %v1931_v50 = vrot.slane %v1926_v48, %v6230_v5  ;;  %v1939_v51 = vrot.slane %v1926_v48, %v6241_v23  ;;  %v1943_v55 = vrot.slane %v1926_v48, %v1942_v49 }
 0x740   : > { %2164 = vmatpush1.bf16.msra.mxu0 %v5478_v52 }
 0x741   : > { %2165 = vmatprep.subr.bf16.mxu0 %v5486_v54  ;;  %v1935_v54 = vrot.slane %v1926_v48, %v6236_v7 }
 0x744   : > { %2166 = vmatpush1.bf16.msra.mxu0 %v5484_v56 }
 0x745   : > { %4967 = vmatprep.subr.bf16.mxu0 %v5488_v17 }
 0x7e7   : > { %v1844_v9 = vpop.f32.mrf.mxu0 }
 0x7e8   : > { %v1845_v10 = vadd.f32 %v4675_v8, %v1844_v9 }
 0x7e9   : > { %v5183_v11 = vpop.f32.mrf.mxu0 }
 0x7ea   : > { %v1851_v12 = vadd.f32 %v1845_v10, %v6217_v63  ;;  %v4685_v11 = vld [vmem:[%s6749_s13] ss:$0 sm:$0xff] }
 0x7eb   : > { %v1847_v13 = vpop.f32.mrf.mxu0 }
 0x7ec   : > { %v1848_v14 = vadd.f32 %v4675_v8, %v1847_v13  ;;  %1855 = vadd.xlane.f32.xlu1 %v1851_v12 }
 0x7ed   : > { %v5184_v15 = vpop.f32.mrf.mxu0 }
 0x7ee   : > { %v1852_v16 = vadd.f32 %v1848_v14, %v6219_v1 }
 0x7f0   : > { %1857 = vadd.xlane.f32.xlu0 %v1852_v16 }
 0x875   : > { %v1856_v20 = vpop.xlane.xlu1 %1855 }
 0x876   : > { %v1859_v21 = vmul.f32 0.0078125, %v1856_v20  ;;  %v5492_v20 = vld [vmem:[#allocation9 + $0xf0] sm:$0xff]  }
 0x878   : > { %v6371_v22 = vsub.f32 %v1851_v12, %v1859_v21  ;;  %v5493_v21 = vld [vmem:[#allocation9 + $0x30] sm:$0xff]  }
 0x879   : > { %v1858_v63 = vpop.xlane.xlu0 %1857 }
 0x87a   : > { %v1860_v24 = vmul.f32 0.0078125, %v1858_v63  ;;  %v1863_v25 = vmul.f32 %v6371_v22, %v6371_v22  ;;  %v5495_v63 = vld [vmem:[#allocation9 + $0x68] sm:$0xff]  }
 0x87c   : > { %v6375_v26 = vsub.f32 %v1852_v16, %v1860_v24  ;;  %1865 = vadd.xlane.f32.xlu0 %v1863_v25  ;;  %v5487_v16 = vld [vmem:[#allocation9 + $0x78] sm:$0xff]   ;;  %v5496_v24 = vld [vmem:[#allocation9 + $0xe8] sm:$0xff]  }
 0x87d   : > { %4945 = vmatprep.subr.bf16.mxu1 %v5487_v16  ;;  %v5497_v25 = vld [vmem:[#allocation9 + $0x28] sm:$0xff]  }
 0x87e   : > { %v1864_v1 = vmul.f32 %v6375_v26, %v6375_v26 }
 0x880   : > { %1867 = vadd.xlane.f32.xlu0 %v1864_v1  ;;  %v5499_v1 = vld [vmem:[#allocation9 + $0x60] sm:$0xff]  }
 0x905   : > { %v1866_v57 = vpop.xlane.xlu0 %1865 }
 0x906   : > { %v1869_v58 = vmul.f32 0.0078125, %v1866_v57 }
 0x908   : > { %v1871_v59 = vadd.f32 1e-12, %v1869_v58 }
 0x909   : > { %v1868_v60 = vpop.xlane.xlu0 %1867 }
 0x90a   : > { %5691 = vrsqrt.f32 %v1871_v59  ;;  %v1870_v61 = vmul.f32 0.0078125, %v1868_v60 }
 0x90c   : > { %v1872_v62 = vadd.f32 1e-12, %v1870_v61 }
 0x90e   : > { %5693 = vrsqrt.f32 %v1872_v62 }
 0x917   : > { %v5692_v2 = vpop.eup %5691 }
 0x918   : > { %v1875_v3 = vmul.f32 %v5692_v2, %v6371_v22  ;;  %v5494_v22 = vld [vmem:[#allocation9 + $0xb0] sm:$0xff]  }
 0x91a   : > { %v1883_v10 = vmul.f32 %v4684_v6, %v1875_v3 }
 0x91b   : > { %v5694_v8 = vpop.eup %5693 }
 0x91c   : > { %v1876_v9 = vmul.f32 %v5694_v8, %v6375_v26  ;;  %v6387_v13 = vadd.f32 %v4685_v11, %v1883_v10  ;;  %v5498_v26 = vld [vmem:[#allocation9 + $0xa8] sm:$0xff]  }
 0x91e   : > { %v1884_v12 = vmul.f32 %v4684_v6, %v1876_v9 }
 0x920   : > { %v6389_v14 = vadd.f32 %v4685_v11, %v1884_v12 }
 0x922   : > { %v1925_v15 = vpack.c.bf16 %v6389_v14, %v6387_v13 }
 0x924   : > { %2141 = vmatmul.mubr.bf16.vlgmr.msra.gmra.mxu1 %v1925_v15  ;;  %2184 = vmatmul.mubr.bf16.vlgmr.msra.gmra.mxu0 %v1925_v15 }
 0x925   : > { %4946 = vmatpush3.bf16.msra.mxu1 %v5489_v18  ;;  %4968 = vmatpush3.bf16.msra.mxu0 %v5490_v29 }
 0x926   : > { %4947 = vmatprep.subr.bf16.mxu1 %v5491_v19  ;;  %4969 = vmatprep.subr.bf16.mxu0 %v5492_v20 }
 0x929   : > { %4948 = vmatpush3.bf16.msra.mxu1 %v5493_v21  ;;  %4970 = vmatpush3.bf16.msra.mxu0 %v5494_v22 }
 0x92a   : > { %4949 = vmatprep.subr.bf16.mxu1 %v5495_v63  ;;  %4971 = vmatprep.subr.bf16.mxu0 %v5496_v24 }
 0x92d   : > { %4950 = vmatpush3.bf16.msra.mxu1 %v5497_v25  ;;  %4972 = vmatpush3.bf16.msra.mxu0 %v5498_v26 }
 0x92e   : > { %4951 = vmatprep.subr.bf16.mxu1 %v5499_v1  ;;  %4973 = vmatprep.subr.bf16.mxu0 %v5500_v27 }
 0x931   : > { %4952 = vmatpush3.bf16.msra.mxu1 %v5501_v28  ;;  %4974 = vmatpush3.bf16.msra.mxu0 %v5502_v30 }
 0x932   : > { %4953 = vmatprep.subr.bf16.mxu1 %v5503_v31  ;;  %4975 = vmatprep.subr.bf16.mxu0 %v5504_v32 }
 0x935   : > { %4954 = vmatpush3.bf16.msra.mxu1 %v5505_v33  ;;  %4976 = vmatpush3.bf16.msra.mxu0 %v5506_v34 }
 0x936   : > { %4955 = vmatprep.subr.bf16.mxu1 %v5507_v35  ;;  %4977 = vmatprep.subr.bf16.mxu0 %v5508_v36 }
 0x939   : > { %4956 = vmatpush3.bf16.msra.mxu1 %v5509_v37  ;;  %4978 = vmatpush3.bf16.msra.mxu0 %v5510_v38 }
 0x93a   : > { %4957 = vmatprep.subr.bf16.mxu1 %v5511_v39  ;;  %4979 = vmatprep.subr.bf16.mxu0 %v5512_v41 }
 0x93d   : > { %4958 = vmatpush3.bf16.msra.mxu1 %v5513_v42  ;;  %4980 = vmatpush3.bf16.msra.mxu0 %v5514_v43 }
 0x93e   : > { %4959 = vmatprep.subr.bf16.mxu1 %v5515_v44  ;;  %4981 = vmatprep.subr.bf16.mxu0 %v5516_v45 }
 0x941   : > { %4960 = vmatpush3.bf16.msra.mxu1 %v5517_v46  ;;  %4982 = vmatpush3.bf16.msra.mxu0 %v5518_v47 }
 0x942   : > { %5185 = vmatprep.subr.bf16.mxu0 %v5929_v0 }
 0x9e4   : > { %v2142_v52 = vpop.f32.mrf.mxu1  ;;  %v2185_v53 = vpop.f32.mrf.mxu0 }
 0x9e5   : > { %v2143_v56 = vadd.f32 %v2142_v52, %v1931_v50  ;;  %v2186_v57 = vadd.f32 %v2185_v53, %v1939_v51 }
 0x9e6   : > { %v2144_v58 = vpop.f32.mrf.mxu1  ;;  %v2187_v59 = vpop.f32.mrf.mxu0 }
 0x9e7   : > { %v2202_v60 = vmul.f32 0.70710677, %v2143_v56  ;;  %v2204_v61 = vmul.f32 0.70710677, %v2186_v57  ;;  %v2145_v62 = vadd.f32 %v2144_v58, %v1935_v54  ;;  %v2188_v2 = vadd.f32 %v2187_v59, %v1943_v55 }
 0x9e8   : > { %v2146_v3 = vpop.f32.mrf.mxu1  ;;  %v2189_v6 = vpop.f32.mrf.mxu0  ;;  %v2194_v1 = vmul.f32 0.5, %v2143_v56  ;;  %v2196_v46 = vmul.f32 0.5, %v2186_v57 }
 0x9e9   : > { %v2147_v8 = vadd.f32 %v2146_v3, %v1931_v50  ;;  %v2190_v9 = vadd.f32 %v2189_v6, %v1939_v51  ;;  %5695 = verf.f32 %v2202_v60  ;;  %v2203_v10 = vmul.f32 0.70710677, %v2145_v62 }
 0x9ea   : > { %v2148_v11 = vpop.f32.mrf.mxu1  ;;  %v2191_v12 = vpop.f32.mrf.mxu0  ;;  %5697 = verf.f32 %v2204_v61  ;;  %v2205_v15 = vmul.f32 0.70710677, %v2188_v2  ;;  %v2195_v27 = vmul.f32 0.5, %v2145_v62  ;;  %v2197_v42 = vmul.f32 0.5, %v2188_v2  ;;  %v4718_v61 = vld [vmem:[%s6753_s17] ss:$0 sm:$0xff] }
 0x9eb   : > { %v2206_v16 = vmul.f32 0.70710677, %v2147_v8  ;;  %5699 = verf.f32 %v2203_v10  ;;  %v2208_v17 = vmul.f32 0.70710677, %v2190_v9  ;;  %v2149_v18 = vadd.f32 %v2148_v11, %v1935_v54 }
 0x9ec   : > { %v2192_v29 = vadd.f32 %v2191_v12, %v1943_v55  ;;  %5701 = verf.f32 %v2205_v15  ;;  %v2198_v34 = vmul.f32 0.5, %v2147_v8  ;;  %v2200_v38 = vmul.f32 0.5, %v2190_v9 }
 0x9ed   : > { %5703 = verf.f32 %v2206_v16  ;;  %v2207_v19 = vmul.f32 0.70710677, %v2149_v18  ;;  %v2199_v39 = vmul.f32 0.5, %v2149_v18 }
 0x9ee   : > { %5705 = verf.f32 %v2208_v17  ;;  %v2209_v20 = vmul.f32 0.70710677, %v2192_v29  ;;  %v2201_v44 = vmul.f32 0.5, %v2192_v29 }
 0x9ef   : > { %5707 = verf.f32 %v2207_v19 }
 0x9f0   : > { %5709 = verf.f32 %v2209_v20 }
 0x9f6   : > { %v5696_v21 = vpop.eup %5695 }
 0x9f7   : > { %v5698_v22 = vpop.eup %5697  ;;  %v2218_v32 = vadd.f32 1.0, %v5696_v21  ;;  %v5519_v21 = vld [vmem:[#allocation4 + $0x168] ss:$12 sps:$4 sm:$0xff]  }
 0x9f8   : > { %v5700_v63 = vpop.eup %5699  ;;  %v2220_v37 = vadd.f32 1.0, %v5698_v22  ;;  %v5521_v22 = vld [vmem:[#allocation4 + $0x16c] ss:$12 sps:$4 sm:$0xff]  }
 0x9f9   : > { %v5702_v24 = vpop.eup %5701  ;;  %v2219_v28 = vadd.f32 1.0, %v5700_v63  ;;  %v2226_v51 = vmul.f32 %v2218_v32, %v2194_v1  ;;  %v5522_v63 = vld [vmem:[#allocation4 + $0x170] ss:$12 sps:$4 sm:$0xff]   ;;  %2805 = vmatprep.subr.bf16.mxu1 %v5521_v22  ;;  %v5526_v32 = vld [vmem:[#allocation4 + $0x158] ss:$12 sps:$4 sm:$0xff]  }
 0x9fa   : > { %v5704_v25 = vpop.eup %5703  ;;  %v2221_v33 = vadd.f32 1.0, %v5702_v24  ;;  %v2228_v54 = vmul.f32 %v2220_v37, %v2196_v46  ;;  %v5533_v37 = vld [vmem:[#allocation4 + $0x124] ss:$12 sps:$4 sm:$0xff]   ;;  %v5545_v46 = vld [vmem:[#allocation4 + $0xdc] ss:$12 sps:$4 sm:$0xff]  }
 0x9fb   : > { %v5706_v26 = vpop.eup %5705  ;;  %v2222_v30 = vadd.f32 1.0, %v5704_v25  ;;  %v2227_v47 = vmul.f32 %v2219_v28, %v2195_v27 }
 0x9fc   : > { %v5708_v31 = vpop.eup %5707  ;;  %v2224_v35 = vadd.f32 1.0, %v5706_v26  ;;  %v2229_v52 = vmul.f32 %v2221_v33, %v2197_v42  ;;  %v5529_v33 = vld [vmem:[#allocation4 + $0x13c] ss:$12 sps:$4 sm:$0xff]  }
 0x9fd   : > { %v5710_v36 = vpop.eup %5709  ;;  %v2223_v41 = vadd.f32 1.0, %v5708_v31  ;;  %v2230_v43 = vmul.f32 %v2222_v30, %v2198_v34  ;;  %v5525_v30 = vld [vmem:[#allocation4 + $0x154] ss:$12 sps:$4 sm:$0xff]   ;;  %v5523_v31 = vld [vmem:[#allocation4 + $0x150] ss:$12 sps:$4 sm:$0xff]  }
 0x9fe   : > { %v2225_v45 = vadd.f32 1.0, %v5710_v36  ;;  %v2232_v48 = vmul.f32 %v2224_v35, %v2200_v38  ;;  %v5527_v34 = vld [vmem:[#allocation4 + $0x138] ss:$12 sps:$4 sm:$0xff]   ;;  %v5530_v35 = vld [vmem:[#allocation4 + $0x140] ss:$12 sps:$4 sm:$0xff]  }
 0x9ff   : > { %v2231_v50 = vmul.f32 %v2223_v41, %v2199_v39  ;;  %v2298_v56 = vpack.c.bf16 %v2230_v43, %v2226_v51  ;;  %v5531_v36 = vld [vmem:[#allocation4 + $0x120] ss:$12 sps:$4 sm:$0xff]   ;;  %v5534_v38 = vld [vmem:[#allocation4 + $0x128] ss:$12 sps:$4 sm:$0xff]   ;;  %v5538_v42 = vld [vmem:[#allocation4 + $0x110] ss:$12 sps:$4 sm:$0xff]  }
 0xa00   : > { %v2233_v53 = vmul.f32 %v2225_v45, %v2201_v44  ;;  %v2300_v59 = vpack.c.bf16 %v2232_v48, %v2228_v54  ;;  %v5537_v39 = vld [vmem:[#allocation4 + $0x10c] ss:$12 sps:$4 sm:$0xff]   ;;  %v5535_v41 = vld [vmem:[#allocation4 + $0x108] ss:$12 sps:$4 sm:$0xff]   ;;  %v5539_v44 = vld [vmem:[#allocation4 + $0xf0] ss:$12 sps:$4 sm:$0xff]  }
 0xa01   : > { %v2299_v55 = vpack.c.bf16 %v2231_v50, %v2227_v47  ;;  %v5541_v43 = vld [vmem:[#allocation4 + $0xf4] ss:$12 sps:$4 sm:$0xff]   ;;  %v5542_v45 = vld [vmem:[#allocation4 + $0xf8] ss:$12 sps:$4 sm:$0xff]  }
 0xa02   : > { %v2301_v58 = vpack.c.bf16 %v2233_v53, %v2229_v52  ;;  %v5543_v47 = vld [vmem:[#allocation4 + $0xd8] ss:$12 sps:$4 sm:$0xff]   ;;  %v5546_v48 = vld [vmem:[#allocation4 + $0xe0] ss:$12 sps:$4 sm:$0xff]   ;;  %v5550_v52 = vld [vmem:[#allocation4 + $0xc8] ss:$12 sps:$4 sm:$0xff]  }
 0xa03   : > { %2533 = vmatprep.mubr.bf16.mxu1 %v2299_v55  ;;  %v5549_v50 = vld [vmem:[#allocation4 + $0xc4] ss:$12 sps:$4 sm:$0xff]   ;;  %v5547_v51 = vld [vmem:[#allocation4 + $0xc0] ss:$12 sps:$4 sm:$0xff]  }
 0xa04   : > { %2574 = vmatprep.mubr.bf16.mxu0 %v2301_v58  ;;  %2534 = vmatmul.mubr.bf16.vlgmr.msra.gmra.mxu1 %v2298_v56 }
 0xa05   : > { %2575 = vmatmul.mubr.bf16.vlgmr.msra.gmra.mxu0 %v2300_v59  ;;  %2837 = vmatprep.mubr.bf16.mxu1 %v5931_v40 }
 0xa06   : > { %5201 = vmatprep.mubr.msk.bf16.mxu0 %vm5930_vm0, %v5929_v0  ;;  %5186 = vmatpush3.bf16.msra.mxu0 %v5522_v63 }
 0xa07   : > { %2806 = vmatpush1.bf16.msra.mxu1 %v5519_v21  ;;  %5187 = vmatprep.subr.bf16.mxu0 %v5929_v0 }
 0xa08   : > { %2807 = vmatprep.subr.bf16.mxu1 %v5525_v30 }
 0xa0a   : > { %5188 = vmatpush3.bf16.msra.mxu0 %v5526_v32 }
 0xa0b   : > { %2808 = vmatpush1.bf16.msra.mxu1 %v5523_v31  ;;  %5189 = vmatprep.subr.bf16.mxu0 %v5929_v0 }
 0xa0c   : > { %2809 = vmatprep.subr.bf16.mxu1 %v5529_v33 }
 0xa0e   : > { %5190 = vmatpush3.bf16.msra.mxu0 %v5530_v35 }
 0xa0f   : > { %2810 = vmatpush1.bf16.msra.mxu1 %v5527_v34  ;;  %5191 = vmatprep.subr.bf16.mxu0 %v5929_v0  ;;  %v6462_v34 = vld [vmem:[%s6278_s24] ss:$0 sm:$0xff]  ;;  %s4903_s24 = sshll.u32 %s6082_s6, 4  ;;  %s5935_s6 = smov [#allocation10]  }
 0xa10   : > { %2811 = vmatprep.subr.bf16.mxu1 %v5533_v37  ;;  %s5854_s4 = sshll.u32 %s5935_s6, 4  ;;  %s5855_s4 = int_to_ptr.vmem [resolvable:$false] %s5854_s4 }
 0xa11   : > { %s5856_s25 = scalar_lea.vmem %s5855_s4, 32  ;;  %p5857_p6 = scmp.lt.s32.totalorder %s6697_s2, %s5855_s4 }
 0xa12   : > { %5192 = vmatpush3.bf16.msra.mxu0 %v5534_v38  ;;  %p5858_p9 = scmp.lt.s32.totalorder %s5856_s25, %s5850_s14 }
 0xa13   : > { %2812 = vmatpush1.bf16.msra.mxu1 %v5531_v36  ;;  %5193 = vmatprep.subr.bf16.mxu0 %v5929_v0 }
 0xa14   : > { %2813 = vmatprep.subr.bf16.mxu1 %v5537_v39  ;;  %p5859_p8 = por %p5858_p9, %p5857_p6 }
 0xa16   : > { %5194 = vmatpush3.bf16.msra.mxu0 %v5538_v42  ;;  %p5860_p11 = pnand %p5859_p8, %p5853_p7 }
 0xa17   : > { %2814 = vmatpush1.bf16.msra.mxu1 %v5535_v41  ;;  %5195 = vmatprep.subr.bf16.mxu0 %v5929_v0 }
 0xa18   : > { %2815 = vmatprep.subr.bf16.mxu1 %v5541_v43 }
 0xa1a   : > { %5196 = vmatpush3.bf16.msra.mxu0 %v5542_v45 }
 0xa1b   : > { %2816 = vmatpush1.bf16.msra.mxu1 %v5539_v44  ;;  %5197 = vmatprep.subr.bf16.mxu0 %v5929_v0 }
 0xa1c   : > { %2817 = vmatprep.subr.bf16.mxu1 %v5545_v46 }
 0xa1e   : > { %5198 = vmatpush3.bf16.msra.mxu0 %v5546_v48 }
 0xa1f   : > { %2818 = vmatpush1.bf16.msra.mxu1 %v5543_v47  ;;  %5199 = vmatprep.subr.bf16.mxu0 %v5929_v0 }
 0xa20   : > { %2819 = vmatprep.subr.bf16.mxu1 %v5549_v50 }
 0xa22   : > { %5200 = vmatpush3.bf16.msra.mxu0 %v5550_v52 }
 0xa23   : > { %2820 = vmatpush1.bf16.msra.mxu1 %v5547_v51  ;;  %5229 = vmatprep.subr.bf16.mxu0 %v5929_v0 }
 0xa24   : > { %5205 = vmatprep.subr.bf16.mxu1 %v5929_v0 }
 0xac4   : > { %v4961_v57 = vpop.f32.mrf.mxu1 }
 0xac5   : > { %v4983_v60 = vpop.f32.mrf.mxu0 }
 0xac6   : > { %v4962_v62 = vpop.f32.mrf.mxu1 }
 0xac7   : > { %v4963_v2 = vadd.f32 %v4962_v62, %v4961_v57  ;;  %v4984_v3 = vpop.f32.mrf.mxu0 }
 0xac8   : > { %v4964_v6 = vpop.f32.mrf.mxu1  ;;  %v4985_v9 = vadd.f32 %v4984_v3, %v4983_v60 }
 0xac9   : > { %v2536_v8 = vadd.f32 %v4963_v2, %v4718_v61  ;;  %v4986_v10 = vpop.f32.mrf.mxu0 }
 0xaca   : > { %v4965_v11 = vpop.f32.mrf.mxu1 }
 0xacb   : > { %v2577_v12 = vadd.f32 %v4985_v9, %v2536_v8  ;;  %v4966_v15 = vadd.f32 %v4965_v11, %v4964_v6  ;;  %v4987_v16 = vpop.f32.mrf.mxu0  ;;  %v4752_v6 = vld [vmem:[%s6755_s19] ss:$0 sm:$0xff] }
 0xacc   : > { %v4988_v18 = vadd.f32 %v4987_v16, %v4986_v10  ;;  %v4753_v16 = vld [vmem:[%s6745_s9 + $0x3] sm:$0x7] }
 0xacd   : > { %v2539_v17 = vadd.f32 %v4966_v15, %v4718_v61  ;;  %v2583_v29 = vadd.f32 %v2577_v12, %v6387_v13  ;;  %v4751_v61 = vld [vmem:[%s6754_s18] ss:$0 sm:$0xff] }
 0xacf   : > { %v2580_v19 = vadd.f32 %v4988_v18, %v2539_v17  ;;  %2587 = vadd.xlane.f32.xlu1 %v2583_v29 }
 0xad1   : > { %v2584_v20 = vadd.f32 %v2580_v19, %v6389_v14 }
 0xad3   : > { %2589 = vadd.xlane.f32.xlu0 %v2584_v20 }
 0xb58   : > { %v2588_v24 = vpop.xlane.xlu1 %2587 }
 0xb59   : > { %v2591_v25 = vmul.f32 0.0078125, %v2588_v24 }
 0xb5b   : > { %v6412_v26 = vsub.f32 %v2583_v29, %v2591_v25  ;;  %v2669_v29 = vrot.slane %v4753_v16, %v6236_v7 }
 0xb5c   : > { %v2590_v1 = vpop.xlane.xlu0 %2589 }
 0xb5d   : > { %v2592_v27 = vmul.f32 0.0078125, %v2590_v1  ;;  %v2595_v13 = vmul.f32 %v6412_v26, %v6412_v26 }
 0xb5f   : > { %v6416_v28 = vsub.f32 %v2584_v20, %v2592_v27  ;;  %2597 = vadd.xlane.f32.xlu1 %v2595_v13  ;;  %v2673_v27 = vrot.slane %v4753_v16, %v6241_v23 }
 0xb61   : > { %v2596_v14 = vmul.f32 %v6416_v28, %v6416_v28 }
 0xb63   : > { %2599 = vadd.xlane.f32.xlu0 %v2596_v14 }
 0xbe8   : > { %v2598_v53 = vpop.xlane.xlu1 %2597 }
 0xbe9   : > { %v2601_v54 = vmul.f32 0.0078125, %v2598_v53 }
 0xbeb   : > { %v2603_v55 = vadd.f32 1e-12, %v2601_v54 }
 0xbec   : > { %v2600_v56 = vpop.xlane.xlu0 %2599 }
 0xbed   : > { %5711 = vrsqrt.f32 %v2603_v55  ;;  %v2602_v58 = vmul.f32 0.0078125, %v2600_v56 }
 0xbef   : > { %v2604_v59 = vadd.f32 1e-12, %v2602_v58 }
 0xbf1   : > { %5713 = vrsqrt.f32 %v2604_v59 }
 0xbfa   : > { %v5712_v57 = vpop.eup %5711 }
 0xbfb   : > { %v2607_v60 = vmul.f32 %v5712_v57, %v6412_v26  ;;  %v2665_v26 = vrot.slane %v4753_v16, %v6230_v5 }
 0xbfd   : > { %v2615_v3 = vmul.f32 %v4751_v61, %v2607_v60 }
 0xbfe   : > { %v5714_v62 = vpop.eup %5713 }
 0xbff   : > { %v2608_v2 = vmul.f32 %v5714_v62, %v6416_v28  ;;  %v6436_v9 = vadd.f32 %v4752_v6, %v2615_v3 }
 0xc01   : > { %v2616_v8 = vmul.f32 %v4751_v61, %v2608_v2 }
 0xc03   : > { %v6438_v10 = vadd.f32 %v4752_v6, %v2616_v8 }
 0xc05   : > { %v2658_v11 = vpack.c.bf16 %v6438_v10, %v6436_v9 }
 0xc07   : > { %2838 = vmatmul.mubr.bf16.vlgmr.msra.gmra.mxu1 %v2658_v11  ;;  %5202 = vmatmul.mubr.bf16.vlgmr.msra.gmra.mxu0 %v2658_v11 }
 0xc08   : > { %5207 = vmatprep.mubr.msk.bf16.mxu1 %vm5930_vm0, %v5929_v0  ;;  %5231 = vmatprep.mubr.msk.bf16.mxu0 %vm5930_vm0, %v5929_v0 }
 0xcc7   : > { %v2839_v12 = vpop.f32.mrf.mxu1  ;;  %v2882_v15 = vpop.f32.mrf.mxu0 }
 0xcc8   : > { %v2840_v14 = vadd.f32 %v2839_v12, %v2665_v26  ;;  %v2883_v30 = vadd.f32 %v2882_v15, %v2673_v27 }
 0xcc9   : > { %v2841_v17 = vpop.f32.mrf.mxu1  ;;  %v5203_v18 = vpop.f32.mrf.mxu0 }
 0xcca   : > { %v2842_v63 = vadd.f32 %v2841_v17, %v2669_v29 }
 0xccb   : > { %v2843_v19 = vpop.f32.mrf.mxu1  ;;  %v2885_v20 = vpop.f32.mrf.mxu0 }
 0xccc   : > { %v2844_v13 = vadd.f32 %v2843_v19, %v2665_v26  ;;  %v2886_v28 = vadd.f32 %v2885_v20, %v2673_v27 }
 0xccd   : > { %v2845_v21 = vpop.f32.mrf.mxu1  ;;  %v5204_v22 = vpop.f32.mrf.mxu0 }
 0xcce   : > { %v2846_v24 = vadd.f32 %v2845_v21, %v2669_v29  ;;  %v2889_v31 = vpack.c.bf16 %v2844_v13, %v2840_v14  ;;  %v6454_v32 = vpack.c.bf16 %v2886_v28, %v2883_v30 }
 0xcd0   : > { %v2890_v25 = vpack.c.bf16 %v2846_v24, %v2842_v63 }
 0xcd2   : > { %v2896_v1 = vsel %vm1219_vm2, %v2890_v25, 0 }
 0xcd3   : > { %5206 = vmatpush3.bf16.xpose.msra.mxu1 %v2896_v1 }
 0xcd4   : > { %5211 = vmatprep.subr.bf16.mxu1 %v5929_v0 }
 0xcda   : > { %5208 = vmatmul.mubr.msk.bf16.vlgmr.msra.gmra.mxu1 %vm1219_vm2, %v2889_v31 }
 0xcdb   : > { %5212 = vmatpush3.bf16.msra.mxu1 %v6454_v32  ;;  %5213 = vmatprep.mubr.msk.bf16.mxu1 %vm5930_vm0, %v5929_v0 }
 0xcdc   : > { %5217 = vmatprep.subr.bf16.mxu1 %v5929_v0 }
 0xd9a   : > { %v2932_v33 = vpop.f32.mrf.mxu1 }
 0xd9b   : > { %v2933_v35 = vadd.f32 %v6462_v34, %v2932_v33 }
 0xd9c   : > { %v5209_v36 = vpop.f32.mrf.mxu1 }
 0xd9d   : > { %v2939_v37 = vsel %vm1267_vm3, %v2933_v35, -inf }
 0xd9e   : > { %2940 = vmax.xlane.f32.xlu1 %v2939_v37  ;;  %v2935_v38 = vpop.f32.mrf.mxu1 }
 0xd9f   : > { %v2936_v39 = vadd.f32 %v6462_v34, %v2935_v38 }
 0xda0   : > { %v5210_v41 = vpop.f32.mrf.mxu1 }
 0xda1   : > { %v2942_v42 = vsel %vm1267_vm3, %v2936_v39, -inf }
 0xda2   : > { %2943 = vmax.xlane.f32.xlu0 %v2942_v42 }
 0xe27   : > { %v2941_v43 = vpop.xlane.xlu1 %2940 }
 0xe28   : > { %v2945_v44 = vsub.f32 %v2933_v35, %v2941_v43 }
 0xe2a   : > { %v2947_v45 = vmul.f32 1.442695, %v2945_v44 }
 0xe2b   : > { %v2944_v46 = vpop.xlane.xlu0 %2943 }
 0xe2c   : > { %5715 = vpow2.f32 %v2947_v45  ;;  %v2946_v47 = vsub.f32 %v2936_v39, %v2944_v46 }
 0xe2e   : > { %v2949_v48 = vmul.f32 1.442695, %v2946_v47 }
 0xe30   : > { %5717 = vpow2.f32 %v2949_v48 }
 0xe39   : > { %v5716_v50 = vpop.eup %5715 }
 0xe3a   : > { %v2951_v51 = vsel %vm1267_vm3, %v5716_v50, 0.0 }
 0xe3b   : > { %2952 = vadd.xlane.f32.xlu1 %v2951_v51 }
 0xe3d   : > { %v5718_v52 = vpop.eup %5717 }
 0xe3e   : > { %v2954_v53 = vsel %vm1267_vm3, %v5718_v52, 0.0 }
 0xe3f   : > { %2955 = vadd.xlane.f32.xlu0 %v2954_v53 }
 0xe4c   : > { %3012 = vrot.lane.b32.xlu1 %v2890_v25, %s5932_s30 }
 0xe50   : > { %3144 = vrot.lane.b32.xlu1 %v2890_v25, %s5933_s1 }
 0xe54   : > { %3142 = vrot.lane.b32.xlu1 %v2889_v31, %s5933_s1 }
 0xe55   : > { %3009 = vrot.lane.b32.xlu0 %v2889_v31, %s5932_s30 }
 0xe58   : > { %3275 = vrot.lane.b32.xlu1 %v2890_v25, %s5934_s16 }
 0xe59   : > { %3273 = vrot.lane.b32.xlu0 %v2889_v31, %s5934_s16 }
 0xec4   : > { %v2953_v54 = vpop.xlane.xlu1 %2952 }
 0xec5   : > { %5719 = vrcp.f32 %v2953_v54 }
 0xec8   : > { %v3013_v55 = vpop.permute.xlu1 %3012  ;;  %v2956_v56 = vpop.xlane.xlu0 %2955 }
 0xec9   : > { %5721 = vrcp.f32 %v2956_v56  ;;  %v3018_v12 = vsel %vm1219_vm2, %v3013_v55, 0 }
 0xecc   : > { %v3145_v58 = vpop.permute.xlu1 %3144  ;;  %v3010_v3 = vpop.permute.xlu0 %3009 }
 0xecd   : > { %v3150_v59 = vsel %vm1219_vm2, %v3145_v58, 0 }
 0xece   : > { %5230 = vmatpush3.bf16.xpose.msra.mxu0 %v3150_v59 }
 0xecf   : > { %5241 = vmatprep.subr.bf16.mxu0 %v5929_v0 }
 0xed0   : > { %v3143_v57 = vpop.permute.xlu1 %3142  ;;  %v3274_v15 = vpop.permute.xlu0 %3273 }
 0xed2   : > { %v5720_v60 = vpop.eup %5719 }
 0xed3   : > { %v2959_v6 = vmul.f32 %v5720_v60, %v5716_v50 }
 0xed4   : > { %v3276_v61 = vpop.permute.xlu1 %3275 }
 0xed5   : > { %v3281_v62 = vsel %vm1219_vm2, %v3276_v61, 0  ;;  %5232 = vmatmul.mubr.msk.bf16.vlgmr.msra.gmra.mxu0 %vm1219_vm2, %v3143_v57 }
 0xed6   : > { %v5722_v2 = vpop.eup %5721  ;;  %5242 = vmatpush3.bf16.xpose.msra.mxu0 %v3281_v62  ;;  %5243 = vmatprep.mubr.msk.bf16.mxu0 %vm5930_vm0, %v5929_v0 }
 0xed7   : > { %v2960_v8 = vmul.f32 %v5722_v2, %v5718_v52  ;;  %5253 = vmatprep.subr.bf16.mxu0 %v5929_v0 }
 0xed9   : > { %v2961_v11 = vpack.c.bf16 %v2960_v8, %v2959_v6 }
 0xedb   : > { %5214 = vmatmul.mubr.msk.bf16.vlgmr.msra.gmra.mxu1 %vm1267_vm3, %v2961_v11 }
 0xedc   : > { %5218 = vmatpush3.bf16.xpose.msra.mxu1 %v3018_v12  ;;  %5219 = vmatprep.mubr.msk.bf16.mxu1 %vm5930_vm0, %v5929_v0 }
 0xedd   : > { %5244 = vmatmul.mubr.msk.bf16.vlgmr.msra.gmra.mxu0 %vm1219_vm2, %v3274_v15  ;;  %5223 = vmatprep.subr.bf16.mxu1 %v5929_v0 }
 0xede   : > { %5269 = vmatprep.mubr.msk.bf16.mxu0 %vm5930_vm0, %v5929_v0 }
 0xee3   : > { %5220 = vmatmul.mubr.msk.bf16.vlgmr.msra.gmra.mxu1 %vm1219_vm2, %v3010_v3 }
 0xee4   : > { %5225 = vmatprep.mubr.msk.bf16.mxu1 %vm5930_vm0, %v5929_v0 }
 0xf95   : > { %v3186_v16 = vpop.f32.mrf.mxu0 }
 0xf96   : > { %v3187_v35 = vadd.f32 %v6462_v34, %v3186_v16 }
 0xf97   : > { %v5233_v17 = vpop.f32.mrf.mxu0 }
 0xf98   : > { %v3193_v39 = vsel %vm1267_vm3, %v3187_v35, -inf }
 0xf99   : > { %v3189_v18 = vpop.f32.mrf.mxu0 }
 0xf9a   : > { %v3190_v38 = vadd.f32 %v6462_v34, %v3189_v18 }
 0xf9b   : > { %v2999_v29 = vpop.f32.mrf.mxu1  ;;  %v5234_v19 = vpop.f32.mrf.mxu0 }
 0xf9c   : > { %3006 = vst.msk [vmem:[#allocation3] sm:$0xff] %vm1219_vm2, %v2999_v29  ;;  %v3196_v42 = vsel %vm1267_vm3, %v3190_v38, -inf }
 0xf9d   : > { %v5215_v20 = vpop.f32.mrf.mxu1  ;;  %v3317_v21 = vpop.f32.mrf.mxu0 }
 0xf9e   : > { %v3318_v28 = vadd.f32 %v6462_v34, %v3317_v21 }
 0xf9f   : > { %v3002_v22 = vpop.f32.mrf.mxu1  ;;  %v5245_v63 = vpop.f32.mrf.mxu0 }
 0xfa0   : > { %3007 = vst.msk [vmem:[#allocation3 + $0x8] sm:$0xff] %vm1219_vm2, %v3002_v22  ;;  %v3324_v36 = vsel %vm1267_vm3, %v3318_v28, -inf }
 0xfa1   : > { %v5216_v24 = vpop.f32.mrf.mxu1  ;;  %v3320_v25 = vpop.f32.mrf.mxu0 }
 0xfa2   : > { %v3321_v41 = vadd.f32 %v6462_v34, %v3320_v25 }
 0xfa3   : > { %v3054_v26 = vpop.f32.mrf.mxu1  ;;  %v5246_v1 = vpop.f32.mrf.mxu0 }
 0xfa4   : > { %v3055_v27 = vadd.f32 %v6462_v34, %v3054_v26  ;;  %v3327_v43 = vsel %vm1267_vm3, %v3321_v41, -inf }
 0xfa5   : > { %v5221_v13 = vpop.f32.mrf.mxu1 }
 0xfa6   : > { %v3061_v14 = vsel %vm1267_vm3, %v3055_v27, -inf }
 0xfa7   : > { %3062 = vmax.xlane.f32.xlu1 %v3061_v14  ;;  %v3057_v30 = vpop.f32.mrf.mxu1 }
 0xfa8   : > { %v3058_v31 = vadd.f32 %v6462_v34, %v3057_v30 }
 0xfa9   : > { %v5222_v33 = vpop.f32.mrf.mxu1 }
 0xfaa   : > { %v3064_v37 = vsel %vm1267_vm3, %v3058_v31, -inf }
 0xfab   : > { %3325 = vmax.xlane.f32.xlu1 %v3324_v36  ;;  %3065 = vmax.xlane.f32.xlu0 %v3064_v37 }
 0xfaf   : > { %3194 = vmax.xlane.f32.xlu0 %v3193_v39 }
 0xfb3   : > { %3197 = vmax.xlane.f32.xlu0 %v3196_v42 }
 0xfb7   : > { %3328 = vmax.xlane.f32.xlu0 %v3327_v43  ;;  %v5551_v43 = vld [vmem:[%s6746_s10 + $0x78] sm:$0xff]  }
 0xfb8   : > { %5254 = vmatpush3.bf16.msra.mxu0 %v5551_v43  ;;  %v5577_v43 = vld [vmem:[#allocation7 + $0x180] ss:$16 sps:$4 sm:$0xff]  }
 0xfb9   : > { %5255 = vmatprep.subr.bf16.mxu0 %v5929_v0 }
0x1030   : > { %v3063_v44 = vpop.xlane.xlu1 %3062 }
0x1031   : > { %v3067_v51 = vsub.f32 %v3055_v27, %v3063_v44  ;;  %v5552_v44 = vld [vmem:[%s6746_s10 + $0x70] sm:$0xff]  }
0x1032   : > { %5256 = vmatpush3.bf16.msra.mxu0 %v5552_v44  ;;  %v5579_v44 = vld [vmem:[#allocation7 + $0x184] ss:$16 sps:$4 sm:$0xff]  }
0x1033   : > { %v3069_v34 = vmul.f32 1.442695, %v3067_v51  ;;  %5257 = vmatprep.subr.bf16.mxu0 %v5929_v0 }
0x1034   : > { %v3326_v45 = vpop.xlane.xlu1 %3325  ;;  %v3066_v46 = vpop.xlane.xlu0 %3065 }
0x1035   : > { %v3330_v47 = vsub.f32 %v3318_v28, %v3326_v45  ;;  %v3068_v53 = vsub.f32 %v3058_v31, %v3066_v46  ;;  %v5553_v45 = vld [vmem:[%s6746_s10 + $0x68] sm:$0xff]   ;;  %v5554_v46 = vld [vmem:[%s6746_s10 + $0x60] sm:$0xff]  }
0x1036   : > { %5258 = vmatpush3.bf16.msra.mxu0 %v5553_v45  ;;  %v5580_v45 = vld [vmem:[#allocation7 + $0x188] ss:$16 sps:$4 sm:$0xff]  }
0x1037   : > { %v3332_v52 = vmul.f32 1.442695, %v3330_v47  ;;  %v3071_v58 = vmul.f32 1.442695, %v3068_v53  ;;  %5259 = vmatprep.subr.bf16.mxu0 %v5929_v0 }
0x1038   : > { %v3195_v48 = vpop.xlane.xlu0 %3194 }
0x1039   : > { %v3199_v50 = vsub.f32 %v3187_v35, %v3195_v48  ;;  %v5555_v48 = vld [vmem:[%s6746_s10 + $0x58] sm:$0xff]  }
0x103a   : > { %5260 = vmatpush3.bf16.msra.mxu0 %v5554_v46  ;;  %v5582_v46 = vld [vmem:[#allocation7 + $0x18c] ss:$16 sps:$4 sm:$0xff]  }
0x103b   : > { %v3201_v54 = vmul.f32 1.442695, %v3199_v50  ;;  %5261 = vmatprep.subr.bf16.mxu0 %v5929_v0 }
0x103c   : > { %v3198_v55 = vpop.xlane.xlu0 %3197 }
0x103d   : > { %5723 = vpow2.f32 %v3201_v54  ;;  %v3200_v56 = vsub.f32 %v3190_v38, %v3198_v55  ;;  %v5557_v55 = vld [vmem:[%s6746_s10 + $0x48] sm:$0xff]  }
0x103e   : > { %5725 = vpow2.f32 %v3332_v52  ;;  %5262 = vmatpush3.bf16.msra.mxu0 %v5555_v48  ;;  %v5556_v52 = vld [vmem:[%s6746_s10 + $0x50] sm:$0xff]   ;;  %v5588_v48 = vld [vmem:[#allocation7 + $0x16c] ss:$16 sps:$4 sm:$0xff]  }
0x103f   : > { %v3203_v59 = vmul.f32 1.442695, %v3200_v56  ;;  %5263 = vmatprep.subr.bf16.mxu0 %v5929_v0 }
0x1040   : > { %v3329_v57 = vpop.xlane.xlu0 %3328 }
0x1041   : > { %5727 = vpow2.f32 %v3203_v59  ;;  %v3331_v60 = vsub.f32 %v3321_v41, %v3329_v57 }
0x1042   : > { %5729 = vpow2.f32 %v3069_v34  ;;  %5264 = vmatpush3.bf16.msra.mxu0 %v5556_v52  ;;  %v5558_v34 = vld [vmem:[%s6746_s10 + $0x40] sm:$0xff]  }
0x1043   : > { %5731 = vpow2.f32 %v3071_v58  ;;  %v3334_v61 = vmul.f32 1.442695, %v3331_v60  ;;  %5265 = vmatprep.subr.bf16.mxu0 %v5929_v0  ;;  %v5591_v52 = vld [vmem:[#allocation7 + $0x144] ss:$16 sps:$4 sm:$0xff]  }
0x1045   : > { %5733 = vpow2.f32 %v3334_v61 }
0x1046   : > { %5266 = vmatpush3.bf16.msra.mxu0 %v5557_v55  ;;  %v5592_v55 = vld [vmem:[#allocation7 + $0x148] ss:$16 sps:$4 sm:$0xff]  }
0x1047   : > { %5267 = vmatprep.subr.bf16.mxu0 %v5929_v0 }
0x104a   : > { %v5724_v62 = vpop.eup %5723  ;;  %5268 = vmatpush3.bf16.msra.mxu0 %v5558_v34  ;;  %v5600_v34 = vld [vmem:[#allocation7 + $0x12c] ss:$16 sps:$4 sm:$0xff]  }
0x104b   : > { %v3205_v2 = vsel %vm1267_vm3, %v5724_v62, 0.0  ;;  %v5726_v3 = vpop.eup %5725 }
0x104c   : > { %3206 = vadd.xlane.f32.xlu1 %v3205_v2  ;;  %v3336_v11 = vsel %vm1267_vm3, %v5726_v3, 0.0 }
0x104e   : > { %v5728_v6 = vpop.eup %5727 }
0x104f   : > { %v5730_v8 = vpop.eup %5729  ;;  %v3208_v12 = vsel %vm1267_vm3, %v5728_v6, 0.0 }
0x1050   : > { %v5732_v15 = vpop.eup %5731  ;;  %3337 = vadd.xlane.f32.xlu1 %v3336_v11  ;;  %3209 = vadd.xlane.f32.xlu0 %v3208_v12  ;;  %v3073_v16 = vsel %vm1267_vm3, %v5730_v8, 0.0 }
0x1051   : > { %v3076_v17 = vsel %vm1267_vm3, %v5732_v15, 0.0 }
0x1052   : > { %v5734_v18 = vpop.eup %5733 }
0x1053   : > { %v3339_v29 = vsel %vm1267_vm3, %v5734_v18, 0.0 }
0x1054   : > { %3074 = vadd.xlane.f32.xlu1 %v3073_v16  ;;  %3077 = vadd.xlane.f32.xlu0 %v3076_v17 }
0x1058   : > { %3340 = vadd.xlane.f32.xlu0 %v3339_v29 }
0x1065   : > { %3085 = vrot.lane.b32.xlu1 %v6454_v32, %s5932_s30 }
0x1069   : > { %3347 = vrot.lane.b32.xlu1 %v6454_v32, %s5934_s16 }
0x106e   : > { %3216 = vrot.lane.b32.xlu0 %v6454_v32, %s5933_s1 }
0x10d5   : > { %v3207_v19 = vpop.xlane.xlu1 %3206 }
0x10d9   : > { %v3338_v20 = vpop.xlane.xlu1 %3337  ;;  %v3210_v21 = vpop.xlane.xlu0 %3209 }
0x10dd   : > { %v3075_v22 = vpop.xlane.xlu1 %3074  ;;  %v3078_v63 = vpop.xlane.xlu0 %3077 }
0x10de   : > { %5735 = vrcp.f32 %v3075_v22 }
0x10df   : > { %5737 = vrcp.f32 %v3078_v63 }
0x10e0   : > { %5739 = vrcp.f32 %v3210_v21 }
0x10e1   : > { %v3086_v24 = vpop.permute.xlu1 %3085  ;;  %5741 = vrcp.f32 %v3207_v19  ;;  %v3341_v25 = vpop.xlane.xlu0 %3340 }
0x10e2   : > { %5224 = vmatpush3.bf16.msra.mxu1 %v3086_v24  ;;  %5743 = vrcp.f32 %v3341_v25 }
0x10e3   : > { %5235 = vmatprep.subr.bf16.mxu1 %v5929_v0  ;;  %5745 = vrcp.f32 %v3338_v20 }
0x10e5   : > { %v3217_v14 = vpop.permute.xlu0 %3216  ;;  %v3348_v37 = vpop.permute.xlu1 %3347 }
0x10eb   : > { %v5736_v26 = vpop.eup %5735 }
0x10ec   : > { %v5738_v1 = vpop.eup %5737  ;;  %v3081_v27 = vmul.f32 %v5736_v26, %v5730_v8  ;;  %v5559_v26 = vld [vmem:[#allocation7 + $0x1e0] ss:$16 sps:$4 sm:$0xff]  }
0x10ed   : > { %v3082_v32 = vmul.f32 %v5738_v1, %v5732_v15  ;;  %v5740_v28 = vpop.eup %5739  ;;  %v5561_v1 = vld [vmem:[#allocation7 + $0x1e4] ss:$16 sps:$4 sm:$0xff]  }
0x10ee   : > { %v5742_v30 = vpop.eup %5741  ;;  %v3214_v31 = vmul.f32 %v5740_v28, %v5728_v6 }
0x10ef   : > { %v3083_v13 = vpack.c.bf16 %v3082_v32, %v3081_v27  ;;  %v3213_v33 = vmul.f32 %v5742_v30, %v5724_v62  ;;  %v5744_v36 = vpop.eup %5743  ;;  %v5562_v27 = vld [vmem:[#allocation7 + $0x1e8] ss:$16 sps:$4 sm:$0xff]  }
0x10f0   : > { %v5746_v38 = vpop.eup %5745  ;;  %v3345_v39 = vmul.f32 %v5744_v36, %v5734_v18  ;;  %v4803_v18 = vld [vmem:[%s6747_s11 + $0x1] ss:$0 sm:$0xff] }
0x10f1   : > { %5226 = vmatmul.mubr.msk.bf16.vlgmr.msra.gmra.mxu1 %vm1267_vm3, %v3083_v13  ;;  %v3215_v35 = vpack.c.bf16 %v3214_v31, %v3213_v33  ;;  %v3344_v41 = vmul.f32 %v5746_v38, %v5726_v3  ;;  %v5567_v33 = vld [vmem:[#allocation7 + $0x1c4] ss:$16 sps:$4 sm:$0xff]   ;;  %v5565_v36 = vld [vmem:[#allocation7 + $0x1c0] ss:$16 sps:$4 sm:$0xff]  }
0x10f2   : > { %5236 = vmatpush3.bf16.msra.mxu1 %v3217_v14  ;;  %5237 = vmatprep.mubr.msk.bf16.mxu1 %vm5930_vm0, %v5929_v0  ;;  %v5573_v38 = vld [vmem:[#allocation7 + $0x1a4] ss:$16 sps:$4 sm:$0xff]  }
0x10f3   : > { %5247 = vmatprep.subr.bf16.mxu1 %v5929_v0  ;;  %v3346_v42 = vpack.c.bf16 %v3345_v39, %v3344_v41  ;;  %v5576_v39 = vld [vmem:[#allocation7 + $0x1ac] ss:$16 sps:$4 sm:$0xff]   ;;  %v5571_v41 = vld [vmem:[#allocation7 + $0x1a0] ss:$16 sps:$4 sm:$0xff]  }
0x10f9   : > { %5238 = vmatmul.mubr.msk.bf16.vlgmr.msra.gmra.mxu1 %vm1267_vm3, %v3215_v35  ;;  %v5570_v35 = vld [vmem:[#allocation7 + $0x1cc] ss:$16 sps:$4 sm:$0xff]  }
0x10fa   : > { %5248 = vmatpush3.bf16.msra.mxu1 %v3348_v37  ;;  %5249 = vmatprep.mubr.msk.bf16.mxu1 %vm5930_vm0, %v5929_v0  ;;  %v5568_v37 = vld [vmem:[#allocation7 + $0x1c8] ss:$16 sps:$4 sm:$0xff]  }
0x10fb   : > { %3782 = vmatprep.subr.bf16.mxu1 %v5561_v1  ;;  %v5609_v1 = vld [vmem:[#allocation9 + $0x138] sm:$0xff]  }
0x1101   : > { %5250 = vmatmul.mubr.msk.bf16.vlgmr.msra.gmra.mxu1 %vm1267_vm3, %v3346_v42  ;;  %v5574_v42 = vld [vmem:[#allocation7 + $0x1a8] ss:$16 sps:$4 sm:$0xff]  }
0x1102   : > { %3814 = vmatprep.mubr.bf16.mxu1 %v5931_v40  ;;  %3783 = vmatpush1.bf16.msra.mxu1 %v5559_v26  ;;  %v5608_v26 = vld [vmem:[#allocation9 + $0x1f8] sm:$0xff]  }
0x1103   : > { %3784 = vmatprep.subr.bf16.mxu1 %v5567_v33  ;;  %v5620_v33 = vld [vmem:[#allocation9 + $0x1e0] sm:$0xff]  }
0x1106   : > { %3785 = vmatpush1.bf16.msra.mxu1 %v5565_v36  ;;  %v5622_v36 = vld [vmem:[#allocation9 + $0x1a0] sm:$0xff]  }
0x1107   : > { %3786 = vmatprep.subr.bf16.mxu1 %v5573_v38  ;;  %v5624_v38 = vld [vmem:[#allocation9 + $0x1d8] sm:$0xff]  }
0x110a   : > { %3787 = vmatpush1.bf16.msra.mxu1 %v5571_v41  ;;  %v5626_v41 = vld [vmem:[#allocation9 + $0x198] sm:$0xff]  }
0x110b   : > { %3788 = vmatprep.subr.bf16.mxu1 %v5579_v44  ;;  %v5629_v44 = vld [vmem:[#allocation9 + $0x110] sm:$0xff]  }
0x110e   : > { %3789 = vmatpush1.bf16.msra.mxu1 %v5577_v43  ;;  %v5628_v43 = vld [vmem:[#allocation9 + $0x1d0] sm:$0xff]  }
0x11b1   : > { %v3125_v47 = vpop.f32.mrf.mxu1 }
0x11b2   : > { %3134 = vrot.lane.b32.xlu1 %v3125_v47, %s5934_s16  ;;  %v5585_v47 = vld [vmem:[#allocation7 + $0x164] ss:$16 sps:$4 sm:$0xff]  }
0x11b3   : > { %v5227_v50 = vpop.f32.mrf.mxu1  ;;  %3790 = vmatprep.subr.bf16.mxu1 %v5585_v47  ;;  %v5632_v47 = vld [vmem:[#allocation9 + $0x1c8] sm:$0xff]  }
0x11b4   : > { %v5583_v50 = vld [vmem:[#allocation7 + $0x160] ss:$16 sps:$4 sm:$0xff]  }
0x11b5   : > { %v3128_v51 = vpop.f32.mrf.mxu1  ;;  %3791 = vmatpush1.bf16.msra.mxu1 %v5583_v50  ;;  %v5634_v50 = vld [vmem:[#allocation9 + $0x188] sm:$0xff]  }
0x11b6   : > { %3136 = vrot.lane.b32.xlu1 %v3128_v51, %s5934_s16  ;;  %v5586_v51 = vld [vmem:[#allocation7 + $0x168] ss:$16 sps:$4 sm:$0xff]   ;;  %3792 = vmatprep.subr.bf16.mxu1 %v5591_v52  ;;  %v5636_v52 = vld [vmem:[#allocation9 + $0x1c0] sm:$0xff]   ;;  %s4502_s16 = scalar_lea.sflag [#allocation6], %s794_s0 }
0x11b7   : > { %v5228_v53 = vpop.f32.mrf.mxu1 }
0x11b8   : > { %v5594_v53 = vld [vmem:[#allocation7 + $0x14c] ss:$16 sps:$4 sm:$0xff]  }
0x11b9   : > { %v3256_v54 = vpop.f32.mrf.mxu1 }
0x11ba   : > { %3265 = vrot.lane.b32.xlu0 %v3256_v54, %s5933_s1  ;;  %v5589_v54 = vld [vmem:[#allocation7 + $0x140] ss:$16 sps:$4 sm:$0xff]  }
0x11bb   : > { %v5239_v56 = vpop.f32.mrf.mxu1  ;;  %3793 = vmatpush1.bf16.msra.mxu1 %v5589_v54  ;;  %v5638_v54 = vld [vmem:[#allocation9 + $0x180] sm:$0xff]  }
0x11bc   : > { %v5597_v56 = vld [vmem:[#allocation7 + $0x124] ss:$16 sps:$4 sm:$0xff]  }
0x11bd   : > { %v3259_v58 = vpop.f32.mrf.mxu1  ;;  %3794 = vmatprep.subr.bf16.mxu1 %v5597_v56 }
0x11be   : > { %3267 = vrot.lane.b32.xlu1 %v3259_v58, %s5933_s1  ;;  %v5595_v58 = vld [vmem:[#allocation7 + $0x120] ss:$16 sps:$4 sm:$0xff]  }
0x11bf   : > { %v5240_v59 = vpop.f32.mrf.mxu1  ;;  %3795 = vmatpush1.bf16.msra.mxu1 %v5595_v58 }
0x11c0   : > { %v5598_v59 = vld [vmem:[#allocation7 + $0x128] ss:$16 sps:$4 sm:$0xff]  }
0x11c1   : > { %v3387_v57 = vpop.f32.mrf.mxu1 }
0x11c2   : > { %3396 = vrot.lane.b32.xlu0 %v3387_v57, %s5932_s30  ;;  %v5603_v57 = vld [vmem:[#allocation7 + $0x104] ss:$16 sps:$4 sm:$0xff]  }
0x11c3   : > { %v5251_v60 = vpop.f32.mrf.mxu1  ;;  %3796 = vmatprep.subr.bf16.mxu1 %v5603_v57 }
0x11c4   : > { %v5606_v60 = vld [vmem:[#allocation7 + $0x10c] ss:$16 sps:$4 sm:$0xff]  }
0x11c5   : > { %v3390_v61 = vpop.f32.mrf.mxu1 }
0x11c6   : > { %3398 = vrot.lane.b32.xlu1 %v3390_v61, %s5932_s30  ;;  %v5601_v61 = vld [vmem:[#allocation7 + $0x100] ss:$16 sps:$4 sm:$0xff]   ;;  %s6807_s30 = sld [smem:[#allocation31_spill]] }
0x11c7   : > { %v5252_v62 = vpop.f32.mrf.mxu1  ;;  %3797 = vmatpush1.bf16.msra.mxu1 %v5601_v61 }
0x11c8   : > { %v5604_v62 = vld [vmem:[#allocation7 + $0x108] ss:$16 sps:$4 sm:$0xff]  }
0x11cc   : > { %s6695_s1 = scalar_lea.hbm %s6807_s30, %s4903_s24 }
0x1224   : > { %v3135_v2 = vpop.permute.xlu1 %3134 }
0x1225   : > { %3140 = vst.msk [vmem:[#allocation3] sm:$0xff] %vm1469_vm4, %v3135_v2 }
0x1228   : > { %v3137_v3 = vpop.permute.xlu1 %3136 }
0x1229   : > { %3141 = vst.msk [vmem:[#allocation3 + $0x8] sm:$0xff] %vm1469_vm4, %v3137_v3 }
0x122c   : > { %v3266_v6 = vpop.permute.xlu0 %3265 }
0x122d   : > { %3271 = vst.msk [vmem:[#allocation3] sm:$0xff] %vm1601_vm5, %v3266_v6 }
0x1230   : > { %v3268_v8 = vpop.permute.xlu1 %3267 }
0x1231   : > { %3272 = vst.msk [vmem:[#allocation3 + $0x8] sm:$0xff] %vm1601_vm5, %v3268_v8 }
0x1234   : > { %v3397_v11 = vpop.permute.xlu0 %3396 }
0x1235   : > { %3402 = vst.msk [vmem:[#allocation3] sm:$0xff] %vm1733_vm6, %v3397_v11 }
0x1238   : > { %v3399_v12 = vpop.permute.xlu1 %3398 }
0x1239   : > { %3403 = vst.msk [vmem:[#allocation3 + $0x8] sm:$0xff] %vm1733_vm6, %v3399_v12 }
0x123c   : > { %v3404_v15 = vld [vmem:[#allocation3] sm:$0xff] }
0x1240   : > { %v3405_v16 = vld [vmem:[#allocation3 + $0x8] sm:$0xff] }
0x1241   : > { %v3423_v17 = vpack.c.bf16 %v3405_v16, %v3404_v15 }
0x1243   : > { %5270 = vmatmul.mubr.bf16.vlgmr.msra.gmra.mxu0 %v3423_v17  ;;  %v4814_v17 = vld [vmem:[%s6748_s12 + $0x1] ss:$0 sm:$0xff] }
0x1244   : > { %3857 = vmatprep.mubr.bf16.mxu0 %v5931_v40  ;;  %v5564_v40 = vld [vmem:[#allocation7 + $0x1ec] ss:$16 sps:$4 sm:$0xff]  }
0x1245   : > { %3825 = vmatprep.subr.bf16.mxu0 %v5564_v40  ;;  %v5611_v40 = vld [vmem:[#allocation9 + $0x170] sm:$0xff]  }
0x1246   : > { %3826 = vmatpush1.bf16.msra.mxu0 %v5562_v27  ;;  %v5610_v27 = vld [vmem:[#allocation9 + $0x1b8] sm:$0xff]  }
0x1247   : > { %3827 = vmatprep.subr.bf16.mxu0 %v5570_v35  ;;  %v5621_v35 = vld [vmem:[#allocation9 + $0x120] sm:$0xff]  }
0x124a   : > { %3828 = vmatpush1.bf16.msra.mxu0 %v5568_v37  ;;  %v5623_v37 = vld [vmem:[#allocation9 + $0x158] sm:$0xff]  }
0x124b   : > { %3829 = vmatprep.subr.bf16.mxu0 %v5576_v39  ;;  %v5625_v39 = vld [vmem:[#allocation9 + $0x118] sm:$0xff]  }
0x124e   : > { %3830 = vmatpush1.bf16.msra.mxu0 %v5574_v42  ;;  %v5627_v42 = vld [vmem:[#allocation9 + $0x150] sm:$0xff]  }
0x124f   : > { %3831 = vmatprep.subr.bf16.mxu0 %v5582_v46  ;;  %v5631_v46 = vld [vmem:[#allocation9 + $0x148] sm:$0xff]  }
0x1252   : > { %3832 = vmatpush1.bf16.msra.mxu0 %v5580_v45  ;;  %v5630_v45 = vld [vmem:[#allocation9 + $0x190] sm:$0xff]  }
0x1253   : > { %3833 = vmatprep.subr.bf16.mxu0 %v5588_v48  ;;  %v5633_v48 = vld [vmem:[#allocation9 + $0x108] sm:$0xff]  }
0x1256   : > { %3834 = vmatpush1.bf16.msra.mxu0 %v5586_v51  ;;  %v5635_v51 = vld [vmem:[#allocation9 + $0x140] sm:$0xff]  }
0x1257   : > { %3835 = vmatprep.subr.bf16.mxu0 %v5594_v53  ;;  %v5637_v53 = vld [vmem:[#allocation9 + $0x100] sm:$0xff]  }
0x125a   : > { %3836 = vmatpush1.bf16.msra.mxu0 %v5592_v55  ;;  %v4816_v55 = vld [vmem:[%s6751_s15 + $0x4] sm:$0xf] }
0x125b   : > { %3837 = vmatprep.subr.bf16.mxu0 %v5600_v34  ;;  %v3605_v56 = vrot.slane %v4816_v55, %v6230_v5  ;;  %v3613_v34 = vrot.slane %v4816_v55, %v6241_v23  ;;  %v3609_v57 = vrot.slane %v4816_v55, %v6236_v7 }
0x125e   : > { %3838 = vmatpush1.bf16.msra.mxu0 %v5598_v59 }
0x125f   : > { %3839 = vmatprep.subr.bf16.mxu0 %v5606_v60  ;;  %v3617_v60 = vrot.slane %v4816_v55, %v1942_v49 }
0x1262   : > { %3840 = vmatpush1.bf16.msra.mxu0 %v5604_v62 }
0x1263   : > { %5045 = vmatprep.subr.bf16.mxu0 %v5608_v26 }
0x1303   : > { %v3514_v29 = vpop.f32.mrf.mxu0 }
0x1304   : > { %v3515_v19 = vadd.f32 %v4803_v18, %v3514_v29 }
0x1305   : > { %v5271_v20 = vpop.f32.mrf.mxu0 }
0x1306   : > { %v3521_v21 = vadd.f32 %v3515_v19, %v6436_v9  ;;  %v4815_v20 = vld [vmem:[%s6749_s13 + $0x1] ss:$0 sm:$0xff] }
0x1307   : > { %v3517_v22 = vpop.f32.mrf.mxu0 }
0x1308   : > { %v3518_v63 = vadd.f32 %v4803_v18, %v3517_v22  ;;  %3527 = vadd.xlane.f32.xlu0 %v3521_v21 }
0x1309   : > { %v5272_v24 = vpop.f32.mrf.mxu0 }
0x130a   : > { %v3522_v25 = vadd.f32 %v3518_v63, %v6438_v10 }
0x130c   : > { %3529 = vadd.xlane.f32.xlu1 %v3522_v25 }
0x1391   : > { %v3528_v32 = vpop.xlane.xlu0 %3527 }
0x1392   : > { %v3531_v13 = vmul.f32 0.0078125, %v3528_v32  ;;  %v5612_v32 = vld [vmem:[#allocation9 + $0x1f0] sm:$0xff]  }
0x1394   : > { %v6579_v28 = vsub.f32 %v3521_v21, %v3531_v13  ;;  %v5613_v13 = vld [vmem:[#allocation9 + $0x130] sm:$0xff]  }
0x1395   : > { %v3530_v9 = vpop.xlane.xlu1 %3529 }
0x1396   : > { %v3532_v14 = vmul.f32 0.0078125, %v3530_v9  ;;  %v3535_v30 = vmul.f32 %v6579_v28, %v6579_v28  ;;  %v5615_v9 = vld [vmem:[#allocation9 + $0x168] sm:$0xff]  }
0x1398   : > { %v6583_v31 = vsub.f32 %v3522_v25, %v3532_v14  ;;  %3537 = vadd.xlane.f32.xlu0 %v3535_v30  ;;  %v5607_v25 = vld [vmem:[#allocation9 + $0x178] sm:$0xff]   ;;  %v5616_v14 = vld [vmem:[#allocation9 + $0x1e8] sm:$0xff]  }
0x1399   : > { %5023 = vmatprep.subr.bf16.mxu1 %v5607_v25  ;;  %v5617_v30 = vld [vmem:[#allocation9 + $0x128] sm:$0xff]  }
0x139a   : > { %v3536_v10 = vmul.f32 %v6583_v31, %v6583_v31 }
0x139c   : > { %3539 = vadd.xlane.f32.xlu0 %v3536_v10  ;;  %v5619_v10 = vld [vmem:[#allocation9 + $0x160] sm:$0xff]  }
0x1421   : > { %v3538_v2 = vpop.xlane.xlu0 %3537 }
0x1422   : > { %v3541_v3 = vmul.f32 0.0078125, %v3538_v2 }
0x1424   : > { %v3543_v6 = vadd.f32 1e-12, %v3541_v3 }
0x1425   : > { %v3540_v8 = vpop.xlane.xlu0 %3539 }
0x1426   : > { %5747 = vrsqrt.f32 %v3543_v6  ;;  %v3542_v11 = vmul.f32 0.0078125, %v3540_v8 }
0x1428   : > { %v3544_v12 = vadd.f32 1e-12, %v3542_v11 }
0x142a   : > { %5749 = vrsqrt.f32 %v3544_v12 }
0x1433   : > { %v5748_v15 = vpop.eup %5747 }
0x1434   : > { %v3547_v16 = vmul.f32 %v5748_v15, %v6579_v28  ;;  %v5614_v28 = vld [vmem:[#allocation9 + $0x1b0] sm:$0xff]  }
0x1436   : > { %v3555_v19 = vmul.f32 %v4814_v17, %v3547_v16 }
0x1437   : > { %v5750_v18 = vpop.eup %5749 }
0x1438   : > { %v3548_v29 = vmul.f32 %v5750_v18, %v6583_v31  ;;  %v6595_v22 = vadd.f32 %v4815_v20, %v3555_v19  ;;  %v5618_v31 = vld [vmem:[#allocation9 + $0x1a8] sm:$0xff]  }
0x143a   : > { %v3556_v21 = vmul.f32 %v4814_v17, %v3548_v29 }
0x143c   : > { %v3564_v63 = vadd.f32 %v4815_v20, %v3556_v21 }
0x143e   : > { %v3598_v24 = vpack.c.bf16 %v3564_v63, %v6595_v22 }
0x1440   : > { %3815 = vmatmul.mubr.bf16.vlgmr.msra.gmra.mxu1 %v3598_v24  ;;  %3858 = vmatmul.mubr.bf16.vlgmr.msra.gmra.mxu0 %v3598_v24 }
0x1441   : > { %5024 = vmatpush3.bf16.msra.mxu1 %v5609_v1  ;;  %5046 = vmatpush3.bf16.msra.mxu0 %v5610_v27 }
0x1442   : > { %5025 = vmatprep.subr.bf16.mxu1 %v5611_v40  ;;  %5047 = vmatprep.subr.bf16.mxu0 %v5612_v32 }
0x1445   : > { %5026 = vmatpush3.bf16.msra.mxu1 %v5613_v13  ;;  %5048 = vmatpush3.bf16.msra.mxu0 %v5614_v28 }
0x1446   : > { %5027 = vmatprep.subr.bf16.mxu1 %v5615_v9  ;;  %5049 = vmatprep.subr.bf16.mxu0 %v5616_v14 }
0x1449   : > { %5028 = vmatpush3.bf16.msra.mxu1 %v5617_v30  ;;  %5050 = vmatpush3.bf16.msra.mxu0 %v5618_v31 }
0x144a   : > { %5029 = vmatprep.subr.bf16.mxu1 %v5619_v10  ;;  %5051 = vmatprep.subr.bf16.mxu0 %v5620_v33 }
0x144d   : > { %5030 = vmatpush3.bf16.msra.mxu1 %v5621_v35  ;;  %5052 = vmatpush3.bf16.msra.mxu0 %v5622_v36 }
0x144e   : > { %5031 = vmatprep.subr.bf16.mxu1 %v5623_v37  ;;  %5053 = vmatprep.subr.bf16.mxu0 %v5624_v38 }
0x1451   : > { %5032 = vmatpush3.bf16.msra.mxu1 %v5625_v39  ;;  %5054 = vmatpush3.bf16.msra.mxu0 %v5626_v41 }
0x1452   : > { %5033 = vmatprep.subr.bf16.mxu1 %v5627_v42  ;;  %5055 = vmatprep.subr.bf16.mxu0 %v5628_v43 }
0x1455   : > { %5034 = vmatpush3.bf16.msra.mxu1 %v5629_v44  ;;  %5056 = vmatpush3.bf16.msra.mxu0 %v5630_v45 }
0x1456   : > { %5035 = vmatprep.subr.bf16.mxu1 %v5631_v46  ;;  %5057 = vmatprep.subr.bf16.mxu0 %v5632_v47 }
0x1459   : > { %5036 = vmatpush3.bf16.msra.mxu1 %v5633_v48  ;;  %5058 = vmatpush3.bf16.msra.mxu0 %v5634_v50 }
0x145a   : > { %5037 = vmatprep.subr.bf16.mxu1 %v5635_v51  ;;  %5059 = vmatprep.subr.bf16.mxu0 %v5636_v52 }
0x145d   : > { %5038 = vmatpush3.bf16.msra.mxu1 %v5637_v53  ;;  %5060 = vmatpush3.bf16.msra.mxu0 %v5638_v54 }
0x145e   : > { %5273 = vmatprep.subr.bf16.mxu1 %v5929_v0  ;;  %5293 = vmatprep.subr.bf16.mxu0 %v5929_v0 }
0x1500   : > { %v3816_v58 = vpop.f32.mrf.mxu1  ;;  %v3859_v59 = vpop.f32.mrf.mxu0 }
0x1501   : > { %v3817_v61 = vadd.f32 %v3816_v58, %v3605_v56  ;;  %v3860_v62 = vadd.f32 %v3859_v59, %v3613_v34 }
0x1502   : > { %v3818_v2 = vpop.f32.mrf.mxu1  ;;  %v3861_v3 = vpop.f32.mrf.mxu0 }
0x1503   : > { %v3876_v6 = vmul.f32 0.70710677, %v3817_v61  ;;  %v3878_v8 = vmul.f32 0.70710677, %v3860_v62  ;;  %v3819_v11 = vadd.f32 %v3818_v2, %v3609_v57  ;;  %v3862_v12 = vadd.f32 %v3861_v3, %v3617_v60 }
0x1504   : > { %v3820_v15 = vpop.f32.mrf.mxu1  ;;  %v3863_v16 = vpop.f32.mrf.mxu0  ;;  %v3868_v32 = vmul.f32 0.5, %v3817_v61  ;;  %v3870_v45 = vmul.f32 0.5, %v3860_v62 }
0x1505   : > { %v3821_v5 = vadd.f32 %v3820_v15, %v3605_v56  ;;  %v3864_v17 = vadd.f32 %v3863_v16, %v3613_v34  ;;  %5751 = verf.f32 %v3876_v6  ;;  %v3877_v23 = vmul.f32 0.70710677, %v3819_v11 }
0x1506   : > { %v3822_v18 = vpop.f32.mrf.mxu1  ;;  %v3865_v29 = vpop.f32.mrf.mxu0  ;;  %5753 = verf.f32 %v3878_v8  ;;  %v3879_v7 = vmul.f32 0.70710677, %v3862_v12  ;;  %v3869_v13 = vmul.f32 0.5, %v3819_v11  ;;  %v3871_v41 = vmul.f32 0.5, %v3862_v12 }
0x1507   : > { %v3880_v4 = vmul.f32 0.70710677, %v3821_v5  ;;  %5755 = verf.f32 %v3877_v23  ;;  %v3882_v49 = vmul.f32 0.70710677, %v3864_v17  ;;  %v3823_v19 = vadd.f32 %v3822_v18, %v3609_v57  ;;  %v4850_v57 = vld [vmem:[%s6753_s17 + $0x1] ss:$0 sm:$0xff] }
0x1508   : > { %v3866_v20 = vadd.f32 %v3865_v29, %v3617_v60  ;;  %5757 = verf.f32 %v3879_v7  ;;  %v3872_v10 = vmul.f32 0.5, %v3821_v5  ;;  %v3874_v37 = vmul.f32 0.5, %v3864_v17  ;;  %v5639_v5 = vld [vmem:[%s6756_s20 + $0x38] sm:$0xff]   ;;  %v5640_v17 = vld [vmem:[%s6756_s20 + $0x30] sm:$0xff]  }
0x1509   : > { %5759 = verf.f32 %v3880_v4  ;;  %v3881_v21 = vmul.f32 0.70710677, %v3823_v19  ;;  %v3873_v38 = vmul.f32 0.5, %v3823_v19  ;;  %v5642_v4 = vld [vmem:[%s6756_s20 + $0x20] sm:$0xff]   ;;  %v5644_v19 = vld [vmem:[%s6756_s20 + $0x10] sm:$0xff]  }
0x150a   : > { %5761 = verf.f32 %v3882_v49  ;;  %v3883_v63 = vmul.f32 0.70710677, %v3866_v20  ;;  %v3875_v43 = vmul.f32 0.5, %v3866_v20  ;;  %v5643_v49 = vld [vmem:[%s6756_s20 + $0x18] sm:$0xff]   ;;  %v5645_v20 = vld [vmem:[%s6756_s20 + $0x8] sm:$0xff]  }
0x150b   : > { %5763 = verf.f32 %v3881_v21  ;;  %v5646_v21 = vld [vmem:[%s6756_s20] sm:$0xff]  }
0x150c   : > { %5765 = verf.f32 %v3883_v63  ;;  %v5647_v63 = vld [vmem:[%s6758_s22 + $0x38] sm:$0xff]  }
0x1512   : > { %v5752_v24 = vpop.eup %5751 }
0x1513   : > { %v5754_v25 = vpop.eup %5753  ;;  %v3892_v30 = vadd.f32 1.0, %v5752_v24  ;;  %v5648_v24 = vld [vmem:[%s6758_s22 + $0x30] sm:$0xff]  }
0x1514   : > { %v5756_v26 = vpop.eup %5755  ;;  %v3894_v36 = vadd.f32 1.0, %v5754_v25  ;;  %v5649_v25 = vld [vmem:[%s6758_s22 + $0x28] sm:$0xff]  }
0x1515   : > { %v5758_v1 = vpop.eup %5757  ;;  %v3893_v28 = vadd.f32 1.0, %v5756_v26  ;;  %v3900_v50 = vmul.f32 %v3892_v30, %v3868_v32  ;;  %v4885_v32 = vld [vmem:[%s6754_s18 + $0x1] ss:$0 sm:$0xff] }
0x1516   : > { %v5760_v27 = vpop.eup %5759  ;;  %v3895_v31 = vadd.f32 1.0, %v5758_v1  ;;  %v3902_v53 = vmul.f32 %v3894_v36, %v3870_v45  ;;  %v5654_v36 = vld [vmem:[%s6758_s22] sm:$0xff]  }
0x1517   : > { %v5762_v40 = vpop.eup %5761  ;;  %v3896_v9 = vadd.f32 1.0, %v5760_v27  ;;  %v3901_v46 = vmul.f32 %v3893_v28, %v3869_v13  ;;  %v4886_v28 = vld [vmem:[%s6755_s19 + $0x1] ss:$0 sm:$0xff] }
0x1518   : > { %v5764_v14 = vpop.eup %5763  ;;  %v3898_v33 = vadd.f32 1.0, %v5762_v40  ;;  %v3903_v51 = vmul.f32 %v3895_v31, %v3871_v41  ;;  %v5650_v31 = vld [vmem:[%s6758_s22 + $0x20] sm:$0xff]  }
0x1519   : > { %v5766_v35 = vpop.eup %5765  ;;  %v3897_v39 = vadd.f32 1.0, %v5764_v14  ;;  %v3904_v42 = vmul.f32 %v3896_v9, %v3872_v10  ;;  %v5651_v10 = vld [vmem:[%s6758_s22 + $0x18] sm:$0xff]  }
0x151a   : > { %v3899_v44 = vadd.f32 1.0, %v5766_v35  ;;  %v3906_v47 = vmul.f32 %v3898_v33, %v3874_v37  ;;  %v5652_v33 = vld [vmem:[%s6758_s22 + $0x10] sm:$0xff]   ;;  %v5653_v35 = vld [vmem:[%s6758_s22 + $0x8] sm:$0xff]   ;;  %v4304_v37 = vld [vmem:[%s6757_s21] sm:$0x1] }
0x151b   : > { %v3905_v48 = vmul.f32 %v3897_v39, %v3873_v38  ;;  %v3973_v55 = vpack.c.bf16 %v3904_v42, %v3900_v50 }
0x151c   : > { %v3907_v52 = vmul.f32 %v3899_v44, %v3875_v43  ;;  %v3975_v34 = vpack.c.bf16 %v3906_v47, %v3902_v53 }
0x151d   : > { %v3974_v54 = vpack.c.bf16 %v3905_v48, %v3901_v46 }
0x151e   : > { %v3976_v56 = vpack.c.bf16 %v3907_v52, %v3903_v51 }
0x151f   : > { %4209 = vmatprep.mubr.bf16.mxu1 %v3974_v54 }
0x1520   : > { %4249 = vmatprep.mubr.bf16.mxu0 %v3976_v56  ;;  %4210 = vmatmul.mubr.bf16.vlgmr.msra.gmra.mxu1 %v3973_v55 }
0x1521   : > { %4250 = vmatmul.mubr.bf16.vlgmr.msra.gmra.mxu0 %v3975_v34  ;;  %5289 = vmatprep.mubr.msk.bf16.mxu1 %vm5930_vm0, %v5929_v0 }
0x1522   : > { %5309 = vmatprep.mubr.msk.bf16.mxu0 %vm5930_vm0, %v5929_v0  ;;  %5274 = vmatpush3.bf16.msra.mxu1 %v5639_v5 }
0x1523   : > { %5275 = vmatprep.subr.bf16.mxu1 %v5929_v0  ;;  %5294 = vmatpush3.bf16.msra.mxu0 %v5647_v63 }
0x1524   : > { %5295 = vmatprep.subr.bf16.mxu0 %v5929_v0 }
0x1526   : > { %5276 = vmatpush3.bf16.msra.mxu1 %v5640_v17 }
0x1527   : > { %5277 = vmatprep.subr.bf16.mxu1 %v5929_v0  ;;  %5296 = vmatpush3.bf16.msra.mxu0 %v5648_v24 }
0x1528   : > { %5297 = vmatprep.subr.bf16.mxu0 %v5929_v0 }
0x152b   : > { %5298 = vmatpush3.bf16.msra.mxu0 %v5649_v25 }
0x152c   : > { %5299 = vmatprep.subr.bf16.mxu0 %v5929_v0 }
0x152f   : > { %5300 = vmatpush3.bf16.msra.mxu0 %v5650_v31 }
0x1530   : > { %5301 = vmatprep.subr.bf16.mxu0 %v5929_v0 }
0x1533   : > { %5302 = vmatpush3.bf16.msra.mxu0 %v5651_v10 }
0x1534   : > { %5303 = vmatprep.subr.bf16.mxu0 %v5929_v0 }
0x1537   : > { %5304 = vmatpush3.bf16.msra.mxu0 %v5652_v33 }
0x1538   : > { %5305 = vmatprep.subr.bf16.mxu0 %v5929_v0 }
0x153b   : > { %5306 = vmatpush3.bf16.msra.mxu0 %v5653_v35 }
0x153c   : > { %5307 = vmatprep.subr.bf16.mxu0 %v5929_v0 }
0x153f   : > { %5308 = vmatpush3.bf16.msra.mxu0 %v5654_v36 }
0x15e0   : > { %v5039_v58 = vpop.f32.mrf.mxu1 }
0x15e1   : > { %v5061_v59 = vpop.f32.mrf.mxu0 }
0x15e2   : > { %v5040_v60 = vpop.f32.mrf.mxu1 }
0x15e3   : > { %v5041_v61 = vadd.f32 %v5040_v60, %v5039_v58  ;;  %v5062_v62 = vpop.f32.mrf.mxu0 }
0x15e4   : > { %v5042_v2 = vpop.f32.mrf.mxu1  ;;  %v5063_v6 = vadd.f32 %v5062_v62, %v5061_v59 }
0x15e5   : > { %v4212_v3 = vadd.f32 %v5041_v61, %v4850_v57  ;;  %v5064_v8 = vpop.f32.mrf.mxu0 }
0x15e6   : > { %v5043_v11 = vpop.f32.mrf.mxu1 }
0x15e7   : > { %v4252_v12 = vadd.f32 %v5063_v6, %v4212_v3  ;;  %v5065_v15 = vpop.f32.mrf.mxu0 }
0x15e9   : > { %v4257_v16 = vadd.f32 %v4252_v12, %v6595_v22  ;;  %v5641_v22 = vld [vmem:[%s6756_s20 + $0x28] sm:$0xff]  }
0x15ea   : > { %5278 = vmatpush3.bf16.msra.mxu1 %v5641_v22 }
0x15eb   : > { %4262 = vadd.xlane.f32.xlu0 %v4257_v16  ;;  %5279 = vmatprep.subr.bf16.mxu1 %v5929_v0 }
0x15ee   : > { %5280 = vmatpush3.bf16.msra.mxu1 %v5642_v4 }
0x15ef   : > { %5281 = vmatprep.subr.bf16.mxu1 %v5929_v0 }
0x15f2   : > { %5282 = vmatpush3.bf16.msra.mxu1 %v5643_v49 }
0x15f3   : > { %5283 = vmatprep.subr.bf16.mxu1 %v5929_v0 }
0x15f6   : > { %5284 = vmatpush3.bf16.msra.mxu1 %v5644_v19 }
0x15f7   : > { %5285 = vmatprep.subr.bf16.mxu1 %v5929_v0 }
0x15fa   : > { %5286 = vmatpush3.bf16.msra.mxu1 %v5645_v20 }
0x15fb   : > { %5287 = vmatprep.subr.bf16.mxu1 %v5929_v0  ;;  %v4411_v0 = vld [vmem:[%s6759_s23] sm:$0x1] }
0x15fe   : > { %5288 = vmatpush3.bf16.msra.mxu1 %v5646_v21 }
0x1674   : > { %v4263_v23 = vpop.xlane.xlu0 %4262 }
0x1675   : > { %v4264_v18 = vmul.f32 0.0078125, %v4263_v23 }
0x1677   : > { %v4265_v29 = vsub.f32 %v4257_v16, %v4264_v18 }
0x1679   : > { %v4266_v7 = vmul.f32 %v4265_v29, %v4265_v29 }
0x167b   : > { %4267 = vadd.xlane.f32.xlu1 %v4266_v7 }
0x1704   : > { %v4268_v26 = vpop.xlane.xlu1 %4267 }
0x1705   : > { %v4269_v1 = vmul.f32 0.0078125, %v4268_v26 }
0x1707   : > { %v4270_v27 = vadd.f32 1e-12, %v4269_v1 }
0x1709   : > { %5767 = vrsqrt.f32 %v4270_v27 }
0x1716   : > { %v5768_v40 = vpop.eup %5767 }
0x1717   : > { %v4272_v13 = vmul.f32 %v5768_v40, %v4265_v29 }
0x1719   : > { %v4279_v9 = vmul.f32 %v4885_v32, %v4272_v13 }
0x171b   : > { %v4286_v14 = vadd.f32 %v4886_v28, %v4279_v9 }
0x171d   : > { %v4303_v30 = vpack.c.bf16 %v4286_v14, %v4286_v14 }
0x171f   : > { %5290 = vmatmul.mubr.bf16.vlgmr.msra.gmra.mxu1 %v4303_v30 }
0x17df   : > { %v4387_v38 = vpop.f32.mrf.mxu1 }
0x17e0   : > { %v4388_v39 = vadd.f32 %v4387_v38, %v4304_v37 }
0x17e1   : > { %v5291_v41 = vpop.f32.mrf.mxu1 }
0x17e2   : > { %5769 = vtanh.f32 %v4388_v39 }
0x17e3   : > { %v4390_v42 = vpop.f32.mrf.mxu1 }
0x17e5   : > { %v5292_v43 = vpop.f32.mrf.mxu1 }
0x17ef   : > { %v5770_v44 = vpop.eup %5769 }
0x17f0   : > { %v4410_v45 = vpack.c.bf16 %v5770_v44, %v5770_v44 }
0x17f2   : > { %5310 = vmatmul.mubr.bf16.vlgmr.msra.gmra.mxu0 %v4410_v45 }
0x18b2   : > { %v4494_v46 = vpop.f32.mrf.mxu0 }
0x18b3   : > { %v4495_v47 = vadd.f32 %v4494_v46, %v4411_v0 }
0x18b4   : > { %v5311_v48 = vpop.f32.mrf.mxu0 }
0x18b5   : > { %4500 = vst [vmem:[%s795_s8] sm:$0x1] %v4495_v47 }
0x18b6   : > { %v4497_v50 = vpop.f32.mrf.mxu0 }
0x18b7   : > { %5863 = shalt.err (!%p5860_p11)
}
0x18b8   : > { %s5864_s28 = scalar_lea.hbm %s6695_s1, 16  ;;  %s5868_s24 = scalar_lea.hbm %s6807_s30, 32 }
0x18b9   : > { %p5865_p0 = scmp.ne.s32.totalorder %s6695_s1, %s5864_s28  ;;  %p5869_p3 = scmp.lt.s32.totalorder %s6695_s1, %s6807_s30 }
0x18ba   : > { %p5870_p2 = scmp.lt.s32.totalorder %s5868_s24, %s5864_s28 }
0x18bb   : > { %p5866_p1 = pnand %p5865_p0, %p6099_p5 }
0x18bc   : > { %p5871_p4 = por %p5870_p2, %p5869_p3 }
0x18bd   : > { %p5867_p13 = pneg %p5866_p1 }
0x18bf   : > { %p5872_p10 = pnand %p5871_p4, %p5867_p13 }
0x18c1   : > { %5875 = shalt.err (!%p5872_p10)
}
0x18c2   : > { %5325 = dma.vmem_to_hbm [thread:$0]  (%p6099_p5), %s6697_s2, 16, %s6695_s1, %s4502_s16   ;;  %v5312_v51 = vpop.f32.mrf.mxu0 }
0x18c3 PF: > { %s6808_s27 = sld [smem:[#allocation16_spill]] }
0x18c4   : > { %s6809_s14 = sld [smem:[#allocation14_spill]] }
0x18c5   : > { %s6810_s6 = sld [smem:[#allocation19_spill]] }
0x18c9   : > { %p5347_p12 = scmp.ge.s32.totalorder %s6808_s27, 2 }
0x18ca   : > { %s4526_s4 = sand.u32 1, %s6809_s14  }
0x18cb   : > { %p6811_p7 = scmp.ne.s32.totalorder %s6810_s6, 0  ;;  %s4527_s25 = scalar_lea.sflag [#allocation6], %s4526_s4 }
0x18cd   : > { %p5338_p6 = pnand %p5347_p12, %p6811_p7 }
0x18cf   : > { %p5339_p9 = pneg %p5338_p6 }
0x18d1   : > { %5901 = dma.done.wait (%p5339_p9), %s4527_s25, 16  }
0x18d2   : > { %5903 = vsyncadd (%p5339_p9), %s4527_s25, 4294967280  ;;  %s6812_s28 = sld [smem:[#allocation17_spill]]  ;;  %s6815_s5 = smov %s5910_s26 }
0x18d3   : > { %s6813_s0 = sld [smem:[#allocation15_spill]] }
0x18d4   : > { %s6814_s27 = sld [smem:[#allocation18_spill]] }
0x18d8   : > { %p36_p8 = scmp.ge.s32.totalorder %s6812_s28, 4  }
0x18d9   : > { %s6816_s26 = smov %s6813_s0 }
0x18da   :  { %38 = sbr.rel (!%p36_p8) target bundleno = 18 (0x12), region = 182 }
0x18df   :  { %4531 = vsyncpa [#allocation5], 1 }
0x18e0   :  { %4533 = vsyncpa [#allocation5 + $0x1], 1 }
0x18e1   :  { %4534 = vsyncpa [#allocation8], 1 }
0x18e2   :  { %4535 = vsyncpa [#allocation6], 1 }
0x18e3   :  { %4537 = vsyncpa [#allocation6 + $0x1], 1 }

</bundles_post_ra>
